<compile_context>
chip_gen: v7x
topology: tpu7x:2x2x1
jax: 0.10.0
libtpu: 0.0.40
codegen_flags: <defaults>
</compile_context>

<pallas_src>
import functools

import jax
import jax.numpy as jnp
from jax import lax
from jax.experimental import pallas as pl
from jax.experimental.pallas import tpu as pltpu


def _cbow_kernel(x_ref, w1_ref, b1_ref, w2_ref, b2_ref, out_ref, lse_ref,
                 h_ref, m_ref, s_ref, *, tsub, finalize_in_kernel):
    # x_ref   : VMEM (B, C*D) f32      gathered+flattened context embeddings
    # w1_ref  : VMEM (C*D, H) f32      resident
    # b1_ref  : VMEM (1, H)   f32
    # w2_ref  : VMEM (H, TV)  bf16     streamed vocab tile
    # b2_ref  : VMEM (1, TV)  f32      streamed vocab tile (padding = -1e30)
    # out_ref : VMEM (B, V_half) f32   resident per-core logits/log-probs block
    # lse_ref : VMEM (B, 128) f32      per-core partial logsumexp (broadcast)
    # h_ref   : VMEM (B, H) bf16       hidden activations (computed once/core)
    # m_ref   : VMEM (B, 1) f32        running max   (online logsumexp)
    # s_ref   : VMEM (B, 1) f32        running sum-of-exp
    B = x_ref.shape[0]
    tv = w2_ref.shape[-1]
    j = pl.program_id(1)
    n_inner = pl.num_programs(1)

    @pl.when(j == 0)
    def _prologue():
        # linear1 + ReLU, one well-shaped MXU matmul. (Set precision=HIGHEST
        # here if bit-closer parity with the f32 PyTorch GEMM is needed.)
        h = jnp.dot(x_ref[...], w1_ref[...],
                    preferred_element_type=jnp.float32) + b1_ref[...]
        h_ref[...] = jnp.maximum(h, 0.0).astype(jnp.bfloat16)
        m_ref[...] = jnp.full((B, 1), -jnp.inf, jnp.float32)
        s_ref[...] = jnp.zeros((B, 1), jnp.float32)

    h = h_ref[...]                      # (B, H) bf16, hoisted out of the loop
    base = j * tv                       # lane offset of this tile in out_ref

    def sub_body(i, carry):
        woff = pl.multiple_of(i * tsub, tsub)
        logits = (jnp.dot(h, w2_ref[:, pl.ds(woff, tsub)],
                          preferred_element_type=jnp.float32)
                  + b2_ref[:, pl.ds(woff, tsub)])          # (B, TSUB) f32
        # online logsumexp update
        m_old = m_ref[...]
        m_new = jnp.maximum(m_old, jnp.max(logits, axis=-1, keepdims=True))
        s_ref[...] = (s_ref[...] * jnp.exp(m_old - m_new)
                      + jnp.sum(jnp.exp(logits - m_new), axis=-1,
                                keepdims=True))
        m_ref[...] = m_new
        # single aligned lane-dense dynamic store of the raw logits
        out_ref[:, pl.ds(pl.multiple_of(base + woff, tsub), tsub)] = logits
        return carry

    lax.fori_loop(0, tv // tsub, sub_body, 0, unroll=True)

    @pl.when(j == n_inner - 1)
    def _finalize():
        lse = m_ref[...] + jnp.log(s_ref[...])              # (B, 1)
        lse_ref[...] = jnp.broadcast_to(lse, lse_ref.shape)
        if finalize_in_kernel:
            # single-core: subtract in VMEM so HBM sees final log-probs once
            out_ref[...] = out_ref[...] - lse


def prepare_w2(w2, b2, *, tv, num_cores=1):
    """One-time prep of the dominant stream: bf16 cast + lane-dense pad."""
    H, V = w2.shape
    n_tiles = pl.cdiv(V, tv)
    n_tiles = pl.cdiv(n_tiles, num_cores) * num_cores
    v_pad = n_tiles * tv
    w2p = jnp.pad(w2.astype(jnp.bfloat16), ((0, 0), (0, v_pad - V)))
    # NOTE: b2p must stay float32 -- the -1e30 pad sentinel saturates to -inf
    # in bf16 and would risk NaNs in the logsumexp.
    b2p = jnp.pad(b2.astype(jnp.float32), ((0, 0), (0, v_pad - V)),
                  constant_values=-1e30)
    return w2p, b2p


def cbow_forward(indices, emb, w1_flat, b1, w2p, b2p, vocab_size, *,
                 tv=4096, tsub=1024, num_cores=1):
    """indices: (B, C) int32 context ids; returns (B, V) float32 log-probs.

    B=1 reproduces the module's forward exactly; B>1 applies it per example.
    w2p/b2p must come from prepare_w2 with the same (tv, num_cores).
    num_cores=2 targets v7x (2 TensorCores); 1 for v5e/v6e.
    """
    B, C = indices.shape
    V = vocab_size
    D = emb.shape[1]
    CD = C * D
    H = w1_flat.shape[1]
    assert w1_flat.shape == (CD, H) and b1.shape == (1, H)
    tsub = min(tsub, tv)
    assert tv % 128 == 0 and tsub % 128 == 0 and tv % tsub == 0
    v_pad = w2p.shape[1]
    assert w2p.shape == (H, v_pad) and b2p.shape == (1, v_pad)
    assert v_pad >= V and v_pad % (tv * num_cores) == 0
    n_tiles = v_pad // tv
    n_inner = n_tiles // num_cores
    v_half = n_inner * tv

    # Tiny XLA gather outside the kernel (B*C*D*4 bytes).
    x = emb[indices].reshape(B, CD).astype(jnp.float32)

    kernel = functools.partial(_cbow_kernel, tsub=tsub,
                               finalize_in_kernel=(num_cores == 1))

    grid_spec = pltpu.PrefetchScalarGridSpec(
        num_scalar_prefetch=0,
        grid=(num_cores, n_inner),
        in_specs=[
            pl.BlockSpec((B, CD), lambda c, j: (0, 0)),              # x
            pl.BlockSpec((CD, H), lambda c, j: (0, 0)),              # W1
            pl.BlockSpec((1, H), lambda c, j: (0, 0)),               # b1
            pl.BlockSpec((H, tv), lambda c, j: (0, c * n_inner + j)),  # W2 tile
            pl.BlockSpec((1, tv), lambda c, j: (0, c * n_inner + j)),  # b2 tile
        ],
        out_specs=(
            pl.BlockSpec((B, v_half), lambda c, j: (0, c)),   # per-core logits
            pl.BlockSpec((B, 128), lambda c, j: (0, c)),      # per-core lse
        ),
        scratch_shapes=[
            pltpu.VMEM((B, H), jnp.bfloat16),   # hidden activations
            pltpu.VMEM((B, 1), jnp.float32),    # running max
            pltpu.VMEM((B, 1), jnp.float32),    # running sum of exp
        ],
    )

    # Explicit scoped-VMEM budget: double-buffered W2/b2 stream + resident
    # output blocks + small resident inputs + scratch, plus headroom.
    vmem_bytes = (2 * (H * tv * 2 + tv * 4)
                  + 2 * (B * v_half * 4 + B * 128 * 4)
                  + 2 * (B * CD * 4 + CD * H * 4 + H * 4)
                  + B * H * 2 + 2 * B * 128 * 4)
    vmem_limit = int(min(vmem_bytes + (8 << 20), 64 << 20))

    cost = pl.CostEstimate(
        flops=B * (2 * CD * H + 2 * H * v_pad),
        transcendentals=B * (v_pad + n_tiles),
        bytes_accessed=(H * v_pad * 2 + v_pad * 4 + B * CD * 4 + CD * H * 4
                        + H * 4 + B * v_pad * 4 + B * num_cores * 128 * 4),
    )

    out, lse = pl.pallas_call(
        kernel,
        out_shape=(jax.ShapeDtypeStruct((B, v_pad), jnp.float32),
                   jax.ShapeDtypeStruct((B, num_cores * 128), jnp.float32)),
        grid_spec=grid_spec,
        compiler_params=pltpu.CompilerParams(
            dimension_semantics=("parallel", "arbitrary"),
            vmem_limit_bytes=vmem_limit),
        cost_estimate=cost,
    )(x, w1_flat, b1, w2p, b2p)

    if num_cores == 1:
        return out[:, :V]

    # Combine per-core partial logsumexps and subtract outside the kernel.
    lse_parts = lse.reshape(B, num_cores, 128)[:, :, 0]          # (B, cores)
    m = jnp.max(lse_parts, axis=1, keepdims=True)
    full_lse = m + jnp.log(jnp.sum(jnp.exp(lse_parts - m), axis=1,
                                   keepdims=True))
    return (out - full_lse)[:, :V]


def _reference_forward(indices, emb, w1_flat, b1, w2_bf16, b2):
    """Pure-JAX reference mirroring the PyTorch forward (bf16 W2, f32 accum)."""
    def one(ctx):
        flat = emb[ctx].reshape(1, -1)                                 # (1, C*D)
        h = jax.nn.relu(jnp.dot(flat, w1_flat,
                                precision=jax.lax.Precision.HIGHEST) + b1)
        logits = jnp.dot(h.astype(jnp.bfloat16), w2_bf16,
                         preferred_element_type=jnp.float32) + b2      # (1, V)
        return jax.nn.log_softmax(logits, axis=-1)[0]
    return jax.vmap(one)(indices)                                      # (B, V)


if __name__ == "__main__":
    VOCAB = 8000      # padded to 8192 internally (lane-dense)
    EMB_DIM = 32
    CONTEXT = 4
    HIDDEN = 128      # fixed by the module
    BATCH = 8         # multiple of 8 sublanes; each W2 tile reused B times
    TV = 4096         # W2 vocab-tile width (>= 4096 amortizes per-step cost)
    TSUB = 1024       # in-kernel sub-chunk (bounds live f32 logit vregs)

    key = jax.random.PRNGKey(0)
    k_emb, k_w1, k_b1, k_w2, k_b2, k_idx = jax.random.split(key, 6)

    emb = jax.random.normal(k_emb, (VOCAB, EMB_DIM), dtype=jnp.float32)
    # linear1.weight is (128, C*D) in PyTorch; stored transposed (C*D, 128).
    w1 = 0.1 * jax.random.normal(k_w1, (CONTEXT * EMB_DIM, HIDDEN),
                                 dtype=jnp.float32)
    b1 = 0.1 * jax.random.normal(k_b1, (1, HIDDEN), dtype=jnp.float32)
    # linear2.weight is (vocab, 128) in PyTorch; stored transposed (128, vocab).
    w2 = 0.1 * jax.random.normal(k_w2, (HIDDEN, VOCAB), dtype=jnp.float32)
    b2 = 0.1 * jax.random.normal(k_b2, (1, VOCAB), dtype=jnp.float32)

    # A batch of context-index vectors (each row == the module's `inputs`).
    indices = jax.random.randint(k_idx, (BATCH, CONTEXT), 0, VOCAB,
                                 dtype=jnp.int32)

    ref = _reference_forward(indices, emb, w1, b1, w2.astype(jnp.bfloat16), b2)

    # --- single-core path (v5e / v6e): lse subtracted in-kernel --------------
    w2p, b2p = prepare_w2(w2, b2, tv=TV, num_cores=1)       # one-time cost
    out1 = cbow_forward(indices, emb, w1, b1, w2p, b2p, VOCAB,
                        tv=TV, tsub=TSUB, num_cores=1)
    out1 = jax.block_until_ready(out1)
    assert out1.shape == (BATCH, VOCAB)
    err1 = float(jnp.max(jnp.abs(out1 - ref)))
    assert jnp.allclose(out1, ref, atol=5e-3, rtol=5e-3), (
        f"num_cores=1 mismatch vs reference, max |err| = {err1}")

    # --- dual-core path (v7x): vocab split over a parallel grid axis ---------
    w2p2, b2p2 = prepare_w2(w2, b2, tv=TV, num_cores=2)
    out2 = cbow_forward(indices, emb, w1, b1, w2p2, b2p2, VOCAB,
                        tv=TV, tsub=TSUB, num_cores=2)
    out2 = jax.block_until_ready(out2)
    err2 = float(jnp.max(jnp.abs(out2 - ref)))
    assert jnp.allclose(out2, ref, atol=5e-3, rtol=5e-3), (
        f"num_cores=2 mismatch vs reference, max |err| = {err2}")

    print("KERNEL_OK")
</pallas_src>

<mosaic_0001>
module attributes {stable_mosaic.version = 11 : i64} {
  func.func @_cbow_kernel(%arg0: i32, %arg1: i32, %arg2: memref<8x128xf32, #tpu.memory_space<vmem>>, %arg3: memref<128x128xf32, #tpu.memory_space<vmem>>, %arg4: memref<1x128xf32, #tpu.memory_space<vmem>>, %arg5: memref<128x4096xbf16, #tpu.memory_space<vmem>>, %arg6: memref<1x4096xf32, #tpu.memory_space<vmem>>, %arg7: memref<8x8192xf32, #tpu.memory_space<vmem>>, %arg8: memref<8x128xf32, #tpu.memory_space<vmem>>, %arg9: memref<8x128xbf16, #tpu.memory_space<vmem>>, %arg10: memref<8x1xf32, #tpu.memory_space<vmem>>, %arg11: memref<8x1xf32, #tpu.memory_space<vmem>>) attributes {dimension_semantics = [#tpu.dimension_semantics<parallel>, #tpu.dimension_semantics<arbitrary>], iteration_bounds = array<i64: 1, 2>, scalar_prefetch = 0 : i64, scratch_operands = 3 : i64, tpu.core_type = #tpu.core_type<tc>, window_params = [{pipeline_mode = #tpu.pipeline_mode<synchronous>, transform_indices = @transform_0, window_bounds = array<i64: 8, 128>}, {pipeline_mode = #tpu.pipeline_mode<synchronous>, transform_indices = @transform_1, window_bounds = array<i64: 128, 128>}, {pipeline_mode = #tpu.pipeline_mode<synchronous>, transform_indices = @transform_2, window_bounds = array<i64: 1, 128>}, {transform_indices = @transform_3, window_bounds = array<i64: 128, 4096>}, {transform_indices = @transform_4, window_bounds = array<i64: 1, 4096>}, {transform_indices = @transform_5, window_bounds = array<i64: 8, 8192>}, {transform_indices = @transform_6, window_bounds = array<i64: 8, 128>}]} {
    %c0_i32 = arith.constant 0 : i32
    %0 = arith.cmpi eq, %arg1, %c0_i32 : i32
    %1 = arith.extui %0 : i1 to i32
    %c0_i32_0 = arith.constant 0 : i32
    %2 = arith.cmpi ne, %1, %c0_i32_0 : i32
    scf.if %2 {
      %c0_63 = arith.constant 0 : index
      %c0_64 = arith.constant 0 : index
      %124 = vector.load %arg2[%c0_63, %c0_64] : memref<8x128xf32, #tpu.memory_space<vmem>>, vector<8x128xf32>
      %c0_65 = arith.constant 0 : index
      %c0_66 = arith.constant 0 : index
      %125 = vector.load %arg3[%c0_65, %c0_66] : memref<128x128xf32, #tpu.memory_space<vmem>>, vector<128x128xf32>
      %cst_67 = arith.constant dense<0.000000e+00> : vector<8x128xf32>
      %126 = tpu.matmul %124, %125, %cst_67 {dimension_numbers = #tpu.dot_dimension_numbers<[1], [0], [0], [1], [0, 0, 1, 1], [], []>} : vector<8x128xf32>, vector<128x128xf32>, vector<8x128xf32> -> vector<8x128xf32>
      %c0_68 = arith.constant 0 : index
      %c0_69 = arith.constant 0 : index
      %127 = vector.load %arg4[%c0_68, %c0_69] : memref<1x128xf32, #tpu.memory_space<vmem>>, vector<1x128xf32>
      %128 = vector.broadcast %127 : vector<1x128xf32> to vector<8x128xf32>
      %129 = arith.addf %126, %128 : vector<8x128xf32>
      %cst_70 = arith.constant 0.000000e+00 : f32
      %130 = vector.broadcast %cst_70 : f32 to vector<8x128xf32>
      %131 = arith.maximumf %129, %130 : vector<8x128xf32>
      %132 = arith.truncf %131 : vector<8x128xf32> to vector<8x128xbf16>
      %c0_71 = arith.constant 0 : index
      %c0_72 = arith.constant 0 : index
      %133 = vector.load %arg9[%c0_71, %c0_72] : memref<8x128xbf16, #tpu.memory_space<vmem>>, vector<8x128xbf16>
      tpu.vector_store %arg9[%c0_71, %c0_72], %132 {strides = array<i32>} : memref<8x128xbf16, #tpu.memory_space<vmem>>, vector<8x128xbf16>,
      %cst_73 = arith.constant 0xFF800000 : f32
      %134 = vector.broadcast %cst_73 : f32 to vector<8x1xf32>
      %c0_74 = arith.constant 0 : index
      %c0_75 = arith.constant 0 : index
      %135 = vector.load %arg10[%c0_74, %c0_75] : memref<8x1xf32, #tpu.memory_space<vmem>>, vector<8x1xf32>
      tpu.vector_store %arg10[%c0_74, %c0_75], %134 {strides = array<i32>} : memref<8x1xf32, #tpu.memory_space<vmem>>, vector<8x1xf32>,
      %cst_76 = arith.constant 0.000000e+00 : f32
      %136 = vector.broadcast %cst_76 : f32 to vector<8x1xf32>
      %c0_77 = arith.constant 0 : index
      %c0_78 = arith.constant 0 : index
      %137 = vector.load %arg11[%c0_77, %c0_78] : memref<8x1xf32, #tpu.memory_space<vmem>>, vector<8x1xf32>
      tpu.vector_store %arg11[%c0_77, %c0_78], %136 {strides = array<i32>} : memref<8x1xf32, #tpu.memory_space<vmem>>, vector<8x1xf32>,
    } else {
    }
    %c0 = arith.constant 0 : index
    %c0_1 = arith.constant 0 : index
    %3 = vector.load %arg9[%c0, %c0_1] : memref<8x128xbf16, #tpu.memory_space<vmem>>, vector<8x128xbf16>
    %c4096_i32 = arith.constant 4096 : i32
    %4 = arith.muli %arg1, %c4096_i32 : i32
    %c0_i32_2 = arith.constant 0 : i32
    %c1024_i32 = arith.constant 1024 : i32
    %5 = arith.muli %c0_i32_2, %c1024_i32 : i32
    %6 = tpu.assume_multiple %5, 1024 : i32
    %c0_3 = arith.constant 0 : index
    %7 = arith.index_cast %6 : i32 to index
    %8 = vector.load %arg5[%c0_3, %7] : memref<128x4096xbf16, #tpu.memory_space<vmem>>, vector<128x1024xbf16>
    %cst = arith.constant dense<0.000000e+00> : vector<8x1024xf32>
    %9 = tpu.matmul %3, %8, %cst {dimension_numbers = #tpu.dot_dimension_numbers<[1], [0], [0], [1], [0, 0, 1, 1], [], []>} : vector<8x128xbf16>, vector<128x1024xbf16>, vector<8x1024xf32> -> vector<8x1024xf32>
    %c0_4 = arith.constant 0 : index
    %10 = arith.index_cast %6 : i32 to index
    %11 = vector.load %arg6[%c0_4, %10] : memref<1x4096xf32, #tpu.memory_space<vmem>>, vector<1x1024xf32>
    %12 = vector.broadcast %11 : vector<1x1024xf32> to vector<8x1024xf32>
    %13 = arith.addf %9, %12 : vector<8x1024xf32>
    %c0_5 = arith.constant 0 : index
    %c0_6 = arith.constant 0 : index
    %14 = vector.load %arg10[%c0_5, %c0_6] : memref<8x1xf32, #tpu.memory_space<vmem>>, vector<8x1xf32>
    %cst_7 = arith.constant dense<0xFF800000> : vector<8xf32>
    %15 = vector.multi_reduction <maximumf>, %13, %cst_7 [1] : vector<8x1024xf32> to vector<8xf32>
    %16 = vector.shape_cast %15 : vector<8xf32> to vector<8x1xf32>
    %17 = arith.maximumf %14, %16 : vector<8x1xf32>
    %c0_8 = arith.constant 0 : index
    %c0_9 = arith.constant 0 : index
    %18 = vector.load %arg11[%c0_8, %c0_9] : memref<8x1xf32, #tpu.memory_space<vmem>>, vector<8x1xf32>
    %19 = arith.subf %14, %17 : vector<8x1xf32>
    %20 = math.exp %19 : vector<8x1xf32>
    %21 = arith.mulf %18, %20 : vector<8x1xf32>
    %22 = vector.broadcast %17 : vector<8x1xf32> to vector<8x1024xf32>
    %23 = arith.subf %13, %22 : vector<8x1024xf32>
    %24 = math.exp %23 : vector<8x1024xf32>
    %cst_10 = arith.constant dense<0.000000e+00> : vector<8xf32>
    %25 = vector.multi_reduction <add>, %24, %cst_10 [1] : vector<8x1024xf32> to vector<8xf32>
    %26 = vector.shape_cast %25 : vector<8xf32> to vector<8x1xf32>
    %27 = arith.addf %21, %26 : vector<8x1xf32>
    %c0_11 = arith.constant 0 : index
    %c0_12 = arith.constant 0 : index
    %28 = vector.load %arg11[%c0_11, %c0_12] : memref<8x1xf32, #tpu.memory_space<vmem>>, vector<8x1xf32>
    tpu.vector_store %arg11[%c0_11, %c0_12], %27 {strides = array<i32>} : memref<8x1xf32, #tpu.memory_space<vmem>>, vector<8x1xf32>,
    %c0_13 = arith.constant 0 : index
    %c0_14 = arith.constant 0 : index
    %29 = vector.load %arg10[%c0_13, %c0_14] : memref<8x1xf32, #tpu.memory_space<vmem>>, vector<8x1xf32>
    tpu.vector_store %arg10[%c0_13, %c0_14], %17 {strides = array<i32>} : memref<8x1xf32, #tpu.memory_space<vmem>>, vector<8x1xf32>,
    %30 = arith.addi %4, %6 : i32
    %31 = tpu.assume_multiple %30, 1024 : i32
    %c0_15 = arith.constant 0 : index
    %32 = arith.index_cast %31 : i32 to index
    %33 = vector.load %arg7[%c0_15, %32] : memref<8x8192xf32, #tpu.memory_space<vmem>>, vector<8x1024xf32>
    tpu.vector_store %arg7[%c0_15, %32], %13 {strides = array<i32>} : memref<8x8192xf32, #tpu.memory_space<vmem>>, vector<8x1024xf32>,
    %c1_i32 = arith.constant 1 : i32
    %c1024_i32_16 = arith.constant 1024 : i32
    %34 = arith.muli %c1_i32, %c1024_i32_16 : i32
    %35 = tpu.assume_multiple %34, 1024 : i32
    %c0_17 = arith.constant 0 : index
    %36 = arith.index_cast %35 : i32 to index
    %37 = vector.load %arg5[%c0_17, %36] : memref<128x4096xbf16, #tpu.memory_space<vmem>>, vector<128x1024xbf16>
    %cst_18 = arith.constant dense<0.000000e+00> : vector<8x1024xf32>
    %38 = tpu.matmul %3, %37, %cst_18 {dimension_numbers = #tpu.dot_dimension_numbers<[1], [0], [0], [1], [0, 0, 1, 1], [], []>} : vector<8x128xbf16>, vector<128x1024xbf16>, vector<8x1024xf32> -> vector<8x1024xf32>
    %c0_19 = arith.constant 0 : index
    %39 = arith.index_cast %35 : i32 to index
    %40 = vector.load %arg6[%c0_19, %39] : memref<1x4096xf32, #tpu.memory_space<vmem>>, vector<1x1024xf32>
    %41 = vector.broadcast %40 : vector<1x1024xf32> to vector<8x1024xf32>
    %42 = arith.addf %38, %41 : vector<8x1024xf32>
    %c0_20 = arith.constant 0 : index
    %c0_21 = arith.constant 0 : index
    %43 = vector.load %arg10[%c0_20, %c0_21] : memref<8x1xf32, #tpu.memory_space<vmem>>, vector<8x1xf32>
    %cst_22 = arith.constant dense<0xFF800000> : vector<8xf32>
    %44 = vector.multi_reduction <maximumf>, %42, %cst_22 [1] : vector<8x1024xf32> to vector<8xf32>
    %45 = vector.shape_cast %44 : vector<8xf32> to vector<8x1xf32>
    %46 = arith.maximumf %43, %45 : vector<8x1xf32>
    %c0_23 = arith.constant 0 : index
    %c0_24 = arith.constant 0 : index
    %47 = vector.load %arg11[%c0_23, %c0_24] : memref<8x1xf32, #tpu.memory_space<vmem>>, vector<8x1xf32>
    %48 = arith.subf %43, %46 : vector<8x1xf32>
    %49 = math.exp %48 : vector<8x1xf32>
    %50 = arith.mulf %47, %49 : vector<8x1xf32>
    %51 = vector.broadcast %46 : vector<8x1xf32> to vector<8x1024xf32>
    %52 = arith.subf %42, %51 : vector<8x1024xf32>
    %53 = math.exp %52 : vector<8x1024xf32>
    %cst_25 = arith.constant dense<0.000000e+00> : vector<8xf32>
    %54 = vector.multi_reduction <add>, %53, %cst_25 [1] : vector<8x1024xf32> to vector<8xf32>
    %55 = vector.shape_cast %54 : vector<8xf32> to vector<8x1xf32>
    %56 = arith.addf %50, %55 : vector<8x1xf32>
    %c0_26 = arith.constant 0 : index
    %c0_27 = arith.constant 0 : index
    %57 = vector.load %arg11[%c0_26, %c0_27] : memref<8x1xf32, #tpu.memory_space<vmem>>, vector<8x1xf32>
    tpu.vector_store %arg11[%c0_26, %c0_27], %56 {strides = array<i32>} : memref<8x1xf32, #tpu.memory_space<vmem>>, vector<8x1xf32>,
    %c0_28 = arith.constant 0 : index
    %c0_29 = arith.constant 0 : index
    %58 = vector.load %arg10[%c0_28, %c0_29] : memref<8x1xf32, #tpu.memory_space<vmem>>, vector<8x1xf32>
    tpu.vector_store %arg10[%c0_28, %c0_29], %46 {strides = array<i32>} : memref<8x1xf32, #tpu.memory_space<vmem>>, vector<8x1xf32>,
    %59 = arith.addi %4, %35 : i32
    %60 = tpu.assume_multiple %59, 1024 : i32
    %c0_30 = arith.constant 0 : index
    %61 = arith.index_cast %60 : i32 to index
    %62 = vector.load %arg7[%c0_30, %61] : memref<8x8192xf32, #tpu.memory_space<vmem>>, vector<8x1024xf32>
    tpu.vector_store %arg7[%c0_30, %61], %42 {strides = array<i32>} : memref<8x8192xf32, #tpu.memory_space<vmem>>, vector<8x1024xf32>,
    %c2_i32 = arith.constant 2 : i32
    %c1024_i32_31 = arith.constant 1024 : i32
    %63 = arith.muli %c2_i32, %c1024_i32_31 : i32
    %64 = tpu.assume_multiple %63, 1024 : i32
    %c0_32 = arith.constant 0 : index
    %65 = arith.index_cast %64 : i32 to index
    %66 = vector.load %arg5[%c0_32, %65] : memref<128x4096xbf16, #tpu.memory_space<vmem>>, vector<128x1024xbf16>
    %cst_33 = arith.constant dense<0.000000e+00> : vector<8x1024xf32>
    %67 = tpu.matmul %3, %66, %cst_33 {dimension_numbers = #tpu.dot_dimension_numbers<[1], [0], [0], [1], [0, 0, 1, 1], [], []>} : vector<8x128xbf16>, vector<128x1024xbf16>, vector<8x1024xf32> -> vector<8x1024xf32>
    %c0_34 = arith.constant 0 : index
    %68 = arith.index_cast %64 : i32 to index
    %69 = vector.load %arg6[%c0_34, %68] : memref<1x4096xf32, #tpu.memory_space<vmem>>, vector<1x1024xf32>
    %70 = vector.broadcast %69 : vector<1x1024xf32> to vector<8x1024xf32>
    %71 = arith.addf %67, %70 : vector<8x1024xf32>
    %c0_35 = arith.constant 0 : index
    %c0_36 = arith.constant 0 : index
    %72 = vector.load %arg10[%c0_35, %c0_36] : memref<8x1xf32, #tpu.memory_space<vmem>>, vector<8x1xf32>
    %cst_37 = arith.constant dense<0xFF800000> : vector<8xf32>
    %73 = vector.multi_reduction <maximumf>, %71, %cst_37 [1] : vector<8x1024xf32> to vector<8xf32>
    %74 = vector.shape_cast %73 : vector<8xf32> to vector<8x1xf32>
    %75 = arith.maximumf %72, %74 : vector<8x1xf32>
    %c0_38 = arith.constant 0 : index
    %c0_39 = arith.constant 0 : index
    %76 = vector.load %arg11[%c0_38, %c0_39] : memref<8x1xf32, #tpu.memory_space<vmem>>, vector<8x1xf32>
    %77 = arith.subf %72, %75 : vector<8x1xf32>
    %78 = math.exp %77 : vector<8x1xf32>
    %79 = arith.mulf %76, %78 : vector<8x1xf32>
    %80 = vector.broadcast %75 : vector<8x1xf32> to vector<8x1024xf32>
    %81 = arith.subf %71, %80 : vector<8x1024xf32>
    %82 = math.exp %81 : vector<8x1024xf32>
    %cst_40 = arith.constant dense<0.000000e+00> : vector<8xf32>
    %83 = vector.multi_reduction <add>, %82, %cst_40 [1] : vector<8x1024xf32> to vector<8xf32>
    %84 = vector.shape_cast %83 : vector<8xf32> to vector<8x1xf32>
    %85 = arith.addf %79, %84 : vector<8x1xf32>
    %c0_41 = arith.constant 0 : index
    %c0_42 = arith.constant 0 : index
    %86 = vector.load %arg11[%c0_41, %c0_42] : memref<8x1xf32, #tpu.memory_space<vmem>>, vector<8x1xf32>
    tpu.vector_store %arg11[%c0_41, %c0_42], %85 {strides = array<i32>} : memref<8x1xf32, #tpu.memory_space<vmem>>, vector<8x1xf32>,
    %c0_43 = arith.constant 0 : index
    %c0_44 = arith.constant 0 : index
    %87 = vector.load %arg10[%c0_43, %c0_44] : memref<8x1xf32, #tpu.memory_space<vmem>>, vector<8x1xf32>
    tpu.vector_store %arg10[%c0_43, %c0_44], %75 {strides = array<i32>} : memref<8x1xf32, #tpu.memory_space<vmem>>, vector<8x1xf32>,
    %88 = arith.addi %4, %64 : i32
    %89 = tpu.assume_multiple %88, 1024 : i32
    %c0_45 = arith.constant 0 : index
    %90 = arith.index_cast %89 : i32 to index
    %91 = vector.load %arg7[%c0_45, %90] : memref<8x8192xf32, #tpu.memory_space<vmem>>, vector<8x1024xf32>
    tpu.vector_store %arg7[%c0_45, %90], %71 {strides = array<i32>} : memref<8x8192xf32, #tpu.memory_space<vmem>>, vector<8x1024xf32>,
    %c3_i32 = arith.constant 3 : i32
    %c1024_i32_46 = arith.constant 1024 : i32
    %92 = arith.muli %c3_i32, %c1024_i32_46 : i32
    %93 = tpu.assume_multiple %92, 1024 : i32
    %c0_47 = arith.constant 0 : index
    %94 = arith.index_cast %93 : i32 to index
    %95 = vector.load %arg5[%c0_47, %94] : memref<128x4096xbf16, #tpu.memory_space<vmem>>, vector<128x1024xbf16>
    %cst_48 = arith.constant dense<0.000000e+00> : vector<8x1024xf32>
    %96 = tpu.matmul %3, %95, %cst_48 {dimension_numbers = #tpu.dot_dimension_numbers<[1], [0], [0], [1], [0, 0, 1, 1], [], []>} : vector<8x128xbf16>, vector<128x1024xbf16>, vector<8x1024xf32> -> vector<8x1024xf32>
    %c0_49 = arith.constant 0 : index
    %97 = arith.index_cast %93 : i32 to index
    %98 = vector.load %arg6[%c0_49, %97] : memref<1x4096xf32, #tpu.memory_space<vmem>>, vector<1x1024xf32>
    %99 = vector.broadcast %98 : vector<1x1024xf32> to vector<8x1024xf32>
    %100 = arith.addf %96, %99 : vector<8x1024xf32>
    %c0_50 = arith.constant 0 : index
    %c0_51 = arith.constant 0 : index
    %101 = vector.load %arg10[%c0_50, %c0_51] : memref<8x1xf32, #tpu.memory_space<vmem>>, vector<8x1xf32>
    %cst_52 = arith.constant dense<0xFF800000> : vector<8xf32>
    %102 = vector.multi_reduction <maximumf>, %100, %cst_52 [1] : vector<8x1024xf32> to vector<8xf32>
    %103 = vector.shape_cast %102 : vector<8xf32> to vector<8x1xf32>
    %104 = arith.maximumf %101, %103 : vector<8x1xf32>
    %c0_53 = arith.constant 0 : index
    %c0_54 = arith.constant 0 : index
    %105 = vector.load %arg11[%c0_53, %c0_54] : memref<8x1xf32, #tpu.memory_space<vmem>>, vector<8x1xf32>
    %106 = arith.subf %101, %104 : vector<8x1xf32>
    %107 = math.exp %106 : vector<8x1xf32>
    %108 = arith.mulf %105, %107 : vector<8x1xf32>
    %109 = vector.broadcast %104 : vector<8x1xf32> to vector<8x1024xf32>
    %110 = arith.subf %100, %109 : vector<8x1024xf32>
    %111 = math.exp %110 : vector<8x1024xf32>
    %cst_55 = arith.constant dense<0.000000e+00> : vector<8xf32>
    %112 = vector.multi_reduction <add>, %111, %cst_55 [1] : vector<8x1024xf32> to vector<8xf32>
    %113 = vector.shape_cast %112 : vector<8xf32> to vector<8x1xf32>
    %114 = arith.addf %108, %113 : vector<8x1xf32>
    %c0_56 = arith.constant 0 : index
    %c0_57 = arith.constant 0 : index
    %115 = vector.load %arg11[%c0_56, %c0_57] : memref<8x1xf32, #tpu.memory_space<vmem>>, vector<8x1xf32>
    tpu.vector_store %arg11[%c0_56, %c0_57], %114 {strides = array<i32>} : memref<8x1xf32, #tpu.memory_space<vmem>>, vector<8x1xf32>,
    %c0_58 = arith.constant 0 : index
    %c0_59 = arith.constant 0 : index
    %116 = vector.load %arg10[%c0_58, %c0_59] : memref<8x1xf32, #tpu.memory_space<vmem>>, vector<8x1xf32>
    tpu.vector_store %arg10[%c0_58, %c0_59], %104 {strides = array<i32>} : memref<8x1xf32, #tpu.memory_space<vmem>>, vector<8x1xf32>,
    %117 = arith.addi %4, %93 : i32
    %118 = tpu.assume_multiple %117, 1024 : i32
    %c0_60 = arith.constant 0 : index
    %119 = arith.index_cast %118 : i32 to index
    %120 = vector.load %arg7[%c0_60, %119] : memref<8x8192xf32, #tpu.memory_space<vmem>>, vector<8x1024xf32>
    tpu.vector_store %arg7[%c0_60, %119], %100 {strides = array<i32>} : memref<8x8192xf32, #tpu.memory_space<vmem>>, vector<8x1024xf32>,
    %c4_i32 = arith.constant 4 : i32
    %c1_i32_61 = arith.constant 1 : i32
    %121 = arith.cmpi eq, %arg1, %c1_i32_61 : i32
    %122 = arith.extui %121 : i1 to i32
    %c0_i32_62 = arith.constant 0 : i32
    %123 = arith.cmpi ne, %122, %c0_i32_62 : i32
    scf.if %123 {
      %c0_63 = arith.constant 0 : index
      %c0_64 = arith.constant 0 : index
      %124 = vector.load %arg10[%c0_63, %c0_64] : memref<8x1xf32, #tpu.memory_space<vmem>>, vector<8x1xf32>
      %c0_65 = arith.constant 0 : index
      %c0_66 = arith.constant 0 : index
      %125 = vector.load %arg11[%c0_65, %c0_66] : memref<8x1xf32, #tpu.memory_space<vmem>>, vector<8x1xf32>
      %126 = math.log %125 : vector<8x1xf32>
      %127 = arith.addf %124, %126 : vector<8x1xf32>
      %128 = vector.shape_cast %127 : vector<8x1xf32> to vector<8x1xf32>
      %129 = vector.broadcast %128 : vector<8x1xf32> to vector<8x128xf32>
      %c0_67 = arith.constant 0 : index
      %c0_68 = arith.constant 0 : index
      %130 = vector.load %arg8[%c0_67, %c0_68] : memref<8x128xf32, #tpu.memory_space<vmem>>, vector<8x128xf32>
      tpu.vector_store %arg8[%c0_67, %c0_68], %129 {strides = array<i32>} : memref<8x128xf32, #tpu.memory_space<vmem>>, vector<8x128xf32>,
      %c0_69 = arith.constant 0 : index
      %c0_70 = arith.constant 0 : index
      %131 = vector.load %arg7[%c0_69, %c0_70] : memref<8x8192xf32, #tpu.memory_space<vmem>>, vector<8x8192xf32>
      %132 = vector.broadcast %127 : vector<8x1xf32> to vector<8x8192xf32>
      %133 = arith.subf %131, %132 : vector<8x8192xf32>
      %c0_71 = arith.constant 0 : index
      %c0_72 = arith.constant 0 : index
      %134 = vector.load %arg7[%c0_71, %c0_72] : memref<8x8192xf32, #tpu.memory_space<vmem>>, vector<8x8192xf32>
      tpu.vector_store %arg7[%c0_71, %c0_72], %133 {strides = array<i32>} : memref<8x8192xf32, #tpu.memory_space<vmem>>, vector<8x8192xf32>,
    } else {
    }
    return
  }
  func.func @transform_0(%arg0: i32, %arg1: i32) -> (i32, i32) {
    %c0_i32 = arith.constant 0 : i32
    %c0_i32_0 = arith.constant 0 : i32
    %c0_i32_1 = arith.constant 0 : i32
    return %c0_i32, %c0_i32_0 : i32, i32
  }
  func.func @transform_1(%arg0: i32, %arg1: i32) -> (i32, i32) {
    %c0_i32 = arith.constant 0 : i32
    %c0_i32_0 = arith.constant 0 : i32
    %c0_i32_1 = arith.constant 0 : i32
    return %c0_i32, %c0_i32_0 : i32, i32
  }
  func.func @transform_2(%arg0: i32, %arg1: i32) -> (i32, i32) {
    %c0_i32 = arith.constant 0 : i32
    %c0_i32_0 = arith.constant 0 : i32
    %c0_i32_1 = arith.constant 0 : i32
    return %c0_i32, %c0_i32_0 : i32, i32
  }
  func.func @transform_3(%arg0: i32, %arg1: i32) -> (i32, i32) {
    %c2_i32 = arith.constant 2 : i32
    %0 = arith.muli %arg0, %c2_i32 : i32
    %1 = arith.addi %0, %arg1 : i32
    %c0_i32 = arith.constant 0 : i32
    %c0_i32_0 = arith.constant 0 : i32
    return %c0_i32, %1 : i32, i32
  }
  func.func @transform_4(%arg0: i32, %arg1: i32) -> (i32, i32) {
    %c2_i32 = arith.constant 2 : i32
    %0 = arith.muli %arg0, %c2_i32 : i32
    %1 = arith.addi %0, %arg1 : i32
    %c0_i32 = arith.constant 0 : i32
    %c0_i32_0 = arith.constant 0 : i32
    return %c0_i32, %1 : i32, i32
  }
  func.func @transform_5(%arg0: i32, %arg1: i32) -> (i32, i32) {
    %c0_i32 = arith.constant 0 : i32
    %c0_i32_0 = arith.constant 0 : i32
    return %c0_i32, %arg0 : i32, i32
  }
  func.func @transform_6(%arg0: i32, %arg1: i32) -> (i32, i32) {
    %c0_i32 = arith.constant 0 : i32
    %c0_i32_0 = arith.constant 0 : i32
    return %c0_i32, %arg0 : i32, i32
  }
}

</mosaic_0001>

<bundles_post_ra>
// kernel: tpu_custom_call.1
= control target key start
LH: loop header
LB: loop body
LE: loop exit
PB: predicated region body
PF: predicated region fallthrough
CT: control target
= control target key end

     0   :  { %s5694_s0 = inlined_call_operand.hbm [shape: f32[8,128], index: 0, kind: input, shape index: {}]   ;;  %s5695_s1 = inlined_call_operand.hbm [shape: f32[128,128], index: 1, kind: input, shape index: {}]   ;;  %s5696_s2 = inlined_call_operand.hbm [shape: f32[1,128], index: 2, kind: input, shape index: {}]   ;;  %s5697_s3 = inlined_call_operand.hbm [shape: bf16[128,8192], index: 3, kind: input, shape index: {}]   ;;  %s5698_s4 = inlined_call_operand.hbm [shape: f32[1,8192], index: 4, kind: input, shape index: {}]   ;;  %s5699_s5 = inlined_call_operand.hbm [shape: f32[8,8192], index: 5, kind: output, shape index: {0}]   ;;  %s5700_s6 = inlined_call_operand.hbm [shape: f32[8,128], index: 6, kind: output, shape index: {1}]  }
   0x1   :  { %5713 = sst [smem:[#allocation25_spill]] %s5695_s1 }
   0x2   :  { %5714 = sst [smem:[#allocation26_spill]] %s5697_s3 }
   0x3   :  { %5715 = sst [smem:[#allocation27_spill]] %s5700_s6 }
   0x4   :  { %12 = vsyncpa [#allocation6], 0 }
   0x5   :  { %13 = vsyncpa [#allocation9], 0 }
   0x6   :  { %14 = vsyncpa [#allocation12], 0 }
   0x7   :  { %16 = vsyncpa [#allocation12 + $0x1], 0 }
   0x8   :  { %17 = vsyncpa [#allocation7], 0 }
   0x9   :  { %18 = vsyncpa [#allocation16], 0  ;;  %s4564_s21 = smov 0   ;;  %s4566_s22 = smov 0  }
   0xa   :  { %s4568_s23 = smov 0   ;;  %s4570_s24 = smov 0  }
   0xb   :  { %s4572_s25 = smov 0   ;;  %s4574_s26 = smov 0  }
   0xc LB: > { %5716 = sst [smem:[#allocation22_spill]] %s4510_s26  ;;  %s4593_s27 = sadd.s32 4294967295, %s4510_s26   ;;  %s4510_s26 = sphi %s4574_s26, %s24_s26   ;;  %s4506_s25 = sphi %s4572_s25, %s5747_s25   ;;  %s4502_s24 = sphi %s4570_s24, %s5746_s24   ;;  %s4498_s23 = sphi %s4568_s23, %s5745_s23   ;;  %s4494_s22 = sphi %s4566_s22, %s5744_s22   ;;  %s4490_s21 = sphi %s4564_s21, %s5743_s21  }
   0xd   : > { %p117_p0 = scmp.ne.s32.totalorder %s4498_s23, %s4494_s22  ;;  %p118_p1 = scmp.eq.s32.totalorder %s4510_s26, 0 }
   0xe   : > { %p123_p2 = scmp.ne.s32.totalorder %s4494_s22, %s4490_s21  ;;  %p5701_p3 = scmp.eq.s32.totalorder %s4593_s27, 0 }
   0xf   : > { %p119_p4 = por %p118_p1, %p117_p0  ;;  %p3495_p5 = scmp.ge.s32.totalorder %s4510_s26, 1 }
  0x10   : > { %p4604_p6 = por %p5701_p3, %p123_p2  ;;  %p216_p7 = scmp.lt.s32.totalorder %s4510_s26, 3 }
  0x11   : > { %s4512_s7 = smov [#allocation8]   ;;  %p4099_p10 = scmp.lt.s32.totalorder %s4510_s26, 2 }
  0x12   : > { %s5717_s29 = scalar_select %p4604_p6, 1, 0 }
  0x13   : > { %p4609_p8 = pnand %p3495_p5, %p216_p7  ;;  %s239_s8 = sshll.u32 %s4512_s7, 4  ;;  %s240_s8 = int_to_ptr.vmem [resolvable:$true] %s239_s8 }
  0x14   : > { %p4622_p12 = pnand %p4099_p10, %p119_p4  ;;  %s33_s11 = sadd.s32 1, %s4506_s25 }
  0x15   : > { %s5718_s30 = scalar_select %p4609_p8, 1, 0 }
  0x16   : > { %p4079_p9 = pneg %p4609_p8  ;;  %s5721_s1 = sld [smem:[#allocation25_spill]] }
  0x17   : > { %s5720_s10 = scalar_select %p4622_p12, 1, 0 }
  0x18   : > { %p4618_p11 = pnand %p4079_p9, %p5701_p3 }
  0x1a   : > { %s5719_s9 = scalar_select %p4618_p11, 1, 0 }
  0x1b   : > { %p4635_p0 = pneg %p4618_p11 }
  0x1c   : > { %s4248_s14 = scalar_lea.hbm %s5721_s1, 2048 }
  0x1d   : > { %p4249_p13 = scmp.ne.s32.totalorder %s5721_s1, %s4248_s14  ;;  %p4255_p4 = scmp.lt.u32.totalorder %s4248_s14, %s5721_s1 }
  0x1f   : > { %p4251_p1 = pnand %p4635_p0, %p4249_p13 }
  0x21   : > { %p4252_p2 = pneg %p4251_p1 }
  0x23   : > { %p4257_p5 = pnand %p4255_p4, %p4252_p2 }
  0x25   : > { %4260 = shalt.err (!%p4257_p5)
}
  0x26   : > { %s4261_s20 = scalar_lea.vmem %s240_s8, 2048  ;;  %p4269_p3 = scmp.lt.s32.totalorder %s240_s8, %s240_s8 }
  0x27   : > { %p4262_p7 = scmp.ne.s32.totalorder %s240_s8, %s4261_s20  ;;  %p4270_p6 = scmp.lt.s32.totalorder %s4261_s20, %s4261_s20 }
  0x29   : > { %p4264_p9 = pnand %p4262_p7, %p4635_p0  ;;  %p4271_p8 = por %p4270_p6, %p4269_p3 }
  0x2b   : > { %p4265_p10 = pneg %p4264_p9 }
  0x2d   : > { %p4272_p12 = pnand %p4271_p8, %p4265_p10 }
  0x2f   : > { %4275 = shalt.err (!%p4272_p12)
}
  0x30   : > { %s4513_s21 = smov 128   ;;  %s4514_s7 = smov 8  }
  0x31   : > { %4085 = dma.hbm_to_vmem [thread:$0]  (!%p4618_p11), %s5721_s1, 2048, %s240_s8, [#allocation9], %s4513_s21, %s4513_s21, %s4514_s7  }
  0x32   : > { %p34_p3 = scmp.ge.s32.totalorder %s33_s11, 2  ;;  %s264_s14 = sand.u32 1, %s4510_s26  }
  0x33   : > { %s5706_s15 = sand.u32 1, %s4498_s23   ;;  %s3977_s19 = sshll.u32 %s4506_s25, 11 }
  0x34   : > { %s5749_s11 = smov (%p34_p3, %s33_s11), 0  ;;  %s3500_s16 = sshll.u32 %s5706_s15, 11 }
  0x35   : > { %5723 = sst [smem:[#allocation23_spill]] %s5749_s11  ;;  %s107_s18 = ssub.s32 %s4506_s25, %s5749_s11 }
  0x36   : > { %p108_p6 = scmp.eq.s32.totalorder %s107_s18, 0  ;;  %s5724_s3 = sld [smem:[#allocation26_spill]] }
  0x37   : > { %s268_s8 = scalar_lea.vmem [#allocation11], %s3500_s16  ;;  %s5725_s12 = sadd.s32 1, %s4498_s23 }
  0x38   : > { %s277_s7 = sshll.u32 %s268_s8, 4  ;;  %s4674_s15 = scalar_lea.sflag [#allocation12], %s264_s14  ;;  %s4672_s7 = int_to_ptr.vmem [resolvable:$true] %s277_s7 }
  0x39   : > { %s4670_s13 = scalar_select %p108_p6, %s4498_s23, %s5725_s12  }
  0x3a   : > { %p5727_p12 = scmp.ne.s32.totalorder %s5720_s10, 0 }
  0x3b   : > { %5726 = sst [smem:[#allocation24_spill]] %s4670_s13 }
  0x3c   : > { %s4665_s6 = scalar_lea.hbm %s5724_s3, %s3977_s19  ;;  %p5711_p13 = pneg %p5727_p12 }
  0x3d   : > { %s4276_s18 = scalar_lea.hbm %s4665_s6, 32768  ;;  %s4281_s16 = scalar_lea.hbm %s5724_s3, 65536 }
  0x3e   : > { %p4277_p8 = scmp.ne.s32.totalorder %s4665_s6, %s4276_s18  ;;  %p4282_p4 = scmp.lt.u32.totalorder %s4665_s6, %s5724_s3 }
  0x3f   : > { %p4283_p5 = scmp.lt.u32.totalorder %s4281_s16, %s4276_s18  ;;  %p4285_p9 = scmp.lt.u32.totalorder %s4276_s18, %s4665_s6 }
  0x40   : > { %p4279_p1 = pnand %p5711_p13, %p4277_p8 }
  0x41   : > { %p4284_p7 = por %p4283_p5, %p4282_p4 }
  0x42   : > { %p4280_p2 = pneg %p4279_p1 }
  0x43   : > { %p4286_p10 = por %p4285_p9, %p4284_p7 }
  0x45   : > { %p4287_p3 = pnand %p4286_p10, %p4280_p2 }
  0x47   : > { %4290 = shalt.err (!%p4287_p3)
}
  0x48   : > { %s4291_s14 = scalar_lea.vmem %s4672_s7, 32768  ;;  %s4515_s12 = smov [#allocation11]  }
  0x49   : > { %p4292_p6 = scmp.ne.s32.totalorder %s4672_s7, %s4291_s14  ;;  %s4296_s28 = sshll.u32 %s4515_s12, 4  ;;  %s4297_s28 = int_to_ptr.vmem [resolvable:$false] %s4296_s28 }
  0x4a   : > { %s4298_s19 = scalar_lea.vmem %s4297_s28, 65536  ;;  %p4299_p11 = scmp.lt.s32.totalorder %s4672_s7, %s4297_s28 }
  0x4b   : > { %p4294_p8 = pnand %p4292_p6, %p5711_p13  ;;  %p4300_p4 = scmp.lt.s32.totalorder %s4298_s19, %s4291_s14 }
  0x4d   : > { %p4295_p1 = pneg %p4294_p8  ;;  %p4301_p5 = por %p4300_p4, %p4299_p11 }
  0x4f   : > { %p4302_p7 = pnand %p4301_p5, %p4295_p1 }
  0x51   : > { %4305 = shalt.err (!%p4302_p7)
}
  0x52   : > { %s4516_s18 = smov 4096   ;;  %s4517_s16 = smov 2048  }
  0x53   : > { %4092 = dma.hbm_to_vmem [thread:$0]  (!%p5727_p12), %s4665_s6, 32768, %s4672_s7, %s4674_s15, %s4516_s18, %s4517_s16, %s4513_s21  }
  0x54   : > { %s4518_s20 = smov [#allocation5]   ;;  %s4519_s12 = smov [#allocation10]  }
  0x55   : > { %s229_s8 = sshll.u32 %s4518_s20, 4  ;;  %s253_s1 = sshll.u32 %s4519_s12, 4  ;;  %s230_s8 = int_to_ptr.vmem [resolvable:$true] %s229_s8  ;;  %s254_s1 = int_to_ptr.vmem [resolvable:$true] %s253_s1 }
  0x56   : > { %s4306_s19 = scalar_lea.hbm %s5694_s0, 128 }
  0x57   : > { %p4307_p11 = scmp.ne.s32.totalorder %s5694_s0, %s4306_s19  ;;  %p4313_p10 = scmp.lt.u32.totalorder %s4306_s19, %s5694_s0 }
  0x59   : > { %p4309_p2 = pnand %p4307_p11, %p4635_p0 }
  0x5b   : > { %p4310_p9 = pneg %p4309_p2 }
  0x5d   : > { %p4315_p3 = pnand %p4313_p10, %p4310_p9 }
  0x5f   : > { %4318 = shalt.err (!%p4315_p3)
}
  0x60   : > { %s4319_s6 = scalar_lea.vmem %s230_s8, 128  ;;  %p4327_p4 = scmp.lt.s32.totalorder %s230_s8, %s230_s8 }
  0x61   : > { %p4320_p6 = scmp.ne.s32.totalorder %s230_s8, %s4319_s6  ;;  %p4328_p5 = scmp.lt.s32.totalorder %s4319_s6, %s4319_s6 }
  0x63   : > { %p4322_p8 = pnand %p4320_p6, %p4635_p0  ;;  %p4329_p7 = por %p4328_p5, %p4327_p4 }
  0x65   : > { %p4323_p1 = pneg %p4322_p8 }
  0x67   : > { %p4330_p13 = pnand %p4329_p7, %p4323_p1 }
  0x69   : > { %4333 = shalt.err (!%p4330_p13)
}
  0x6a   : > { %p5728_p11 = scmp.ne.s32.totalorder %s5719_s9, 0  ;;  %s5729_s26 = sand.u32 1, %s4498_s23  }
  0x6b   : > { %s3503_s21 = sshll.u32 %s5729_s26, 5  ;;  %s4334_s18 = scalar_lea.hbm %s5696_s2, 16 }
  0x6c   : > { %4082 = dma.hbm_to_vmem [thread:$0]  (!%p5728_p11), %s5694_s0, 128, %s230_s8, [#allocation6]  }
  0x6d   : > { %p4335_p2 = scmp.ne.s32.totalorder %s5696_s2, %s4334_s18  ;;  %p4341_p10 = scmp.lt.u32.totalorder %s4334_s18, %s5696_s2 }
  0x6f   : > { %p4337_p13 = pnand %p4335_p2, %p4635_p0 }
  0x71   : > { %p4338_p9 = pneg %p4337_p13 }
  0x73   : > { %p4343_p3 = pnand %p4341_p10, %p4338_p9 }
  0x75   : > { %4346 = shalt.err (!%p4343_p3)
}
  0x76   : > { %s4347_s8 = scalar_lea.vmem %s254_s1, 16  ;;  %s4354_s14 = scalar_lea.vmem %s254_s1, 32 }
  0x77   : > { %p4348_p6 = scmp.ne.s32.totalorder %s254_s1, %s4347_s8  ;;  %p4355_p4 = scmp.lt.s32.totalorder %s254_s1, %s254_s1 }
  0x78   : > { %p4356_p5 = scmp.lt.s32.totalorder %s4354_s14, %s4347_s8 }
  0x79   : > { %p4350_p8 = pnand %p4348_p6, %p4635_p0 }
  0x7a   : > { %p4357_p7 = por %p4356_p5, %p4355_p4 }
  0x7b   : > { %p4351_p1 = pneg %p4350_p8 }
  0x7d   : > { %p4358_p12 = pnand %p4357_p7, %p4351_p1 }
  0x7f   : > { %4361 = shalt.err (!%p4358_p12)
}
  0x80   : > { %4088 = dma.hbm_to_vmem [thread:$0]  (!%p5728_p11), %s5696_s2, 16, %s254_s1, [#allocation9]  }
  0x81   : > { %s3978_s3 = sshll.u32 %s4506_s25, 9  ;;  %s291_s7 = scalar_lea.vmem [#allocation13], %s3503_s21 }
  0x82   : > { %s4745_s17 = scalar_lea.hbm %s5698_s4, %s3978_s3  ;;  %s301_s13 = sshll.u32 %s291_s7, 4  ;;  %s302_s13 = int_to_ptr.vmem [resolvable:$true] %s301_s13 }
  0x83   : > { %s4362_s9 = scalar_lea.hbm %s4745_s17, 512  ;;  %p5730_p12 = scmp.ne.s32.totalorder %s5720_s10, 0 }
  0x84   : > { %p4363_p0 = scmp.ne.s32.totalorder %s4745_s17, %s4362_s9  ;;  %s4367_s16 = scalar_lea.hbm %s5698_s4, 1024 }
  0x85   : > { %p5731_p2 = pneg %p5730_p12  ;;  %p4368_p11 = scmp.lt.u32.totalorder %s4745_s17, %s5698_s4 }
  0x86   : > { %p4369_p10 = scmp.lt.u32.totalorder %s4367_s16, %s4362_s9  ;;  %p4371_p6 = scmp.lt.u32.totalorder %s4362_s9, %s4745_s17 }
  0x87   : > { %p4365_p13 = pnand %p4363_p0, %p5731_p2 }
  0x88   : > { %p4370_p3 = por %p4369_p10, %p4368_p11 }
  0x89   : > { %p4366_p9 = pneg %p4365_p13 }
  0x8a   : > { %p4372_p8 = por %p4371_p6, %p4370_p3 }
  0x8c   : > { %p4373_p1 = pnand %p4372_p8, %p4366_p9 }
  0x8e   : > { %4376 = shalt.err (!%p4373_p1)
}
  0x8f   : > { %s4377_s21 = scalar_lea.vmem %s302_s13, 512  ;;  %p5732_p5 = pmov %p5731_p2 }
  0x90   : > { %p4378_p4 = scmp.ne.s32.totalorder %s302_s13, %s4377_s21  ;;  %s4520_s28 = smov [#allocation13]  }
  0x91   : > { %s4382_s8 = sshll.u32 %s4520_s28, 4  ;;  %s4383_s8 = int_to_ptr.vmem [resolvable:$false] %s4382_s8 }
  0x92   : > { %p4380_p7 = pnand %p4378_p4, %p5732_p5  ;;  %s4384_s14 = scalar_lea.vmem %s4383_s8, 1024 }
  0x93   : > { %p4385_p2 = scmp.lt.s32.totalorder %s302_s13, %s4383_s8  ;;  %p4386_p13 = scmp.lt.s32.totalorder %s4384_s14, %s4377_s21 }
  0x94   : > { %p4381_p0 = pneg %p4380_p7 }
  0x95   : > { %p4387_p10 = por %p4386_p13, %p4385_p2 }
  0x97   : > { %p4388_p11 = pnand %p4387_p10, %p4381_p0 }
  0x99   : > { %4391 = shalt.err (!%p4388_p11)
}
  0x9a   : > { %4095 = dma.hbm_to_vmem [thread:$0]  (!%p5730_p12), %s4745_s17, 512, %s302_s13, %s4674_s15  }
  0x9b   : > { %p5733_p9 = scmp.ne.s32.totalorder %s5718_s30, 0 }
  0x9c   : > { %p5734_p3 = scmp.eq.s32.totalorder (!%p5733_p9), %s4593_s27, 0 }
  0x9d   : > { %310 = sbr.rel (%p5733_p9) target bundleno = 1594 (0x63a), region = 40 }
  0xa4   : > { %4469 = dma.done.wait (%p5734_p3), [#allocation6], 128   ;;  %p5735_p6 = pmov %p5734_p3 }
  0xa5   : > { %p5736_p8 = pmov %p5734_p3 }
  0xa6   : > { %4471 = vsyncadd (%p5735_p6), [#allocation6], 4294967168 }
  0xa7   : > { %4473 = dma.done.wait (%p5736_p8), [#allocation9], 2064   ;;  %p5737_p1 = pmov %p5734_p3 }
  0xa8   : > { %s324_s10 = sand.u32 1, %s4593_s27   ;;  %s326_s15 = sand.u32 1, %s4494_s22  }
  0xa9   : > { %4475 = vsyncadd (%p5737_p1), [#allocation9], 4294965232  ;;  %s3510_s19 = sshll.u32 %s326_s15, 11  ;;  %s325_s30 = scalar_lea.sflag [#allocation12], %s324_s10 }
  0xaa   : > { %s4779_s6 = scalar_lea.vmem [#allocation11], %s3510_s19  ;;  %p5738_p12 = scmp.ne.s32.totalorder %s5717_s29, 0 }
  0xac   : > { %4477 = dma.done.wait (%p5738_p12), %s325_s30, 33280  }
  0xad   : > { %4479 = vsyncadd (%p5738_p12), %s325_s30, 4294934016  ;;  %s3511_s3 = sshll.u32 %s326_s15, 5  ;;  %p3512_p4 = scmp.ne.s32.totalorder %s4502_s24, 0 }
  0xae   : > { %s4785_s11 = scalar_lea.vmem [#allocation13], %s3511_s3  ;;  %v379_v0 = vld [vmem:[#allocation8] sm:$0xff] (!%p3512_p4)  ;;  %v380_v1 = vld [vmem:[#allocation8 + $0x8] sm:$0xff] (!%p3512_p4)  ;;  %v381_v2 = vld [vmem:[#allocation8 + $0x10] sm:$0xff] (!%p3512_p4)  ;;  %v4521_v3 = vmov (!%p3512_p4), 0.0|0.0   ;;  %vm4522_vm0 = vmmov (!%p3512_p4), 0  }
  0xaf   : > { %377 = sbr.rel (%p3512_p4) target bundleno = 427 (0x1ab), region = 64  ;;  %4031 = vmatprep.subr.bf16.mxu0 (!%p3512_p4), %v4521_v3  ;;  %v4032_v4 = vpack.c.bf16 (!%p3512_p4), %v380_v1, %v379_v0  ;;  %v382_v5 = vld [vmem:[#allocation8 + $0x18] sm:$0xff] (!%p3512_p4)  ;;  %v4523_v6 = vmov (!%p3512_p4), 0.0   ;;  %vm475_vm1 = vcmask (!%p3512_p4), 7168   ;;  %v4524_v7 = vmov (!%p3512_p4), -inf   ;;  %v383_v9 = vld [vmem:[#allocation8 + $0x20] sm:$0xff] (!%p3512_p4) }
  0xb0   : > { %4028 = vmatprep.mubr.msk.f32.mxu0 (!%p3512_p4), %vm4522_vm0, %v4523_v6  ;;  %476 = vst.msk [vmem:[#allocation3] sm:$0xff] (!%p3512_p4), %vm475_vm1, %v4524_v7  ;;  %477 = vst.msk [vmem:[#allocation4] sm:$0xff] (!%p3512_p4), %vm475_vm1, %v4523_v6  ;;  %v4035_v8 = vpack.c.bf16 (!%p3512_p4), %v382_v5, %v381_v2  ;;  %v384_v10 = vld [vmem:[#allocation8 + $0x28] sm:$0xff] (!%p3512_p4)  ;;  %v385_v12 = vld [vmem:[#allocation8 + $0x30] sm:$0xff] (!%p3512_p4) }
  0xb1   : > { %4033 = vmatpush3.bf16.msra.mxu0 (!%p3512_p4), %v4032_v4  ;;  %v4038_v11 = vpack.c.bf16 (!%p3512_p4), %v384_v10, %v383_v9  ;;  %v386_v13 = vld [vmem:[#allocation8 + $0x38] sm:$0xff] (!%p3512_p4)  ;;  %v387_v15 = vld [vmem:[#allocation8 + $0x40] sm:$0xff] (!%p3512_p4)  ;;  %v388_v16 = vld [vmem:[#allocation8 + $0x48] sm:$0xff] (!%p3512_p4) }
  0xb2   : > { %4034 = vmatprep.subr.bf16.mxu0 (!%p3512_p4), %v4521_v3  ;;  %v4041_v14 = vpack.c.bf16 (!%p3512_p4), %v386_v13, %v385_v12  ;;  %v4044_v17 = vpack.c.bf16 (!%p3512_p4), %v388_v16, %v387_v15  ;;  %v389_v18 = vld [vmem:[#allocation8 + $0x50] sm:$0xff] (!%p3512_p4)  ;;  %v390_v19 = vld [vmem:[#allocation8 + $0x58] sm:$0xff] (!%p3512_p4)  ;;  %v391_v21 = vld [vmem:[#allocation8 + $0x60] sm:$0xff] (!%p3512_p4) }
  0xb3   : > { %v4047_v20 = vpack.c.bf16 (!%p3512_p4), %v390_v19, %v389_v18  ;;  %v392_v22 = vld [vmem:[#allocation8 + $0x68] sm:$0xff] (!%p3512_p4)  ;;  %v393_v24 = vld [vmem:[#allocation8 + $0x70] sm:$0xff] (!%p3512_p4)  ;;  %v394_v25 = vld [vmem:[#allocation8 + $0x78] sm:$0xff] (!%p3512_p4) }
  0xb4   : > { %v4050_v23 = vpack.c.bf16 (!%p3512_p4), %v392_v22, %v391_v21  ;;  %v4053_v26 = vpack.c.bf16 (!%p3512_p4), %v394_v25, %v393_v24  ;;  %v378_v27 = vld [vmem:[#allocation5] sm:$0xff] (!%p3512_p4)  ;;  %v3513_v28 = vld [vmem:[#allocation10] ss:$0 sm:$0xff] (!%p3512_p4) }
  0xb5   : > { %4036 = vmatpush3.bf16.msra.mxu0 (!%p3512_p4), %v4035_v8 }
  0xb6   : > { %4037 = vmatprep.subr.bf16.mxu0 %v4521_v3 }
  0xb9   : > { %4039 = vmatpush3.bf16.msra.mxu0 %v4038_v11 }
  0xba   : > { %4040 = vmatprep.subr.bf16.mxu0 %v4521_v3 }
  0xbd   : > { %4042 = vmatpush3.bf16.msra.mxu0 %v4041_v14 }
  0xbe   : > { %4043 = vmatprep.subr.bf16.mxu0 %v4521_v3 }
  0xc1   : > { %4045 = vmatpush3.bf16.msra.mxu0 %v4044_v17 }
  0xc2   : > { %4046 = vmatprep.subr.bf16.mxu0 %v4521_v3 }
  0xc5   : > { %4048 = vmatpush3.bf16.msra.mxu0 %v4047_v20 }
  0xc6   : > { %4049 = vmatprep.subr.bf16.mxu0 %v4521_v3 }
  0xc9   : > { %4051 = vmatpush3.bf16.msra.mxu0 %v4050_v23 }
  0xca   : > { %4052 = vmatprep.subr.bf16.mxu0 %v4521_v3 }
  0xcd   : > { %4054 = vmatpush3.bf16.msra.mxu0 %v4053_v26 }
  0xd0   : > { %4029 = vmatmul.mubr.f32.vlgmr.msra.gmra.mrb[0].mxu0 %v378_v27 }
 0x1a3   : > { %v468_v29 = vpop.f32.mrb[0].mxu0 }
 0x1a4   : > { %v469_v30 = vadd.f32 %v3513_v28, %v468_v29  ;;  %v4030_v31 = vpop.f32.mrb[1].mxu0 }
 0x1a6   : > { %v472_v32 = vmax.f32 %v469_v30, 0.0 }
 0x1a8   : > { %v473_v33 = vpack.c.bf16 %v472_v32, %v472_v32 }
 0x1aa   : > { %474 = vst [vmem:[#allocation2] sm:$0xf] %v473_v33 }
 0x1ab PF: > { %v480_v34 = vld [vmem:[%s4779_s6] sm:$0xff]  ;;  %v481_v36 = vld [vmem:[%s4779_s6 + $0x8] sm:$0xff]  ;;  %v4525_v42 = vmov 0   ;;  %v482_v33 = vld [vmem:[%s4779_s6 + $0x10] sm:$0xff]  ;;  %s5071_s29 = sshll.u32 %s4502_s24, 12  ;;  %vm1125_vm2 = vcmask 7168  }
 0x1ac   : > { %v484_v35 = vld [vmem:[%s4779_s6 + $0x80] sm:$0xff]  ;;  %v485_v38 = vld [vmem:[%s4779_s6 + $0x88] sm:$0xff]  ;;  %938 = vmatprep.mubr.bf16.mxu0 %v4525_v42  ;;  %979 = vmatprep.mubr.bf16.mxu1 %v4525_v42  ;;  %s1129_s26 = sshra.s32 %s5071_s29, 7  ;;  %s1790_s13 = sadd.s32 1024, %s5071_s29 }
 0x1ad   : > { %v3516_v37 = vcombine.high %v480_v34, %v484_v35  ;;  %v3515_v39 = vcombine.low %v480_v34, %v484_v35  ;;  %v488_v40 = vld [vmem:[%s4779_s6 + $0x100] sm:$0xff]  ;;  %v3518_v43 = vcombine.high %v481_v36, %v485_v38  ;;  %v3517_v44 = vcombine.low %v481_v36, %v485_v38  ;;  %v489_v46 = vld [vmem:[%s4779_s6 + $0x108] sm:$0xff]  ;;  %4170 = vset.pattern.permute.xlu0 %v4525_v42  ;;  %v486_v34 = vld [vmem:[%s4779_s6 + $0x90] sm:$0xff]  ;;  %s3579_s17 = sshll.u32 %s1129_s26, 3  ;;  %s1791_s9 = sshra.s32 %s1790_s13, 7 }
 0x1ae   : > { %v492_v41 = vld [vmem:[%s4779_s6 + $0x180] sm:$0xff]  ;;  %v493_v47 = vld [vmem:[%s4779_s6 + $0x188] sm:$0xff]  ;;  %4171 = vset.pattern.permute.xlu1 %v4525_v42  ;;  %v483_v35 = vld [vmem:[%s4779_s6 + $0x18] sm:$0xff]  ;;  %s5115_s7 = scalar_lea.vmem [#allocation14], %s3579_s17  ;;  %s3709_s1 = sshll.u32 %s1791_s9, 3 }
 0x1af   : > { %v3524_v45 = vcombine.high %v488_v40, %v492_v41  ;;  %v496_v48 = vld [vmem:[%s4779_s6 + $0x200] sm:$0xff]  ;;  %906 = vmatprep.subr.bf16.mxu0 %v3516_v37  ;;  %v3526_v49 = vcombine.high %v489_v46, %v493_v47  ;;  %v497_v51 = vld [vmem:[%s4779_s6 + $0x208] sm:$0xff]  ;;  %947 = vmatprep.subr.bf16.mxu1 %v3518_v43  ;;  %v3523_v53 = vcombine.low %v488_v40, %v492_v41  ;;  %v487_v36 = vld [vmem:[%s4779_s6 + $0x98] sm:$0xff]  ;;  %s5185_s18 = scalar_lea.vmem [#allocation14], %s3709_s1  ;;  %s2452_s16 = sadd.s32 2048, %s5071_s29 }
 0x1b0   : > { %v500_v50 = vld [vmem:[%s4779_s6 + $0x280] sm:$0xff]  ;;  %v501_v52 = vld [vmem:[%s4779_s6 + $0x288] sm:$0xff]  ;;  %907 = vmatpush1.bf16.msra.mxu0 %v3515_v39  ;;  %948 = vmatpush1.bf16.msra.mxu1 %v3517_v44  ;;  %v3525_v54 = vcombine.low %v489_v46, %v493_v47  ;;  %v3520_v39 = vcombine.high %v482_v33, %v486_v34  ;;  %v3522_v40 = vcombine.high %v483_v35, %v487_v36  ;;  %v490_v41 = vld [vmem:[%s4779_s6 + $0x110] sm:$0xff]  ;;  %s2453_s20 = sshra.s32 %s2452_s16, 7  ;;  %s3114_s28 = sadd.s32 3072, %s5071_s29 }
 0x1b1   : > { %908 = vmatprep.subr.bf16.mxu0 %v3524_v45  ;;  %v3532_v55 = vcombine.high %v496_v48, %v500_v50  ;;  %949 = vmatprep.subr.bf16.mxu1 %v3526_v49  ;;  %v3534_v56 = vcombine.high %v497_v51, %v501_v52  ;;  %v504_v57 = vld [vmem:[%s4779_s6 + $0x300] sm:$0xff]  ;;  %v505_v59 = vld [vmem:[%s4779_s6 + $0x308] sm:$0xff]  ;;  %v3531_v61 = vcombine.low %v496_v48, %v500_v50  ;;  %v494_v43 = vld [vmem:[%s4779_s6 + $0x190] sm:$0xff]  ;;  %s3839_s12 = sshll.u32 %s2453_s20, 3  ;;  %s3115_s8 = sshra.s32 %s3114_s28, 7 }
 0x1b2   : > { %v508_v58 = vld [vmem:[%s4779_s6 + $0x380] sm:$0xff]  ;;  %v509_v60 = vld [vmem:[%s4779_s6 + $0x388] sm:$0xff]  ;;  %v3533_v62 = vcombine.low %v497_v51, %v501_v52  ;;  %v491_v44 = vld [vmem:[%s4779_s6 + $0x118] sm:$0xff]  ;;  %v3519_v47 = vcombine.low %v482_v33, %v486_v34  ;;  %v3521_v48 = vcombine.low %v483_v35, %v487_v36  ;;  %v3528_v49 = vcombine.high %v490_v41, %v494_v43  ;;  %s5237_s21 = scalar_lea.vmem [#allocation14], %s3839_s12  ;;  %s3969_s14 = sshll.u32 %s3115_s8, 3 }
 0x1b3   : > { %v3540_v63 = vcombine.high %v504_v57, %v508_v58  ;;  %v3542_v0 = vcombine.high %v505_v59, %v509_v60  ;;  %v512_v1 = vld [vmem:[%s4779_s6 + $0x400] sm:$0xff]  ;;  %v513_v3 = vld [vmem:[%s4779_s6 + $0x408] sm:$0xff]  ;;  %v3539_v5 = vcombine.low %v504_v57, %v508_v58  ;;  %v3541_v6 = vcombine.low %v505_v59, %v509_v60  ;;  %v495_v45 = vld [vmem:[%s4779_s6 + $0x198] sm:$0xff]  ;;  %s5299_s10 = scalar_lea.vmem [#allocation14], %s3969_s14  ;;  %p3970_p5 = scmp.ne.s32.totalorder %s4502_s24, 1 }
 0x1b4   : > { %909 = vmatpush1.bf16.msra.mxu0 %v3523_v53  ;;  %950 = vmatpush1.bf16.msra.mxu1 %v3525_v54  ;;  %v516_v2 = vld [vmem:[%s4779_s6 + $0x480] sm:$0xff]  ;;  %v517_v4 = vld [vmem:[%s4779_s6 + $0x488] sm:$0xff]  ;;  %v3530_v50 = vcombine.high %v491_v44, %v495_v45  ;;  %v498_v51 = vld [vmem:[%s4779_s6 + $0x210] sm:$0xff] }
 0x1b5   : > { %910 = vmatprep.subr.bf16.mxu0 %v3532_v55  ;;  %951 = vmatprep.subr.bf16.mxu1 %v3534_v56  ;;  %v3548_v7 = vcombine.high %v512_v1, %v516_v2  ;;  %v3550_v8 = vcombine.high %v513_v3, %v517_v4  ;;  %v520_v9 = vld [vmem:[%s4779_s6 + $0x500] sm:$0xff]  ;;  %v521_v11 = vld [vmem:[%s4779_s6 + $0x508] sm:$0xff]  ;;  %v3547_v13 = vcombine.low %v512_v1, %v516_v2  ;;  %v502_v52 = vld [vmem:[%s4779_s6 + $0x290] sm:$0xff] }
 0x1b6   : > { %v524_v10 = vld [vmem:[%s4779_s6 + $0x580] sm:$0xff]  ;;  %v525_v12 = vld [vmem:[%s4779_s6 + $0x588] sm:$0xff]  ;;  %v3549_v14 = vcombine.low %v513_v3, %v517_v4  ;;  %v499_v53 = vld [vmem:[%s4779_s6 + $0x218] sm:$0xff]  ;;  %v3527_v55 = vcombine.low %v490_v41, %v494_v43  ;;  %v3529_v56 = vcombine.low %v491_v44, %v495_v45  ;;  %v3536_v57 = vcombine.high %v498_v51, %v502_v52 }
 0x1b7   : > { %v3556_v15 = vcombine.high %v520_v9, %v524_v10  ;;  %v3558_v16 = vcombine.high %v521_v11, %v525_v12  ;;  %v528_v17 = vld [vmem:[%s4779_s6 + $0x600] sm:$0xff]  ;;  %v529_v19 = vld [vmem:[%s4779_s6 + $0x608] sm:$0xff]  ;;  %v3555_v21 = vcombine.low %v520_v9, %v524_v10  ;;  %v3557_v22 = vcombine.low %v521_v11, %v525_v12  ;;  %v503_v54 = vld [vmem:[%s4779_s6 + $0x298] sm:$0xff] }
 0x1b8   : > { %911 = vmatpush1.bf16.msra.mxu0 %v3531_v61  ;;  %952 = vmatpush1.bf16.msra.mxu1 %v3533_v62  ;;  %v532_v18 = vld [vmem:[%s4779_s6 + $0x680] sm:$0xff]  ;;  %v533_v20 = vld [vmem:[%s4779_s6 + $0x688] sm:$0xff]  ;;  %v3538_v58 = vcombine.high %v499_v53, %v503_v54  ;;  %v506_v59 = vld [vmem:[%s4779_s6 + $0x310] sm:$0xff] }
 0x1b9   : > { %912 = vmatprep.subr.bf16.mxu0 %v3540_v63  ;;  %953 = vmatprep.subr.bf16.mxu1 %v3542_v0  ;;  %v3564_v23 = vcombine.high %v528_v17, %v532_v18  ;;  %v3566_v24 = vcombine.high %v529_v19, %v533_v20  ;;  %v536_v25 = vld [vmem:[%s4779_s6 + $0x700] sm:$0xff]  ;;  %v537_v27 = vld [vmem:[%s4779_s6 + $0x708] sm:$0xff]  ;;  %v3563_v29 = vcombine.low %v528_v17, %v532_v18  ;;  %v510_v60 = vld [vmem:[%s4779_s6 + $0x390] sm:$0xff] }
 0x1ba   : > { %v540_v26 = vld [vmem:[%s4779_s6 + $0x780] sm:$0xff]  ;;  %v541_v28 = vld [vmem:[%s4779_s6 + $0x788] sm:$0xff]  ;;  %v3565_v30 = vcombine.low %v529_v19, %v533_v20  ;;  %v507_v61 = vld [vmem:[%s4779_s6 + $0x318] sm:$0xff]  ;;  %v3535_v63 = vcombine.low %v498_v51, %v502_v52  ;;  %v3537_v0 = vcombine.low %v499_v53, %v503_v54  ;;  %v3544_v1 = vcombine.high %v506_v59, %v510_v60 }
 0x1bb   : > { %v3572_v31 = vcombine.high %v536_v25, %v540_v26  ;;  %v3574_v32 = vcombine.high %v537_v27, %v541_v28  ;;  %v3571_v37 = vcombine.low %v536_v25, %v540_v26  ;;  %v3573_v38 = vcombine.low %v537_v27, %v541_v28  ;;  %v4832_v46 = vld [vmem:[#allocation2] sm:$0xf]  ;;  %v511_v62 = vld [vmem:[%s4779_s6 + $0x398] sm:$0xff]  ;;  %v514_v3 = vld [vmem:[%s4779_s6 + $0x410] sm:$0xff] }
 0x1bc   : > { %913 = vmatpush1.bf16.msra.mxu0 %v3539_v5  ;;  %954 = vmatpush1.bf16.msra.mxu1 %v3541_v6  ;;  %v3546_v2 = vcombine.high %v507_v61, %v511_v62  ;;  %v518_v4 = vld [vmem:[%s4779_s6 + $0x490] sm:$0xff]  ;;  %v515_v5 = vld [vmem:[%s4779_s6 + $0x418] sm:$0xff]  ;;  %v3580_v35 = vld [vmem:[%s4779_s6 + $0x20] sm:$0xff] }
 0x1bd   : > { %914 = vmatprep.subr.bf16.mxu0 %v3548_v7  ;;  %955 = vmatprep.subr.bf16.mxu1 %v3550_v8  ;;  %v519_v6 = vld [vmem:[%s4779_s6 + $0x498] sm:$0xff]  ;;  %v3543_v7 = vcombine.low %v506_v59, %v510_v60  ;;  %v3545_v8 = vcombine.low %v507_v61, %v511_v62  ;;  %v3552_v9 = vcombine.high %v514_v3, %v518_v4  ;;  %v522_v11 = vld [vmem:[%s4779_s6 + $0x510] sm:$0xff]  ;;  %v3584_v36 = vld [vmem:[%s4779_s6 + $0xa0] sm:$0xff] }
 0x1be   : > { %v3554_v10 = vcombine.high %v515_v5, %v519_v6  ;;  %v526_v12 = vld [vmem:[%s4779_s6 + $0x590] sm:$0xff]  ;;  %v3646_v41 = vcombine.high %v3580_v35, %v3584_v36  ;;  %v3588_v44 = vld [vmem:[%s4779_s6 + $0x120] sm:$0xff] }
 0x1bf   : > { %v3560_v17 = vcombine.high %v522_v11, %v526_v12  ;;  %v530_v19 = vld [vmem:[%s4779_s6 + $0x610] sm:$0xff]  ;;  %v3592_v45 = vld [vmem:[%s4779_s6 + $0x1a0] sm:$0xff] }
 0x1c0   : > { %915 = vmatpush1.bf16.msra.mxu0 %v3547_v13  ;;  %956 = vmatpush1.bf16.msra.mxu1 %v3549_v14  ;;  %v523_v13 = vld [vmem:[%s4779_s6 + $0x518] sm:$0xff]  ;;  %v534_v20 = vld [vmem:[%s4779_s6 + $0x690] sm:$0xff]  ;;  %v3654_v51 = vcombine.high %v3588_v44, %v3592_v45  ;;  %v3596_v53 = vld [vmem:[%s4779_s6 + $0x220] sm:$0xff] }
 0x1c1   : > { %916 = vmatprep.subr.bf16.mxu0 %v3556_v15  ;;  %957 = vmatprep.subr.bf16.mxu1 %v3558_v16  ;;  %v527_v14 = vld [vmem:[%s4779_s6 + $0x598] sm:$0xff]  ;;  %v3551_v15 = vcombine.low %v514_v3, %v518_v4  ;;  %v3553_v16 = vcombine.low %v515_v5, %v519_v6  ;;  %v3568_v25 = vcombine.high %v530_v19, %v534_v20  ;;  %v538_v27 = vld [vmem:[%s4779_s6 + $0x710] sm:$0xff]  ;;  %v3600_v54 = vld [vmem:[%s4779_s6 + $0x2a0] sm:$0xff] }
 0x1c2   : > { %v3562_v18 = vcombine.high %v523_v13, %v527_v14  ;;  %v542_v28 = vld [vmem:[%s4779_s6 + $0x790] sm:$0xff]  ;;  %v3662_v59 = vcombine.high %v3596_v53, %v3600_v54  ;;  %v3604_v61 = vld [vmem:[%s4779_s6 + $0x320] sm:$0xff] }
 0x1c3   : > { %v3576_v33 = vcombine.high %v538_v27, %v542_v28  ;;  %v3608_v62 = vld [vmem:[%s4779_s6 + $0x3a0] sm:$0xff] }
 0x1c4   : > { %917 = vmatpush1.bf16.msra.mxu0 %v3555_v21  ;;  %958 = vmatpush1.bf16.msra.mxu1 %v3557_v22  ;;  %v531_v21 = vld [vmem:[%s4779_s6 + $0x618] sm:$0xff]  ;;  %v3670_v3 = vcombine.high %v3604_v61, %v3608_v62  ;;  %v3612_v5 = vld [vmem:[%s4779_s6 + $0x420] sm:$0xff] }
 0x1c5   : > { %918 = vmatprep.subr.bf16.mxu0 %v3564_v23  ;;  %959 = vmatprep.subr.bf16.mxu1 %v3566_v24  ;;  %v535_v22 = vld [vmem:[%s4779_s6 + $0x698] sm:$0xff]  ;;  %v3559_v23 = vcombine.low %v522_v11, %v526_v12  ;;  %v3561_v24 = vcombine.low %v523_v13, %v527_v14  ;;  %v3616_v6 = vld [vmem:[%s4779_s6 + $0x4a0] sm:$0xff] }
 0x1c6   : > { %v3570_v26 = vcombine.high %v531_v21, %v535_v22  ;;  %v3678_v11 = vcombine.high %v3612_v5, %v3616_v6  ;;  %v3620_v13 = vld [vmem:[%s4779_s6 + $0x520] sm:$0xff] }
 0x1c7   : > { %v3624_v14 = vld [vmem:[%s4779_s6 + $0x5a0] sm:$0xff] }
 0x1c8   : > { %919 = vmatpush1.bf16.msra.mxu0 %v3563_v29  ;;  %960 = vmatpush1.bf16.msra.mxu1 %v3565_v30  ;;  %v539_v29 = vld [vmem:[%s4779_s6 + $0x718] sm:$0xff] }
 0x1c9   : > { %920 = vmatprep.subr.bf16.mxu0 %v3572_v31  ;;  %961 = vmatprep.subr.bf16.mxu1 %v3574_v32  ;;  %v543_v30 = vld [vmem:[%s4779_s6 + $0x798] sm:$0xff]  ;;  %v3567_v31 = vcombine.low %v530_v19, %v534_v20  ;;  %v3569_v32 = vcombine.low %v531_v21, %v535_v22  ;;  %v3686_v19 = vcombine.high %v3620_v13, %v3624_v14  ;;  %v3628_v21 = vld [vmem:[%s4779_s6 + $0x620] sm:$0xff] }
 0x1ca   : > { %v3578_v34 = vcombine.high %v539_v29, %v543_v30  ;;  %v3632_v22 = vld [vmem:[%s4779_s6 + $0x6a0] sm:$0xff] }
 0x1cc   : > { %921 = vmatpush1.bf16.msra.mxu0 %v3571_v37  ;;  %962 = vmatpush1.bf16.msra.mxu1 %v3573_v38  ;;  %v3581_v37 = vld [vmem:[%s4779_s6 + $0x28] sm:$0xff] }
 0x1cd   : > { %988 = vmatprep.subr.bf16.mxu0 %v3520_v39  ;;  %1029 = vmatprep.subr.bf16.mxu1 %v3522_v40  ;;  %v3585_v38 = vld [vmem:[%s4779_s6 + $0xa8] sm:$0xff]  ;;  %v3575_v39 = vcombine.low %v538_v27, %v542_v28  ;;  %v3577_v40 = vcombine.low %v539_v29, %v543_v30  ;;  %v3694_v27 = vcombine.high %v3628_v21, %v3632_v22  ;;  %v3636_v29 = vld [vmem:[%s4779_s6 + $0x720] sm:$0xff] }
 0x1ce   : > { %v3648_v43 = vcombine.high %v3581_v37, %v3585_v38  ;;  %v3640_v30 = vld [vmem:[%s4779_s6 + $0x7a0] sm:$0xff] }
 0x1cf   : > { %939 = vmatmul.mubr.bf16.vlgmr.msra.gmra.mrb[0].mxu0 %v4832_v46  ;;  %980 = vmatmul.mubr.bf16.vlgmr.msra.gmra.mrb[0].mxu1 %v4832_v46 }
 0x1d0   : > { %989 = vmatpush1.bf16.msra.mxu0 %v3519_v47  ;;  %1030 = vmatpush1.bf16.msra.mxu1 %v3521_v48  ;;  %v3589_v47 = vld [vmem:[%s4779_s6 + $0x128] sm:$0xff] }
 0x1d1   : > { %990 = vmatprep.subr.bf16.mxu0 %v3528_v49  ;;  %1031 = vmatprep.subr.bf16.mxu1 %v3530_v50  ;;  %v3593_v48 = vld [vmem:[%s4779_s6 + $0x1a8] sm:$0xff]  ;;  %v3645_v49 = vcombine.low %v3580_v35, %v3584_v36  ;;  %v3647_v50 = vcombine.low %v3581_v37, %v3585_v38  ;;  %v3702_v35 = vcombine.high %v3636_v29, %v3640_v30  ;;  %v3582_v37 = vld [vmem:[%s4779_s6 + $0x30] sm:$0xff] }
 0x1d2   : > { %1020 = vmatprep.mubr.bf16.mxu0 %v4525_v42  ;;  %1061 = vmatprep.mubr.bf16.mxu1 %v4525_v42  ;;  %v3656_v52 = vcombine.high %v3589_v47, %v3593_v48  ;;  %v3586_v38 = vld [vmem:[%s4779_s6 + $0xb0] sm:$0xff] }
 0x1d4   : > { %991 = vmatpush1.bf16.msra.mxu0 %v3527_v55  ;;  %1032 = vmatpush1.bf16.msra.mxu1 %v3529_v56  ;;  %v3597_v55 = vld [vmem:[%s4779_s6 + $0x228] sm:$0xff] }
 0x1d5   : > { %992 = vmatprep.subr.bf16.mxu0 %v3536_v57  ;;  %1033 = vmatprep.subr.bf16.mxu1 %v3538_v58  ;;  %v3601_v56 = vld [vmem:[%s4779_s6 + $0x2a8] sm:$0xff]  ;;  %v3653_v57 = vcombine.low %v3588_v44, %v3592_v45  ;;  %v3655_v58 = vcombine.low %v3589_v47, %v3593_v48  ;;  %v3650_v44 = vcombine.high %v3582_v37, %v3586_v38  ;;  %v3590_v47 = vld [vmem:[%s4779_s6 + $0x130] sm:$0xff] }
 0x1d6   : > { %v3664_v60 = vcombine.high %v3597_v55, %v3601_v56  ;;  %v3594_v48 = vld [vmem:[%s4779_s6 + $0x1b0] sm:$0xff] }
 0x1d8   : > { %993 = vmatpush1.bf16.msra.mxu0 %v3535_v63  ;;  %1034 = vmatpush1.bf16.msra.mxu1 %v3537_v0  ;;  %v3605_v63 = vld [vmem:[%s4779_s6 + $0x328] sm:$0xff] }
 0x1d9   : > { %994 = vmatprep.subr.bf16.mxu0 %v3544_v1  ;;  %1035 = vmatprep.subr.bf16.mxu1 %v3546_v2  ;;  %v3609_v0 = vld [vmem:[%s4779_s6 + $0x3a8] sm:$0xff]  ;;  %v3661_v1 = vcombine.low %v3596_v53, %v3600_v54  ;;  %v3663_v2 = vcombine.low %v3597_v55, %v3601_v56  ;;  %v3658_v53 = vcombine.high %v3590_v47, %v3594_v48  ;;  %v3598_v55 = vld [vmem:[%s4779_s6 + $0x230] sm:$0xff] }
 0x1da   : > { %v3672_v4 = vcombine.high %v3605_v63, %v3609_v0  ;;  %v3602_v56 = vld [vmem:[%s4779_s6 + $0x2b0] sm:$0xff] }
 0x1dc   : > { %995 = vmatpush1.bf16.msra.mxu0 %v3543_v7  ;;  %1036 = vmatpush1.bf16.msra.mxu1 %v3545_v8  ;;  %v3613_v7 = vld [vmem:[%s4779_s6 + $0x428] sm:$0xff] }
 0x1dd   : > { %996 = vmatprep.subr.bf16.mxu0 %v3552_v9  ;;  %1037 = vmatprep.subr.bf16.mxu1 %v3554_v10  ;;  %v3617_v8 = vld [vmem:[%s4779_s6 + $0x4a8] sm:$0xff]  ;;  %v3669_v9 = vcombine.low %v3604_v61, %v3608_v62  ;;  %v3671_v10 = vcombine.low %v3605_v63, %v3609_v0  ;;  %v3666_v61 = vcombine.high %v3598_v55, %v3602_v56  ;;  %v3606_v63 = vld [vmem:[%s4779_s6 + $0x330] sm:$0xff] }
 0x1de   : > { %v3680_v12 = vcombine.high %v3613_v7, %v3617_v8  ;;  %v3610_v0 = vld [vmem:[%s4779_s6 + $0x3b0] sm:$0xff] }
 0x1e0   : > { %997 = vmatpush1.bf16.msra.mxu0 %v3551_v15  ;;  %1038 = vmatpush1.bf16.msra.mxu1 %v3553_v16  ;;  %v3621_v15 = vld [vmem:[%s4779_s6 + $0x528] sm:$0xff] }
 0x1e1   : > { %998 = vmatprep.subr.bf16.mxu0 %v3560_v17  ;;  %1039 = vmatprep.subr.bf16.mxu1 %v3562_v18  ;;  %v3625_v16 = vld [vmem:[%s4779_s6 + $0x5a8] sm:$0xff]  ;;  %v3677_v17 = vcombine.low %v3612_v5, %v3616_v6  ;;  %v3679_v18 = vcombine.low %v3613_v7, %v3617_v8  ;;  %v3674_v5 = vcombine.high %v3606_v63, %v3610_v0  ;;  %v3614_v7 = vld [vmem:[%s4779_s6 + $0x430] sm:$0xff] }
 0x1e2   : > { %v3688_v20 = vcombine.high %v3621_v15, %v3625_v16  ;;  %v3618_v8 = vld [vmem:[%s4779_s6 + $0x4b0] sm:$0xff] }
 0x1e4   : > { %999 = vmatpush1.bf16.msra.mxu0 %v3559_v23  ;;  %1040 = vmatpush1.bf16.msra.mxu1 %v3561_v24  ;;  %v3629_v23 = vld [vmem:[%s4779_s6 + $0x628] sm:$0xff] }
 0x1e5   : > { %1000 = vmatprep.subr.bf16.mxu0 %v3568_v25  ;;  %1041 = vmatprep.subr.bf16.mxu1 %v3570_v26  ;;  %v3633_v24 = vld [vmem:[%s4779_s6 + $0x6a8] sm:$0xff]  ;;  %v3685_v25 = vcombine.low %v3620_v13, %v3624_v14  ;;  %v3687_v26 = vcombine.low %v3621_v15, %v3625_v16  ;;  %v3682_v13 = vcombine.high %v3614_v7, %v3618_v8  ;;  %v3622_v15 = vld [vmem:[%s4779_s6 + $0x530] sm:$0xff] }
 0x1e6   : > { %v3696_v28 = vcombine.high %v3629_v23, %v3633_v24  ;;  %v3626_v16 = vld [vmem:[%s4779_s6 + $0x5b0] sm:$0xff] }
 0x1e8   : > { %1001 = vmatpush1.bf16.msra.mxu0 %v3567_v31  ;;  %1042 = vmatpush1.bf16.msra.mxu1 %v3569_v32  ;;  %v3637_v31 = vld [vmem:[%s4779_s6 + $0x728] sm:$0xff] }
 0x1e9   : > { %1002 = vmatprep.subr.bf16.mxu0 %v3576_v33  ;;  %1043 = vmatprep.subr.bf16.mxu1 %v3578_v34  ;;  %v3641_v32 = vld [vmem:[%s4779_s6 + $0x7a8] sm:$0xff]  ;;  %v3693_v33 = vcombine.low %v3628_v21, %v3632_v22  ;;  %v3695_v34 = vcombine.low %v3629_v23, %v3633_v24  ;;  %v3690_v21 = vcombine.high %v3622_v15, %v3626_v16  ;;  %v3630_v23 = vld [vmem:[%s4779_s6 + $0x630] sm:$0xff] }
 0x1ea   : > { %v3704_v36 = vcombine.high %v3637_v31, %v3641_v32  ;;  %v3634_v24 = vld [vmem:[%s4779_s6 + $0x6b0] sm:$0xff] }
 0x1ec   : > { %1003 = vmatpush1.bf16.msra.mxu0 %v3575_v39  ;;  %1044 = vmatpush1.bf16.msra.mxu1 %v3577_v40  ;;  %v3583_v39 = vld [vmem:[%s4779_s6 + $0x38] sm:$0xff] }
 0x1ed   : > { %1569 = vmatprep.subr.bf16.mxu0 %v3646_v41  ;;  %1610 = vmatprep.subr.bf16.mxu1 %v3648_v43  ;;  %v3587_v40 = vld [vmem:[%s4779_s6 + $0xb8] sm:$0xff]  ;;  %v3701_v41 = vcombine.low %v3636_v29, %v3640_v30  ;;  %v3703_v43 = vcombine.low %v3637_v31, %v3641_v32  ;;  %v3698_v29 = vcombine.high %v3630_v23, %v3634_v24  ;;  %v3638_v31 = vld [vmem:[%s4779_s6 + $0x730] sm:$0xff] }
 0x1ee   : > { %v3652_v45 = vcombine.high %v3583_v39, %v3587_v40  ;;  %v3642_v32 = vld [vmem:[%s4779_s6 + $0x7b0] sm:$0xff] }
 0x1ef   : > { %1021 = vmatmul.mubr.bf16.vlgmr.msra.gmra.mrb[4].mxu0 %v4832_v46  ;;  %1062 = vmatmul.mubr.bf16.vlgmr.msra.gmra.mrb[4].mxu1 %v4832_v46 }
 0x1f0   : > { %1570 = vmatpush1.bf16.msra.mxu0 %v3645_v49  ;;  %1611 = vmatpush1.bf16.msra.mxu1 %v3647_v50  ;;  %v3591_v49 = vld [vmem:[%s4779_s6 + $0x138] sm:$0xff] }
 0x1f1   : > { %1571 = vmatprep.subr.bf16.mxu0 %v3654_v51  ;;  %1612 = vmatprep.subr.bf16.mxu1 %v3656_v52  ;;  %v3595_v50 = vld [vmem:[%s4779_s6 + $0x1b8] sm:$0xff]  ;;  %v3649_v51 = vcombine.low %v3582_v37, %v3586_v38  ;;  %v3651_v52 = vcombine.low %v3583_v39, %v3587_v40  ;;  %v3706_v37 = vcombine.high %v3638_v31, %v3642_v32  ;;  %v3710_v39 = vld [vmem:[%s4779_s6 + $0x40] sm:$0xff] }
 0x1f2   : > { %1601 = vmatprep.mubr.bf16.mxu0 %v4525_v42  ;;  %1642 = vmatprep.mubr.bf16.mxu1 %v4525_v42  ;;  %v3660_v54 = vcombine.high %v3591_v49, %v3595_v50  ;;  %v3714_v40 = vld [vmem:[%s4779_s6 + $0xc0] sm:$0xff] }
 0x1f4   : > { %1572 = vmatpush1.bf16.msra.mxu0 %v3653_v57  ;;  %1613 = vmatpush1.bf16.msra.mxu1 %v3655_v58  ;;  %v3599_v57 = vld [vmem:[%s4779_s6 + $0x238] sm:$0xff] }
 0x1f5   : > { %1573 = vmatprep.subr.bf16.mxu0 %v3662_v59  ;;  %1614 = vmatprep.subr.bf16.mxu1 %v3664_v60  ;;  %v3603_v58 = vld [vmem:[%s4779_s6 + $0x2b8] sm:$0xff]  ;;  %v3657_v59 = vcombine.low %v3590_v47, %v3594_v48  ;;  %v3659_v60 = vcombine.low %v3591_v49, %v3595_v50  ;;  %v3776_v47 = vcombine.high %v3710_v39, %v3714_v40  ;;  %v3718_v49 = vld [vmem:[%s4779_s6 + $0x140] sm:$0xff] }
 0x1f6   : > { %v3668_v62 = vcombine.high %v3599_v57, %v3603_v58  ;;  %v3722_v50 = vld [vmem:[%s4779_s6 + $0x1c0] sm:$0xff] }
 0x1f8   : > { %1574 = vmatpush1.bf16.msra.mxu0 %v3661_v1  ;;  %1615 = vmatpush1.bf16.msra.mxu1 %v3663_v2  ;;  %v3607_v1 = vld [vmem:[%s4779_s6 + $0x338] sm:$0xff] }
 0x1f9   : > { %1575 = vmatprep.subr.bf16.mxu0 %v3670_v3  ;;  %1616 = vmatprep.subr.bf16.mxu1 %v3672_v4  ;;  %v3611_v2 = vld [vmem:[%s4779_s6 + $0x3b8] sm:$0xff]  ;;  %v3665_v3 = vcombine.low %v3598_v55, %v3602_v56  ;;  %v3667_v4 = vcombine.low %v3599_v57, %v3603_v58  ;;  %v3784_v55 = vcombine.high %v3718_v49, %v3722_v50  ;;  %v3726_v57 = vld [vmem:[%s4779_s6 + $0x240] sm:$0xff] }
 0x1fa   : > { %v3676_v6 = vcombine.high %v3607_v1, %v3611_v2  ;;  %v3730_v58 = vld [vmem:[%s4779_s6 + $0x2c0] sm:$0xff] }
 0x1fc   : > { %1576 = vmatpush1.bf16.msra.mxu0 %v3669_v9  ;;  %1617 = vmatpush1.bf16.msra.mxu1 %v3671_v10  ;;  %v3615_v9 = vld [vmem:[%s4779_s6 + $0x438] sm:$0xff] }
 0x1fd   : > { %1577 = vmatprep.subr.bf16.mxu0 %v3678_v11  ;;  %1618 = vmatprep.subr.bf16.mxu1 %v3680_v12  ;;  %v3619_v10 = vld [vmem:[%s4779_s6 + $0x4b8] sm:$0xff]  ;;  %v3673_v11 = vcombine.low %v3606_v63, %v3610_v0  ;;  %v3675_v12 = vcombine.low %v3607_v1, %v3611_v2  ;;  %v3792_v63 = vcombine.high %v3726_v57, %v3730_v58  ;;  %v3734_v1 = vld [vmem:[%s4779_s6 + $0x340] sm:$0xff] }
 0x1fe   : > { %v3684_v14 = vcombine.high %v3615_v9, %v3619_v10  ;;  %v3738_v2 = vld [vmem:[%s4779_s6 + $0x3c0] sm:$0xff] }
 0x200   : > { %1578 = vmatpush1.bf16.msra.mxu0 %v3677_v17  ;;  %1619 = vmatpush1.bf16.msra.mxu1 %v3679_v18  ;;  %v3623_v17 = vld [vmem:[%s4779_s6 + $0x538] sm:$0xff] }
 0x201   : > { %1579 = vmatprep.subr.bf16.mxu0 %v3686_v19  ;;  %1620 = vmatprep.subr.bf16.mxu1 %v3688_v20  ;;  %v3627_v18 = vld [vmem:[%s4779_s6 + $0x5b8] sm:$0xff]  ;;  %v3681_v19 = vcombine.low %v3614_v7, %v3618_v8  ;;  %v3683_v20 = vcombine.low %v3615_v9, %v3619_v10  ;;  %v3800_v7 = vcombine.high %v3734_v1, %v3738_v2  ;;  %v3742_v9 = vld [vmem:[%s4779_s6 + $0x440] sm:$0xff] }
 0x202   : > { %v3692_v22 = vcombine.high %v3623_v17, %v3627_v18  ;;  %v3746_v10 = vld [vmem:[%s4779_s6 + $0x4c0] sm:$0xff] }
 0x204   : > { %1580 = vmatpush1.bf16.msra.mxu0 %v3685_v25  ;;  %1621 = vmatpush1.bf16.msra.mxu1 %v3687_v26  ;;  %v3631_v25 = vld [vmem:[%s4779_s6 + $0x638] sm:$0xff] }
 0x205   : > { %1581 = vmatprep.subr.bf16.mxu0 %v3694_v27  ;;  %1622 = vmatprep.subr.bf16.mxu1 %v3696_v28  ;;  %v3635_v26 = vld [vmem:[%s4779_s6 + $0x6b8] sm:$0xff]  ;;  %v3689_v27 = vcombine.low %v3622_v15, %v3626_v16  ;;  %v3691_v28 = vcombine.low %v3623_v17, %v3627_v18  ;;  %v3808_v15 = vcombine.high %v3742_v9, %v3746_v10  ;;  %v3750_v17 = vld [vmem:[%s4779_s6 + $0x540] sm:$0xff] }
 0x206   : > { %v3700_v30 = vcombine.high %v3631_v25, %v3635_v26  ;;  %v3754_v18 = vld [vmem:[%s4779_s6 + $0x5c0] sm:$0xff] }
 0x208   : > { %1582 = vmatpush1.bf16.msra.mxu0 %v3693_v33  ;;  %1623 = vmatpush1.bf16.msra.mxu1 %v3695_v34  ;;  %v3639_v33 = vld [vmem:[%s4779_s6 + $0x738] sm:$0xff] }
 0x209   : > { %1583 = vmatprep.subr.bf16.mxu0 %v3702_v35  ;;  %1624 = vmatprep.subr.bf16.mxu1 %v3704_v36  ;;  %v3643_v34 = vld [vmem:[%s4779_s6 + $0x7b8] sm:$0xff]  ;;  %v3697_v35 = vcombine.low %v3630_v23, %v3634_v24  ;;  %v3699_v36 = vcombine.low %v3631_v25, %v3635_v26  ;;  %v3816_v23 = vcombine.high %v3750_v17, %v3754_v18  ;;  %v3758_v25 = vld [vmem:[%s4779_s6 + $0x640] sm:$0xff] }
 0x20a   : > { %v3708_v38 = vcombine.high %v3639_v33, %v3643_v34  ;;  %v3762_v26 = vld [vmem:[%s4779_s6 + $0x6c0] sm:$0xff] }
 0x20c   : > { %1584 = vmatpush1.bf16.msra.mxu0 %v3701_v41  ;;  %1625 = vmatpush1.bf16.msra.mxu1 %v3703_v43  ;;  %v3711_v41 = vld [vmem:[%s4779_s6 + $0x48] sm:$0xff] }
 0x20d   : > { %1651 = vmatprep.subr.bf16.mxu0 %v3650_v44  ;;  %1692 = vmatprep.subr.bf16.mxu1 %v3652_v45  ;;  %v3715_v43 = vld [vmem:[%s4779_s6 + $0xc8] sm:$0xff]  ;;  %v3705_v44 = vcombine.low %v3638_v31, %v3642_v32  ;;  %v3707_v45 = vcombine.low %v3639_v33, %v3643_v34  ;;  %v3824_v31 = vcombine.high %v3758_v25, %v3762_v26  ;;  %v3766_v33 = vld [vmem:[%s4779_s6 + $0x740] sm:$0xff] }
 0x20e   : > { %v3778_v48 = vcombine.high %v3711_v41, %v3715_v43  ;;  %v3770_v34 = vld [vmem:[%s4779_s6 + $0x7c0] sm:$0xff] }
 0x20f   : > { %1602 = vmatmul.mubr.bf16.vlgmr.msra.gmra.mrb[8].mxu0 %v4832_v46  ;;  %1643 = vmatmul.mubr.bf16.vlgmr.msra.gmra.mrb[8].mxu1 %v4832_v46 }
 0x210   : > { %1652 = vmatpush1.bf16.msra.mxu0 %v3649_v51  ;;  %1693 = vmatpush1.bf16.msra.mxu1 %v3651_v52  ;;  %v3719_v51 = vld [vmem:[%s4779_s6 + $0x148] sm:$0xff] }
 0x211   : > { %1653 = vmatprep.subr.bf16.mxu0 %v3658_v53  ;;  %1694 = vmatprep.subr.bf16.mxu1 %v3660_v54  ;;  %v3723_v52 = vld [vmem:[%s4779_s6 + $0x1c8] sm:$0xff]  ;;  %v3775_v53 = vcombine.low %v3710_v39, %v3714_v40  ;;  %v3777_v54 = vcombine.low %v3711_v41, %v3715_v43  ;;  %v3832_v39 = vcombine.high %v3766_v33, %v3770_v34  ;;  %v3712_v41 = vld [vmem:[%s4779_s6 + $0x50] sm:$0xff] }
 0x212   : > { %1683 = vmatprep.mubr.bf16.mxu0 %v4525_v42  ;;  %1724 = vmatprep.mubr.bf16.mxu1 %v4525_v42  ;;  %v3786_v56 = vcombine.high %v3719_v51, %v3723_v52  ;;  %v3716_v43 = vld [vmem:[%s4779_s6 + $0xd0] sm:$0xff] }
 0x214   : > { %1654 = vmatpush1.bf16.msra.mxu0 %v3657_v59  ;;  %1695 = vmatpush1.bf16.msra.mxu1 %v3659_v60  ;;  %v3727_v59 = vld [vmem:[%s4779_s6 + $0x248] sm:$0xff] }
 0x215   : > { %1655 = vmatprep.subr.bf16.mxu0 %v3666_v61  ;;  %1696 = vmatprep.subr.bf16.mxu1 %v3668_v62  ;;  %v3731_v60 = vld [vmem:[%s4779_s6 + $0x2c8] sm:$0xff]  ;;  %v3783_v61 = vcombine.low %v3718_v49, %v3722_v50  ;;  %v3785_v62 = vcombine.low %v3719_v51, %v3723_v52  ;;  %v3780_v49 = vcombine.high %v3712_v41, %v3716_v43  ;;  %v3720_v51 = vld [vmem:[%s4779_s6 + $0x150] sm:$0xff] }
 0x216   : > { %v3794_v0 = vcombine.high %v3727_v59, %v3731_v60  ;;  %v3724_v52 = vld [vmem:[%s4779_s6 + $0x1d0] sm:$0xff] }
 0x218   : > { %1656 = vmatpush1.bf16.msra.mxu0 %v3665_v3  ;;  %1697 = vmatpush1.bf16.msra.mxu1 %v3667_v4  ;;  %v3735_v3 = vld [vmem:[%s4779_s6 + $0x348] sm:$0xff] }
 0x219   : > { %1657 = vmatprep.subr.bf16.mxu0 %v3674_v5  ;;  %1698 = vmatprep.subr.bf16.mxu1 %v3676_v6  ;;  %v3739_v4 = vld [vmem:[%s4779_s6 + $0x3c8] sm:$0xff]  ;;  %v3791_v5 = vcombine.low %v3726_v57, %v3730_v58  ;;  %v3793_v6 = vcombine.low %v3727_v59, %v3731_v60  ;;  %v3788_v57 = vcombine.high %v3720_v51, %v3724_v52  ;;  %v3728_v59 = vld [vmem:[%s4779_s6 + $0x250] sm:$0xff] }
 0x21a   : > { %v3802_v8 = vcombine.high %v3735_v3, %v3739_v4  ;;  %v3732_v60 = vld [vmem:[%s4779_s6 + $0x2d0] sm:$0xff] }
 0x21c   : > { %1658 = vmatpush1.bf16.msra.mxu0 %v3673_v11  ;;  %1699 = vmatpush1.bf16.msra.mxu1 %v3675_v12  ;;  %v3743_v11 = vld [vmem:[%s4779_s6 + $0x448] sm:$0xff] }
 0x21d   : > { %1659 = vmatprep.subr.bf16.mxu0 %v3682_v13  ;;  %1700 = vmatprep.subr.bf16.mxu1 %v3684_v14  ;;  %v3747_v12 = vld [vmem:[%s4779_s6 + $0x4c8] sm:$0xff]  ;;  %v3799_v13 = vcombine.low %v3734_v1, %v3738_v2  ;;  %v3801_v14 = vcombine.low %v3735_v3, %v3739_v4  ;;  %v3796_v1 = vcombine.high %v3728_v59, %v3732_v60  ;;  %v3736_v3 = vld [vmem:[%s4779_s6 + $0x350] sm:$0xff] }
 0x21e   : > { %v3810_v16 = vcombine.high %v3743_v11, %v3747_v12  ;;  %v3740_v4 = vld [vmem:[%s4779_s6 + $0x3d0] sm:$0xff] }
 0x220   : > { %1660 = vmatpush1.bf16.msra.mxu0 %v3681_v19  ;;  %1701 = vmatpush1.bf16.msra.mxu1 %v3683_v20  ;;  %v3751_v19 = vld [vmem:[%s4779_s6 + $0x548] sm:$0xff] }
 0x221   : > { %1661 = vmatprep.subr.bf16.mxu0 %v3690_v21  ;;  %1702 = vmatprep.subr.bf16.mxu1 %v3692_v22  ;;  %v3755_v20 = vld [vmem:[%s4779_s6 + $0x5c8] sm:$0xff]  ;;  %v3807_v21 = vcombine.low %v3742_v9, %v3746_v10  ;;  %v3809_v22 = vcombine.low %v3743_v11, %v3747_v12  ;;  %v3804_v9 = vcombine.high %v3736_v3, %v3740_v4  ;;  %v3744_v11 = vld [vmem:[%s4779_s6 + $0x450] sm:$0xff] }
 0x222   : > { %v3818_v24 = vcombine.high %v3751_v19, %v3755_v20  ;;  %v3748_v12 = vld [vmem:[%s4779_s6 + $0x4d0] sm:$0xff] }
 0x224   : > { %1662 = vmatpush1.bf16.msra.mxu0 %v3689_v27  ;;  %1703 = vmatpush1.bf16.msra.mxu1 %v3691_v28  ;;  %v3759_v27 = vld [vmem:[%s4779_s6 + $0x648] sm:$0xff] }
 0x225   : > { %1663 = vmatprep.subr.bf16.mxu0 %v3698_v29  ;;  %1704 = vmatprep.subr.bf16.mxu1 %v3700_v30  ;;  %v3763_v28 = vld [vmem:[%s4779_s6 + $0x6c8] sm:$0xff]  ;;  %v3815_v29 = vcombine.low %v3750_v17, %v3754_v18  ;;  %v3817_v30 = vcombine.low %v3751_v19, %v3755_v20  ;;  %v3812_v17 = vcombine.high %v3744_v11, %v3748_v12  ;;  %v3752_v19 = vld [vmem:[%s4779_s6 + $0x550] sm:$0xff] }
 0x226   : > { %v3826_v32 = vcombine.high %v3759_v27, %v3763_v28  ;;  %v3756_v20 = vld [vmem:[%s4779_s6 + $0x5d0] sm:$0xff] }
 0x228   : > { %1664 = vmatpush1.bf16.msra.mxu0 %v3697_v35  ;;  %1705 = vmatpush1.bf16.msra.mxu1 %v3699_v36  ;;  %v3767_v35 = vld [vmem:[%s4779_s6 + $0x748] sm:$0xff] }
 0x229   : > { %1665 = vmatprep.subr.bf16.mxu0 %v3706_v37  ;;  %1706 = vmatprep.subr.bf16.mxu1 %v3708_v38  ;;  %v3771_v36 = vld [vmem:[%s4779_s6 + $0x7c8] sm:$0xff]  ;;  %v3823_v37 = vcombine.low %v3758_v25, %v3762_v26  ;;  %v3825_v38 = vcombine.low %v3759_v27, %v3763_v28  ;;  %v3820_v25 = vcombine.high %v3752_v19, %v3756_v20  ;;  %v3760_v27 = vld [vmem:[%s4779_s6 + $0x650] sm:$0xff] }
 0x22a   : > { %v3834_v40 = vcombine.high %v3767_v35, %v3771_v36  ;;  %v3764_v28 = vld [vmem:[%s4779_s6 + $0x6d0] sm:$0xff] }
 0x22c   : > { %1666 = vmatpush1.bf16.msra.mxu0 %v3705_v44  ;;  %1707 = vmatpush1.bf16.msra.mxu1 %v3707_v45  ;;  %v3713_v44 = vld [vmem:[%s4779_s6 + $0x58] sm:$0xff] }
 0x22d   : > { %2231 = vmatprep.subr.bf16.mxu0 %v3776_v47  ;;  %2272 = vmatprep.subr.bf16.mxu1 %v3778_v48  ;;  %v3717_v45 = vld [vmem:[%s4779_s6 + $0xd8] sm:$0xff]  ;;  %v3831_v47 = vcombine.low %v3766_v33, %v3770_v34  ;;  %v3833_v48 = vcombine.low %v3767_v35, %v3771_v36  ;;  %v3828_v33 = vcombine.high %v3760_v27, %v3764_v28  ;;  %v3768_v35 = vld [vmem:[%s4779_s6 + $0x750] sm:$0xff] }
 0x22e   : > { %v3782_v50 = vcombine.high %v3713_v44, %v3717_v45  ;;  %v3772_v36 = vld [vmem:[%s4779_s6 + $0x7d0] sm:$0xff] }
 0x22f   : > { %1684 = vmatmul.mubr.bf16.vlgmr.msra.gmra.mrb[12].mxu0 %v4832_v46  ;;  %1725 = vmatmul.mubr.bf16.vlgmr.msra.gmra.mrb[12].mxu1 %v4832_v46 }
 0x230   : > { %2232 = vmatpush1.bf16.msra.mxu0 %v3775_v53  ;;  %2273 = vmatpush1.bf16.msra.mxu1 %v3777_v54  ;;  %v3721_v53 = vld [vmem:[%s4779_s6 + $0x158] sm:$0xff] }
 0x231   : > { %2233 = vmatprep.subr.bf16.mxu0 %v3784_v55  ;;  %2274 = vmatprep.subr.bf16.mxu1 %v3786_v56  ;;  %v3725_v54 = vld [vmem:[%s4779_s6 + $0x1d8] sm:$0xff]  ;;  %v3779_v55 = vcombine.low %v3712_v41, %v3716_v43  ;;  %v3781_v56 = vcombine.low %v3713_v44, %v3717_v45  ;;  %v3836_v41 = vcombine.high %v3768_v35, %v3772_v36  ;;  %v3840_v44 = vld [vmem:[%s4779_s6 + $0x60] sm:$0xff] }
 0x232   : > { %2263 = vmatprep.mubr.bf16.mxu0 %v4525_v42  ;;  %2304 = vmatprep.mubr.bf16.mxu1 %v4525_v42  ;;  %v3790_v58 = vcombine.high %v3721_v53, %v3725_v54  ;;  %v3844_v45 = vld [vmem:[%s4779_s6 + $0xe0] sm:$0xff] }
 0x234   : > { %2234 = vmatpush1.bf16.msra.mxu0 %v3783_v61  ;;  %2275 = vmatpush1.bf16.msra.mxu1 %v3785_v62  ;;  %v3729_v61 = vld [vmem:[%s4779_s6 + $0x258] sm:$0xff] }
 0x235   : > { %2235 = vmatprep.subr.bf16.mxu0 %v3792_v63  ;;  %2276 = vmatprep.subr.bf16.mxu1 %v3794_v0  ;;  %v3733_v62 = vld [vmem:[%s4779_s6 + $0x2d8] sm:$0xff]  ;;  %v3787_v63 = vcombine.low %v3720_v51, %v3724_v52  ;;  %v3789_v0 = vcombine.low %v3721_v53, %v3725_v54  ;;  %v3906_v51 = vcombine.high %v3840_v44, %v3844_v45  ;;  %v3848_v53 = vld [vmem:[%s4779_s6 + $0x160] sm:$0xff] }
 0x236   : > { %v3798_v2 = vcombine.high %v3729_v61, %v3733_v62  ;;  %v3852_v54 = vld [vmem:[%s4779_s6 + $0x1e0] sm:$0xff] }
 0x238   : > { %2236 = vmatpush1.bf16.msra.mxu0 %v3791_v5  ;;  %2277 = vmatpush1.bf16.msra.mxu1 %v3793_v6  ;;  %v3737_v5 = vld [vmem:[%s4779_s6 + $0x358] sm:$0xff] }
 0x239   : > { %2237 = vmatprep.subr.bf16.mxu0 %v3800_v7  ;;  %2278 = vmatprep.subr.bf16.mxu1 %v3802_v8  ;;  %v3741_v6 = vld [vmem:[%s4779_s6 + $0x3d8] sm:$0xff]  ;;  %v3795_v7 = vcombine.low %v3728_v59, %v3732_v60  ;;  %v3797_v8 = vcombine.low %v3729_v61, %v3733_v62  ;;  %v3914_v59 = vcombine.high %v3848_v53, %v3852_v54  ;;  %v3856_v61 = vld [vmem:[%s4779_s6 + $0x260] sm:$0xff] }
 0x23a   : > { %v3806_v10 = vcombine.high %v3737_v5, %v3741_v6  ;;  %v3860_v62 = vld [vmem:[%s4779_s6 + $0x2e0] sm:$0xff] }
 0x23c   : > { %2238 = vmatpush1.bf16.msra.mxu0 %v3799_v13  ;;  %2279 = vmatpush1.bf16.msra.mxu1 %v3801_v14  ;;  %v3745_v13 = vld [vmem:[%s4779_s6 + $0x458] sm:$0xff] }
 0x23d   : > { %2239 = vmatprep.subr.bf16.mxu0 %v3808_v15  ;;  %2280 = vmatprep.subr.bf16.mxu1 %v3810_v16  ;;  %v3749_v14 = vld [vmem:[%s4779_s6 + $0x4d8] sm:$0xff]  ;;  %v3803_v15 = vcombine.low %v3736_v3, %v3740_v4  ;;  %v3805_v16 = vcombine.low %v3737_v5, %v3741_v6  ;;  %v3922_v4 = vcombine.high %v3856_v61, %v3860_v62  ;;  %v3864_v6 = vld [vmem:[%s4779_s6 + $0x360] sm:$0xff] }
 0x23e   : > { %v3814_v18 = vcombine.high %v3745_v13, %v3749_v14 }
 0x240   : > { %2240 = vmatpush1.bf16.msra.mxu0 %v3807_v21  ;;  %2281 = vmatpush1.bf16.msra.mxu1 %v3809_v22  ;;  %v3753_v21 = vld [vmem:[%s4779_s6 + $0x558] sm:$0xff] }
 0x241   : > { %2241 = vmatprep.subr.bf16.mxu0 %v3816_v23  ;;  %2282 = vmatprep.subr.bf16.mxu1 %v3818_v24  ;;  %v3757_v22 = vld [vmem:[%s4779_s6 + $0x5d8] sm:$0xff]  ;;  %v3811_v23 = vcombine.low %v3744_v11, %v3748_v12  ;;  %v3813_v24 = vcombine.low %v3745_v13, %v3749_v14  ;;  %v3872_v13 = vld [vmem:[%s4779_s6 + $0x460] sm:$0xff] }
 0x242   : > { %v3822_v26 = vcombine.high %v3753_v21, %v3757_v22  ;;  %v3876_v14 = vld [vmem:[%s4779_s6 + $0x4e0] sm:$0xff] }
 0x244   : > { %2242 = vmatpush1.bf16.msra.mxu0 %v3815_v29  ;;  %2283 = vmatpush1.bf16.msra.mxu1 %v3817_v30  ;;  %v3761_v29 = vld [vmem:[%s4779_s6 + $0x658] sm:$0xff] }
 0x245   : > { %2243 = vmatprep.subr.bf16.mxu0 %v3824_v31  ;;  %2284 = vmatprep.subr.bf16.mxu1 %v3826_v32  ;;  %v3765_v30 = vld [vmem:[%s4779_s6 + $0x6d8] sm:$0xff]  ;;  %v3819_v31 = vcombine.low %v3752_v19, %v3756_v20  ;;  %v3821_v32 = vcombine.low %v3753_v21, %v3757_v22  ;;  %v3938_v19 = vcombine.high %v3872_v13, %v3876_v14  ;;  %v3880_v21 = vld [vmem:[%s4779_s6 + $0x560] sm:$0xff] }
 0x246   : > { %v3830_v34 = vcombine.high %v3761_v29, %v3765_v30  ;;  %v3884_v22 = vld [vmem:[%s4779_s6 + $0x5e0] sm:$0xff] }
 0x248   : > { %2244 = vmatpush1.bf16.msra.mxu0 %v3823_v37  ;;  %2285 = vmatpush1.bf16.msra.mxu1 %v3825_v38  ;;  %v3769_v37 = vld [vmem:[%s4779_s6 + $0x758] sm:$0xff] }
 0x249   : > { %2245 = vmatprep.subr.bf16.mxu0 %v3832_v39  ;;  %2286 = vmatprep.subr.bf16.mxu1 %v3834_v40  ;;  %v3773_v38 = vld [vmem:[%s4779_s6 + $0x7d8] sm:$0xff]  ;;  %v3827_v39 = vcombine.low %v3760_v27, %v3764_v28  ;;  %v3829_v40 = vcombine.low %v3761_v29, %v3765_v30  ;;  %v3946_v27 = vcombine.high %v3880_v21, %v3884_v22  ;;  %v3888_v29 = vld [vmem:[%s4779_s6 + $0x660] sm:$0xff] }
 0x24a   : > { %v3838_v43 = vcombine.high %v3769_v37, %v3773_v38  ;;  %v3892_v30 = vld [vmem:[%s4779_s6 + $0x6e0] sm:$0xff] }
 0x24c   : > { %2246 = vmatpush1.bf16.msra.mxu0 %v3831_v47  ;;  %2287 = vmatpush1.bf16.msra.mxu1 %v3833_v48  ;;  %v3841_v47 = vld [vmem:[%s4779_s6 + $0x68] sm:$0xff] }
 0x24d   : > { %2313 = vmatprep.subr.bf16.mxu0 %v3780_v49  ;;  %2354 = vmatprep.subr.bf16.mxu1 %v3782_v50  ;;  %v3845_v48 = vld [vmem:[%s4779_s6 + $0xe8] sm:$0xff]  ;;  %v3835_v49 = vcombine.low %v3768_v35, %v3772_v36  ;;  %v3837_v50 = vcombine.low %v3769_v37, %v3773_v38  ;;  %v3954_v35 = vcombine.high %v3888_v29, %v3892_v30  ;;  %v3896_v37 = vld [vmem:[%s4779_s6 + $0x760] sm:$0xff] }
 0x24e   : > { %v3908_v52 = vcombine.high %v3841_v47, %v3845_v48  ;;  %v3900_v38 = vld [vmem:[%s4779_s6 + $0x7e0] sm:$0xff] }
 0x24f   : > { %2264 = vmatmul.mubr.bf16.vlgmr.msra.gmra.mrb[16].mxu0 %v4832_v46  ;;  %2305 = vmatmul.mubr.bf16.vlgmr.msra.gmra.mrb[16].mxu1 %v4832_v46 }
 0x250   : > { %2314 = vmatpush1.bf16.msra.mxu0 %v3779_v55  ;;  %2355 = vmatpush1.bf16.msra.mxu1 %v3781_v56  ;;  %v3849_v55 = vld [vmem:[%s4779_s6 + $0x168] sm:$0xff] }
 0x251   : > { %2315 = vmatprep.subr.bf16.mxu0 %v3788_v57  ;;  %2356 = vmatprep.subr.bf16.mxu1 %v3790_v58  ;;  %v3853_v56 = vld [vmem:[%s4779_s6 + $0x1e8] sm:$0xff]  ;;  %v3905_v57 = vcombine.low %v3840_v44, %v3844_v45  ;;  %v3907_v58 = vcombine.low %v3841_v47, %v3845_v48  ;;  %v3962_v44 = vcombine.high %v3896_v37, %v3900_v38  ;;  %v3842_v47 = vld [vmem:[%s4779_s6 + $0x70] sm:$0xff] }
 0x252   : > { %2345 = vmatprep.mubr.bf16.mxu0 %v4525_v42  ;;  %2386 = vmatprep.mubr.bf16.mxu1 %v4525_v42  ;;  %v3916_v60 = vcombine.high %v3849_v55, %v3853_v56  ;;  %v3915_v3 = vcombine.low %v3849_v55, %v3853_v56  ;;  %v3846_v48 = vld [vmem:[%s4779_s6 + $0xf0] sm:$0xff] }
 0x253   : > { %v3850_v55 = vld [vmem:[%s4779_s6 + $0x170] sm:$0xff] }
 0x254   : > { %2316 = vmatpush1.bf16.msra.mxu0 %v3787_v63  ;;  %2357 = vmatpush1.bf16.msra.mxu1 %v3789_v0  ;;  %v3857_v63 = vld [vmem:[%s4779_s6 + $0x268] sm:$0xff]  ;;  %v3854_v56 = vld [vmem:[%s4779_s6 + $0x1f0] sm:$0xff] }
 0x255   : > { %2317 = vmatprep.subr.bf16.mxu0 %v3796_v1  ;;  %2358 = vmatprep.subr.bf16.mxu1 %v3798_v2  ;;  %v3861_v0 = vld [vmem:[%s4779_s6 + $0x2e8] sm:$0xff]  ;;  %v5019_v1 = vld [vmem:[#allocation2] sm:$0xf]  ;;  %v3913_v2 = vcombine.low %v3848_v53, %v3852_v54  ;;  %v3910_v53 = vcombine.high %v3842_v47, %v3846_v48 }
 0x256   : > { %v3924_v5 = vcombine.high %v3857_v63, %v3861_v0 }
 0x258   : > { %2318 = vmatpush1.bf16.msra.mxu0 %v3795_v7  ;;  %2359 = vmatpush1.bf16.msra.mxu1 %v3797_v8  ;;  %v3865_v7 = vld [vmem:[%s4779_s6 + $0x368] sm:$0xff] }
 0x259   : > { %2319 = vmatprep.subr.bf16.mxu0 %v3804_v9  ;;  %2360 = vmatprep.subr.bf16.mxu1 %v3806_v10  ;;  %v3869_v8 = vld [vmem:[%s4779_s6 + $0x3e8] sm:$0xff]  ;;  %v3921_v9 = vcombine.low %v3856_v61, %v3860_v62  ;;  %v3923_v10 = vcombine.low %v3857_v63, %v3861_v0  ;;  %v3918_v61 = vcombine.high %v3850_v55, %v3854_v56  ;;  %v3858_v63 = vld [vmem:[%s4779_s6 + $0x270] sm:$0xff] }
 0x25a   : > { %v3932_v12 = vcombine.high %v3865_v7, %v3869_v8  ;;  %v3862_v0 = vld [vmem:[%s4779_s6 + $0x2f0] sm:$0xff] }
 0x25c   : > { %2320 = vmatpush1.bf16.msra.mxu0 %v3803_v15  ;;  %2361 = vmatpush1.bf16.msra.mxu1 %v3805_v16  ;;  %v3873_v15 = vld [vmem:[%s4779_s6 + $0x468] sm:$0xff] }
 0x25d   : > { %2321 = vmatprep.subr.bf16.mxu0 %v3812_v17  ;;  %2362 = vmatprep.subr.bf16.mxu1 %v3814_v18  ;;  %v3877_v16 = vld [vmem:[%s4779_s6 + $0x4e8] sm:$0xff]  ;;  %v3931_v18 = vcombine.low %v3865_v7, %v3869_v8  ;;  %v3866_v7 = vld [vmem:[%s4779_s6 + $0x370] sm:$0xff] }
 0x25e   : > { %v3940_v20 = vcombine.high %v3873_v15, %v3877_v16  ;;  %v3870_v8 = vld [vmem:[%s4779_s6 + $0x3f0] sm:$0xff] }
 0x260   : > { %2322 = vmatpush1.bf16.msra.mxu0 %v3811_v23  ;;  %2363 = vmatpush1.bf16.msra.mxu1 %v3813_v24  ;;  %v3881_v23 = vld [vmem:[%s4779_s6 + $0x568] sm:$0xff] }
 0x261   : > { %2323 = vmatprep.subr.bf16.mxu0 %v3820_v25  ;;  %2364 = vmatprep.subr.bf16.mxu1 %v3822_v26  ;;  %v3885_v24 = vld [vmem:[%s4779_s6 + $0x5e8] sm:$0xff]  ;;  %v3937_v25 = vcombine.low %v3872_v13, %v3876_v14  ;;  %v3939_v26 = vcombine.low %v3873_v15, %v3877_v16  ;;  %v3934_v14 = vcombine.high %v3866_v7, %v3870_v8  ;;  %v3874_v16 = vld [vmem:[%s4779_s6 + $0x470] sm:$0xff] }
 0x262   : > { %v3948_v28 = vcombine.high %v3881_v23, %v3885_v24 }
 0x264   : > { %2324 = vmatpush1.bf16.msra.mxu0 %v3819_v31  ;;  %2365 = vmatpush1.bf16.msra.mxu1 %v3821_v32  ;;  %v3889_v31 = vld [vmem:[%s4779_s6 + $0x668] sm:$0xff] }
 0x265   : > { %2325 = vmatprep.subr.bf16.mxu0 %v3828_v33  ;;  %2366 = vmatprep.subr.bf16.mxu1 %v3830_v34  ;;  %v3893_v32 = vld [vmem:[%s4779_s6 + $0x6e8] sm:$0xff]  ;;  %v3945_v33 = vcombine.low %v3880_v21, %v3884_v22  ;;  %v3947_v34 = vcombine.low %v3881_v23, %v3885_v24  ;;  %v3882_v24 = vld [vmem:[%s4779_s6 + $0x570] sm:$0xff] }
 0x266   : > { %v3956_v36 = vcombine.high %v3889_v31, %v3893_v32 }
 0x268   : > { %2326 = vmatpush1.bf16.msra.mxu0 %v3827_v39  ;;  %2367 = vmatpush1.bf16.msra.mxu1 %v3829_v40  ;;  %v3897_v39 = vld [vmem:[%s4779_s6 + $0x768] sm:$0xff] }
 0x269   : > { %2327 = vmatprep.subr.bf16.mxu0 %v3836_v41  ;;  %2368 = vmatprep.subr.bf16.mxu1 %v3838_v43  ;;  %v3901_v40 = vld [vmem:[%s4779_s6 + $0x7e8] sm:$0xff]  ;;  %v3953_v41 = vcombine.low %v3888_v29, %v3892_v30  ;;  %v3955_v43 = vcombine.low %v3889_v31, %v3893_v32  ;;  %v5081_v30 = vld [vmem:[%s4785_s11] sm:$0xff] }
 0x26a   : > { %v3964_v45 = vcombine.high %v3897_v39, %v3901_v40 }
 0x26c   : > { %2328 = vmatpush1.bf16.msra.mxu0 %v3835_v49  ;;  %2369 = vmatpush1.bf16.msra.mxu1 %v3837_v50  ;;  %v3843_v49 = vld [vmem:[%s4779_s6 + $0x78] sm:$0xff] }
 0x26d   : > { %2893 = vmatprep.subr.bf16.mxu0 %v3906_v51  ;;  %2934 = vmatprep.subr.bf16.mxu1 %v3908_v52  ;;  %v3847_v50 = vld [vmem:[%s4779_s6 + $0xf8] sm:$0xff]  ;;  %v3961_v51 = vcombine.low %v3896_v37, %v3900_v38  ;;  %v3963_v52 = vcombine.low %v3897_v39, %v3901_v40  ;;  %v3890_v37 = vld [vmem:[%s4779_s6 + $0x670] sm:$0xff] }
 0x26e   : > { %v3912_v54 = vcombine.high %v3843_v49, %v3847_v50  ;;  %v3894_v38 = vld [vmem:[%s4779_s6 + $0x6f0] sm:$0xff]  ;;  %v3891_v40 = vld [vmem:[%s4779_s6 + $0x678] sm:$0xff] }
 0x26f   : > { %2346 = vmatmul.mubr.bf16.vlgmr.msra.gmra.mrb[20].mxu0 %v4832_v46  ;;  %2387 = vmatmul.mubr.bf16.vlgmr.msra.gmra.mrb[20].mxu1 %v5019_v1  ;;  %v3868_v46 = vld [vmem:[%s4779_s6 + $0x3e0] sm:$0xff] }
 0x270   : > { %2894 = vmatpush1.bf16.msra.mxu0 %v3905_v57  ;;  %2935 = vmatpush1.bf16.msra.mxu1 %v3907_v58  ;;  %v3930_v11 = vcombine.high %v3864_v6, %v3868_v46  ;;  %v3929_v17 = vcombine.low %v3864_v6, %v3868_v46  ;;  %v3851_v57 = vld [vmem:[%s4779_s6 + $0x178] sm:$0xff]  ;;  %v3926_v6 = vcombine.high %v3858_v63, %v3862_v0 }
 0x271   : > { %2895 = vmatprep.subr.bf16.mxu0 %v3914_v59  ;;  %2936 = vmatprep.subr.bf16.mxu1 %v3916_v60  ;;  %v3855_v58 = vld [vmem:[%s4779_s6 + $0x1f8] sm:$0xff]  ;;  %v3909_v59 = vcombine.low %v3842_v47, %v3846_v48  ;;  %v3911_v60 = vcombine.low %v3843_v49, %v3847_v50  ;;  %v3958_v49 = vcombine.high %v3890_v37, %v3894_v38 }
 0x272   : > { %2925 = vmatprep.mubr.bf16.mxu0 %v4525_v42  ;;  %2966 = vmatprep.mubr.bf16.mxu1 %v4525_v42  ;;  %v3920_v62 = vcombine.high %v3851_v57, %v3855_v58 }
 0x274   : > { %2896 = vmatpush1.bf16.msra.mxu0 %v3913_v2  ;;  %2937 = vmatpush1.bf16.msra.mxu1 %v3915_v3  ;;  %v3859_v2 = vld [vmem:[%s4779_s6 + $0x278] sm:$0xff] }
 0x275   : > { %2897 = vmatprep.subr.bf16.mxu0 %v3922_v4  ;;  %2938 = vmatprep.subr.bf16.mxu1 %v3924_v5  ;;  %v3863_v3 = vld [vmem:[%s4779_s6 + $0x2f8] sm:$0xff]  ;;  %v3917_v4 = vcombine.low %v3850_v55, %v3854_v56  ;;  %v3919_v5 = vcombine.low %v3851_v57, %v3855_v58 }
 0x276   : > { %v3928_v46 = vcombine.high %v3859_v2, %v3863_v3  ;;  %v3927_v13 = vcombine.low %v3859_v2, %v3863_v3  ;;  %v3899_v57 = vld [vmem:[%s4779_s6 + $0x778] sm:$0xff] }
 0x277   : > { %v3903_v58 = vld [vmem:[%s4779_s6 + $0x7f8] sm:$0xff] }
 0x278   : > { %2898 = vmatpush1.bf16.msra.mxu0 %v3921_v9  ;;  %2939 = vmatpush1.bf16.msra.mxu1 %v3923_v10  ;;  %v3867_v9 = vld [vmem:[%s4779_s6 + $0x378] sm:$0xff] }
 0x279   : > { %2899 = vmatprep.subr.bf16.mxu0 %v3930_v11  ;;  %2940 = vmatprep.subr.bf16.mxu1 %v3932_v12  ;;  %v3871_v10 = vld [vmem:[%s4779_s6 + $0x3f8] sm:$0xff]  ;;  %v546_v11 = vlaneseq  ;;  %v3925_v12 = vcombine.low %v3858_v63, %v3862_v0  ;;  %v3957_v63 = vcombine.low %v3890_v37, %v3894_v38  ;;  %v3644_v38 = vld [vmem:[%s4785_s11 + $0x8] sm:$0xff] }
 0x27a   : > { %v3936_v15 = vcombine.high %v3867_v9, %v3871_v10  ;;  %v3935_v21 = vcombine.low %v3867_v9, %v3871_v10 }
 0x27c   : > { %2900 = vmatpush1.bf16.msra.mxu0 %v3929_v17  ;;  %2941 = vmatpush1.bf16.msra.mxu1 %v3931_v18  ;;  %v3878_v17 = vld [vmem:[%s4779_s6 + $0x4f0] sm:$0xff]  ;;  %v3875_v18 = vld [vmem:[%s4779_s6 + $0x478] sm:$0xff] }
 0x27d   : > { %2901 = vmatprep.subr.bf16.mxu0 %v3938_v19  ;;  %2942 = vmatprep.subr.bf16.mxu1 %v3940_v20  ;;  %v3879_v19 = vld [vmem:[%s4779_s6 + $0x4f8] sm:$0xff]  ;;  %v5068_v20 = vshrl.u32 %v546_v11, 7  ;;  %v3942_v22 = vcombine.high %v3874_v16, %v3878_v17  ;;  %v3941_v29 = vcombine.low %v3874_v16, %v3878_v17 }
 0x27e   : > { %v3944_v23 = vcombine.high %v3875_v18, %v3879_v19 }
 0x27f   : > { %v5085_v31 = vsub.s32 2, %v5068_v20  ;;  %v5088_v32 = vsub.s32 1, %v5068_v20  ;;  %v5130_v9 = vsub.s32 4, %v5068_v20  ;;  %v5133_v10 = vsub.s32 6, %v5068_v20 }
 0x280   : > { %2902 = vmatpush1.bf16.msra.mxu0 %v3937_v25  ;;  %2943 = vmatpush1.bf16.msra.mxu1 %v3939_v26  ;;  %v3886_v25 = vld [vmem:[%s4779_s6 + $0x5f0] sm:$0xff]  ;;  %v5076_v26 = vsub.s32 0, %v5068_v20  ;;  %v5136_v11 = vsub.s32 5, %v5068_v20 }
 0x281   : > { %2903 = vmatprep.subr.bf16.mxu0 %v3946_v27  ;;  %2944 = vmatprep.subr.bf16.mxu1 %v3948_v28  ;;  %v3883_v27 = vld [vmem:[%s4779_s6 + $0x578] sm:$0xff] }
 0x282   : > { %v3887_v28 = vld [vmem:[%s4779_s6 + $0x5f8] sm:$0xff]  ;;  %v549_v39 = vrot.slane %v5081_v30, %v5076_v26 }
 0x283   : > { %v3951_v48 = vcombine.low %v3883_v27, %v3887_v28 }
 0x284   : > { %2904 = vmatpush1.bf16.msra.mxu0 %v3945_v33  ;;  %2945 = vmatpush1.bf16.msra.mxu1 %v3947_v34  ;;  %v3943_v33 = vcombine.low %v3875_v18, %v3879_v19  ;;  %v5091_v34 = vsub.s32 3, %v5068_v20 }
 0x285   : > { %2905 = vmatprep.subr.bf16.mxu0 %v3954_v35  ;;  %2946 = vmatprep.subr.bf16.mxu1 %v3956_v36  ;;  %v3950_v35 = vcombine.high %v3882_v24, %v3886_v25  ;;  %v3952_v36 = vcombine.high %v3883_v27, %v3887_v28 }
 0x286   : > { %v561_v47 = vrot.slane %v5081_v30, %v5091_v34 }
 0x288   : > { %2906 = vmatpush1.bf16.msra.mxu0 %v3953_v41  ;;  %2947 = vmatpush1.bf16.msra.mxu1 %v3955_v43  ;;  %v3895_v41 = vld [vmem:[%s4779_s6 + $0x6f8] sm:$0xff]  ;;  %v557_v43 = vrot.slane %v5081_v30, %v5085_v31 }
 0x289   : > { %2907 = vmatprep.subr.bf16.mxu0 %v3962_v44  ;;  %2948 = vmatprep.subr.bf16.mxu1 %v3964_v45  ;;  %v553_v44 = vrot.slane %v5081_v30, %v5088_v32  ;;  %v3949_v45 = vcombine.low %v3882_v24, %v3886_v25 }
 0x28c   : > { %2908 = vmatpush1.bf16.msra.mxu0 %v3961_v51  ;;  %2949 = vmatpush1.bf16.msra.mxu1 %v3963_v52  ;;  %v3960_v51 = vcombine.high %v3891_v40, %v3895_v41  ;;  %v3898_v52 = vld [vmem:[%s4779_s6 + $0x770] sm:$0xff] }
 0x28d   : > { %2975 = vmatprep.subr.bf16.mxu0 %v3910_v53  ;;  %3016 = vmatprep.subr.bf16.mxu1 %v3912_v54  ;;  %v3902_v53 = vld [vmem:[%s4779_s6 + $0x7f0] sm:$0xff] }
 0x28f   : > { %2926 = vmatmul.mubr.bf16.vlgmr.msra.gmra.mrb[24].mxu0 %v5019_v1  ;;  %2967 = vmatmul.mubr.bf16.vlgmr.msra.gmra.mrb[24].mxu1 %v5019_v1 }
 0x290   : > { %2976 = vmatpush1.bf16.msra.mxu0 %v3909_v59  ;;  %3017 = vmatpush1.bf16.msra.mxu1 %v3911_v60 }
 0x291   : > { %2977 = vmatprep.subr.bf16.mxu0 %v3918_v61  ;;  %3018 = vmatprep.subr.bf16.mxu1 %v3920_v62 }
 0x292   : > { %3007 = vmatprep.mubr.bf16.mxu0 %v4525_v42  ;;  %3048 = vmatprep.mubr.bf16.mxu1 %v4525_v42  ;;  %v3933_v42 = vcombine.low %v3866_v7, %v3870_v8  ;;  %v3965_v7 = vcombine.low %v3898_v52, %v3902_v53  ;;  %v3967_v8 = vcombine.low %v3899_v57, %v3903_v58 }
 0x294   : > { %2978 = vmatpush1.bf16.msra.mxu0 %v3917_v4  ;;  %3019 = vmatpush1.bf16.msra.mxu1 %v3919_v5  ;;  %v3959_v4 = vcombine.low %v3891_v40, %v3895_v41  ;;  %v3966_v5 = vcombine.high %v3898_v52, %v3902_v53  ;;  %v1220_v40 = vrot.slane %v3644_v38, %v5085_v31 }
 0x295   : > { %2979 = vmatprep.subr.bf16.mxu0 %v3926_v6  ;;  %3020 = vmatprep.subr.bf16.mxu1 %v3928_v46  ;;  %v3968_v46 = vcombine.high %v3899_v57, %v3903_v58  ;;  %v1216_v41 = vrot.slane %v3644_v38, %v5088_v32  ;;  %v1228_v58 = vrot.slane %v3644_v38, %v5130_v9 }
 0x298   : > { %2980 = vmatpush1.bf16.msra.mxu0 %v3925_v12  ;;  %3021 = vmatpush1.bf16.msra.mxu1 %v3927_v13  ;;  %v5139_v12 = vsub.s32 7, %v5068_v20  ;;  %v565_v13 = vrot.slane %v5081_v30, %v5130_v9 }
 0x299   : > { %2981 = vmatprep.subr.bf16.mxu0 %v3934_v14  ;;  %3022 = vmatprep.subr.bf16.mxu1 %v3936_v15  ;;  %v573_v14 = vrot.slane %v5081_v30, %v5133_v10 }
 0x29a   : > { %v577_v15 = vrot.slane %v5081_v30, %v5139_v12 }
 0x29c   : > { %2982 = vmatpush1.bf16.msra.mxu0 %v3933_v42  ;;  %3023 = vmatpush1.bf16.msra.mxu1 %v3935_v21 }
 0x29d   : > { %2983 = vmatprep.subr.bf16.mxu0 %v3942_v22  ;;  %3024 = vmatprep.subr.bf16.mxu1 %v3944_v23 }
 0x2a0   : > { %2984 = vmatpush1.bf16.msra.mxu0 %v3941_v29  ;;  %3025 = vmatpush1.bf16.msra.mxu1 %v3943_v33 }
 0x2a1   : > { %2985 = vmatprep.subr.bf16.mxu0 %v3950_v35  ;;  %3026 = vmatprep.subr.bf16.mxu1 %v3952_v36 }
 0x2a2   : > { %v940_v50 = vpop.f32.mrb[0].mxu0  ;;  %v981_v55 = vpop.f32.mrb[0].mxu1 }
 0x2a3   : > { %v5107_v54 = vadd.f32 %v940_v50, %v549_v39  ;;  %v942_v56 = vpop.f32.mrb[1].mxu0  ;;  %v5111_v59 = vadd.f32 %v981_v55, %v557_v43  ;;  %v983_v61 = vpop.f32.mrb[1].mxu1  ;;  %v1212_v39 = vrot.slane %v3644_v38, %v5076_v26  ;;  %v1224_v43 = vrot.slane %v3644_v38, %v5091_v34 }
 0x2a4   : > { %v5113_v60 = vadd.f32 %v942_v56, %v553_v44  ;;  %v944_v62 = vpop.f32.mrb[2].mxu0  ;;  %2986 = vmatpush1.bf16.msra.mxu0 %v3949_v45  ;;  %v5119_v0 = vadd.f32 %v983_v61, %v561_v47  ;;  %v985_v2 = vpop.f32.mrb[2].mxu1  ;;  %3027 = vmatpush1.bf16.msra.mxu1 %v3951_v48  ;;  %v1236_v61 = vrot.slane %v3644_v38, %v5133_v10 }
 0x2a5   : > { %1133 = vst [vmem:[%s5115_s7] sm:$0xff] %v5107_v54  ;;  %v945_v3 = vpop.f32.mrb[3].mxu0  ;;  %2987 = vmatprep.subr.bf16.mxu0 %v3958_v49  ;;  %1135 = vst [vmem:[%s5115_s7 + $0x10] sm:$0xff] %v5111_v59  ;;  %v986_v6 = vpop.f32.mrb[3].mxu1  ;;  %3028 = vmatprep.subr.bf16.mxu1 %v3960_v51  ;;  %v1232_v62 = vrot.slane %v3644_v38, %v5136_v11 }
 0x2a6   : > { %1134 = vst [vmem:[%s5115_s7 + $0x8] sm:$0xff] %v5113_v60  ;;  %1136 = vst [vmem:[%s5115_s7 + $0x18] sm:$0xff] %v5119_v0 }
 0x2a8   : > { %2988 = vmatpush1.bf16.msra.mxu0 %v3957_v63  ;;  %3029 = vmatpush1.bf16.msra.mxu1 %v3959_v4  ;;  %v1240_v63 = vrot.slane %v3644_v38, %v5139_v12 }
 0x2a9   : > { %2989 = vmatprep.subr.bf16.mxu0 %v3966_v5  ;;  %3030 = vmatprep.subr.bf16.mxu1 %v3968_v46 }
 0x2ac   : > { %2990 = vmatpush1.bf16.msra.mxu0 %v3965_v7  ;;  %3031 = vmatpush1.bf16.msra.mxu1 %v3967_v8 }
 0x2af   : > { %3008 = vmatmul.mubr.bf16.vlgmr.msra.gmra.mrb[28].mxu0 %v5019_v1  ;;  %3049 = vmatmul.mubr.bf16.vlgmr.msra.gmra.mrb[28].mxu1 %v5019_v1  ;;  %v569_v1 = vrot.slane %v5081_v30, %v5136_v11 }
 0x2c2   : > { %v1022_v16 = vpop.f32.mrb[4].mxu0  ;;  %v1063_v18 = vpop.f32.mrb[4].mxu1 }
 0x2c3   : > { %v5149_v17 = vadd.f32 %v1022_v16, %v565_v13  ;;  %v1024_v19 = vpop.f32.mrb[5].mxu0  ;;  %v5151_v20 = vadd.f32 %v1063_v18, %v573_v14  ;;  %v1065_v21 = vpop.f32.mrb[5].mxu1 }
 0x2c4   : > { %v5153_v42 = vadd.f32 %v1024_v19, %v569_v1  ;;  %v1026_v22 = vpop.f32.mrb[6].mxu0  ;;  %v5157_v23 = vadd.f32 %v1065_v21, %v577_v15  ;;  %v1067_v24 = vpop.f32.mrb[6].mxu1 }
 0x2c5   : > { %1137 = vst [vmem:[%s5115_s7 + $0x20] sm:$0xff] %v5149_v17  ;;  %v1027_v25 = vpop.f32.mrb[7].mxu0  ;;  %v1071_v27 = vmax.f32 %v5107_v54, %v5149_v17  ;;  %1139 = vst [vmem:[%s5115_s7 + $0x30] sm:$0xff] %v5151_v20  ;;  %v1068_v28 = vpop.f32.mrb[7].mxu1  ;;  %v1073_v30 = vmax.f32 %v5111_v59, %v5151_v20 }
 0x2c6   : > { %1138 = vst [vmem:[%s5115_s7 + $0x28] sm:$0xff] %v5153_v42  ;;  %v1072_v29 = vmax.f32 %v5113_v60, %v5153_v42  ;;  %1140 = vst [vmem:[%s5115_s7 + $0x38] sm:$0xff] %v5157_v23  ;;  %v1074_v33 = vmax.f32 %v5119_v0, %v5157_v23 }
 0x2c8   : > { %v1075_v35 = vmax.f32 %v1071_v27, %v1072_v29  ;;  %v1076_v36 = vmax.f32 %v1073_v30, %v1074_v33  ;;  %v3774_v27 = vld [vmem:[%s4785_s11 + $0x10] sm:$0xff] }
 0x2c9   : > { %v1874_v28 = vrot.slane %v3774_v27, %v5076_v26  ;;  %v1882_v29 = vrot.slane %v3774_v27, %v5085_v31  ;;  %v1878_v30 = vrot.slane %v3774_v27, %v5088_v32  ;;  %v1886_v33 = vrot.slane %v3774_v27, %v5091_v34 }
 0x2ca   : > { %v1077_v37 = vmax.f32 %v1075_v35, %v1076_v36 }
 0x2cc   : > { %1078 = vmax.xlane.f32.xlu0 %v1077_v37 }
 0x2e2   : > { %v1603_v44 = vpop.f32.mrb[8].mxu0  ;;  %v1644_v47 = vpop.f32.mrb[8].mxu1 }
 0x2e3   : > { %v5179_v45 = vadd.f32 %v1603_v44, %v1212_v39  ;;  %v1605_v48 = vpop.f32.mrb[9].mxu0  ;;  %v5181_v49 = vadd.f32 %v1644_v47, %v1220_v40  ;;  %v1646_v51 = vpop.f32.mrb[9].mxu1 }
 0x2e4   : > { %v5183_v50 = vadd.f32 %v1605_v48, %v1216_v41  ;;  %v1607_v52 = vpop.f32.mrb[10].mxu0  ;;  %v5189_v53 = vadd.f32 %v1646_v51, %v1224_v43  ;;  %v1648_v55 = vpop.f32.mrb[10].mxu1 }
 0x2e5   : > { %1795 = vst [vmem:[%s5185_s18] sm:$0xff] %v5179_v45  ;;  %v1608_v56 = vpop.f32.mrb[11].mxu0  ;;  %1797 = vst [vmem:[%s5185_s18 + $0x10] sm:$0xff] %v5181_v49  ;;  %v1649_v57 = vpop.f32.mrb[11].mxu1  ;;  %v1890_v52 = vrot.slane %v3774_v27, %v5130_v9  ;;  %v1898_v55 = vrot.slane %v3774_v27, %v5133_v10 }
 0x2e6   : > { %1796 = vst [vmem:[%s5185_s18 + $0x8] sm:$0xff] %v5183_v50  ;;  %1798 = vst [vmem:[%s5185_s18 + $0x18] sm:$0xff] %v5189_v53  ;;  %v1894_v56 = vrot.slane %v3774_v27, %v5136_v11  ;;  %v1902_v57 = vrot.slane %v3774_v27, %v5139_v12  ;;  %v5277_v27 = vld [vmem:[#allocation3] sm:$0xff] }
 0x302   : > { %v1685_v2 = vpop.f32.mrb[12].mxu0  ;;  %v1726_v4 = vpop.f32.mrb[12].mxu1 }
 0x303   : > { %v5201_v3 = vadd.f32 %v1685_v2, %v1228_v58  ;;  %v1687_v5 = vpop.f32.mrb[13].mxu0  ;;  %v5203_v6 = vadd.f32 %v1726_v4, %v1236_v61  ;;  %v1728_v7 = vpop.f32.mrb[13].mxu1 }
 0x304   : > { %v5205_v46 = vadd.f32 %v1687_v5, %v1232_v62  ;;  %v1689_v8 = vpop.f32.mrb[14].mxu0  ;;  %v5211_v14 = vadd.f32 %v1728_v7, %v1240_v63  ;;  %v1730_v1 = vpop.f32.mrb[14].mxu1 }
 0x305   : > { %v1734_v13 = vmax.f32 %v5179_v45, %v5201_v3  ;;  %1799 = vst [vmem:[%s5185_s18 + $0x20] sm:$0xff] %v5201_v3  ;;  %v1690_v15 = vpop.f32.mrb[15].mxu0  ;;  %v1736_v16 = vmax.f32 %v5181_v49, %v5203_v6  ;;  %1801 = vst [vmem:[%s5185_s18 + $0x30] sm:$0xff] %v5203_v6  ;;  %v1731_v19 = vpop.f32.mrb[15].mxu1 }
 0x306   : > { %v1735_v18 = vmax.f32 %v5183_v50, %v5205_v46  ;;  %1800 = vst [vmem:[%s5185_s18 + $0x28] sm:$0xff] %v5205_v46  ;;  %v1737_v21 = vmax.f32 %v5189_v53, %v5211_v14  ;;  %1802 = vst [vmem:[%s5185_s18 + $0x38] sm:$0xff] %v5211_v14 }
 0x308   : > { %v1738_v22 = vmax.f32 %v1734_v13, %v1735_v18  ;;  %v1739_v24 = vmax.f32 %v1736_v16, %v1737_v21 }
 0x30a   : > { %v1740_v25 = vmax.f32 %v1738_v22, %v1739_v24 }
 0x30c   : > { %1741 = vmax.xlane.f32.xlu0 %v1740_v25 }
 0x322   : > { %v2265_v35 = vpop.f32.mrb[16].mxu0  ;;  %v2306_v37 = vpop.f32.mrb[16].mxu1 }
 0x323   : > { %v5231_v36 = vadd.f32 %v2265_v35, %v1874_v28  ;;  %v2267_v38 = vpop.f32.mrb[17].mxu0  ;;  %v5233_v39 = vadd.f32 %v2306_v37, %v1882_v29  ;;  %v2308_v41 = vpop.f32.mrb[17].mxu1 }
 0x324   : > { %v5235_v40 = vadd.f32 %v2267_v38, %v1878_v30  ;;  %v2269_v43 = vpop.f32.mrb[18].mxu0  ;;  %v5241_v44 = vadd.f32 %v2308_v41, %v1886_v33  ;;  %v2310_v47 = vpop.f32.mrb[18].mxu1  ;;  %v3904_v30 = vld [vmem:[%s4785_s11 + $0x18] sm:$0xff] }
 0x325   : > { %2457 = vst [vmem:[%s5237_s21] sm:$0xff] %v5231_v36  ;;  %v2270_v48 = vpop.f32.mrb[19].mxu0  ;;  %2459 = vst [vmem:[%s5237_s21 + $0x10] sm:$0xff] %v5233_v39  ;;  %v2311_v51 = vpop.f32.mrb[19].mxu1  ;;  %v2536_v35 = vrot.slane %v3904_v30, %v5076_v26  ;;  %v2544_v37 = vrot.slane %v3904_v30, %v5085_v31  ;;  %v2540_v38 = vrot.slane %v3904_v30, %v5088_v32 }
 0x326   : > { %2458 = vst [vmem:[%s5237_s21 + $0x8] sm:$0xff] %v5235_v40  ;;  %2460 = vst [vmem:[%s5237_s21 + $0x18] sm:$0xff] %v5241_v44  ;;  %v2548_v41 = vrot.slane %v3904_v30, %v5091_v34 }
 0x342   : > { %v2347_v58 = vpop.f32.mrb[20].mxu0  ;;  %v2388_v62 = vpop.f32.mrb[20].mxu1 }
 0x343   : > { %v5253_v61 = vadd.f32 %v2347_v58, %v1890_v52  ;;  %v2349_v63 = vpop.f32.mrb[21].mxu0  ;;  %v5255_v2 = vadd.f32 %v2388_v62, %v1898_v55  ;;  %v2390_v5 = vpop.f32.mrb[21].mxu1  ;;  %v2552_v58 = vrot.slane %v3904_v30, %v5130_v9  ;;  %v2560_v62 = vrot.slane %v3904_v30, %v5133_v10 }
 0x344   : > { %v5257_v4 = vadd.f32 %v2349_v63, %v1894_v56  ;;  %v2351_v7 = vpop.f32.mrb[22].mxu0  ;;  %v5261_v8 = vadd.f32 %v2390_v5, %v1902_v57  ;;  %v2392_v13 = vpop.f32.mrb[22].mxu1  ;;  %v2556_v63 = vrot.slane %v3904_v30, %v5136_v11  ;;  %v2564_v5 = vrot.slane %v3904_v30, %v5139_v12 }
 0x345   : > { %2461 = vst [vmem:[%s5237_s21 + $0x20] sm:$0xff] %v5253_v61  ;;  %v2352_v1 = vpop.f32.mrb[23].mxu0  ;;  %v2396_v15 = vmax.f32 %v5231_v36, %v5253_v61  ;;  %2463 = vst [vmem:[%s5237_s21 + $0x30] sm:$0xff] %v5255_v2  ;;  %v2393_v16 = vpop.f32.mrb[23].mxu1  ;;  %v2398_v19 = vmax.f32 %v5233_v39, %v5255_v2 }
 0x346   : > { %2462 = vst [vmem:[%s5237_s21 + $0x28] sm:$0xff] %v5257_v4  ;;  %v2397_v18 = vmax.f32 %v5235_v40, %v5257_v4  ;;  %2464 = vst [vmem:[%s5237_s21 + $0x38] sm:$0xff] %v5261_v8  ;;  %v2399_v21 = vmax.f32 %v5241_v44, %v5261_v8 }
 0x348   : > { %v2400_v22 = vmax.f32 %v2396_v15, %v2397_v18  ;;  %v2401_v24 = vmax.f32 %v2398_v19, %v2399_v21 }
 0x34a   : > { %v2402_v25 = vmax.f32 %v2400_v22, %v2401_v24 }
 0x34c   : > { %2403 = vmax.xlane.f32.xlu1 %v2402_v25 }
 0x359   : > { %v1079_v28 = vpop.xlane.xlu0 %1078 }
 0x35a   : > { %v5281_v29 = vmax.f32 %v5277_v27, %v1079_v28 }
 0x35c   : > { %v1082_v33 = vsub.f32 %v5277_v27, %v5281_v29  ;;  %1127 = vst.msk [vmem:[#allocation3] sm:$0xff] %vm1125_vm2, %v5281_v29  ;;  %1088 = vperm.xlu0 %4170, %v5281_v29  }
 0x362   : > { %v2927_v43 = vpop.f32.mrb[24].mxu0  ;;  %v2968_v48 = vpop.f32.mrb[24].mxu1 }
 0x363   : > { %v5293_v47 = vadd.f32 %v2927_v43, %v2536_v35  ;;  %v2929_v51 = vpop.f32.mrb[25].mxu0  ;;  %v5295_v52 = vadd.f32 %v2968_v48, %v2544_v37  ;;  %v2970_v56 = vpop.f32.mrb[25].mxu1 }
 0x364   : > { %v5297_v55 = vadd.f32 %v2929_v51, %v2540_v38  ;;  %v2931_v57 = vpop.f32.mrb[26].mxu0  ;;  %v5303_v26 = vadd.f32 %v2970_v56, %v2548_v41  ;;  %v2972_v31 = vpop.f32.mrb[26].mxu1  ;;  %v5339_v38 = vld [vmem:[#allocation3] sm:$0xff] }
 0x365   : > { %3119 = vst [vmem:[%s5299_s10] sm:$0xff] %v5293_v47  ;;  %v2932_v32 = vpop.f32.mrb[27].mxu0  ;;  %3121 = vst [vmem:[%s5299_s10 + $0x10] sm:$0xff] %v5295_v52  ;;  %v2973_v34 = vpop.f32.mrb[27].mxu1 }
 0x366   : > { %3120 = vst [vmem:[%s5299_s10 + $0x8] sm:$0xff] %v5297_v55  ;;  %3122 = vst [vmem:[%s5299_s10 + $0x18] sm:$0xff] %v5303_v26 }
 0x382   : > { %v3009_v7 = vpop.f32.mrb[28].mxu0  ;;  %v3050_v1 = vpop.f32.mrb[28].mxu1 }
 0x383   : > { %v5315_v13 = vadd.f32 %v3009_v7, %v2552_v58  ;;  %v3011_v15 = vpop.f32.mrb[29].mxu0  ;;  %v5317_v16 = vadd.f32 %v3050_v1, %v2560_v62  ;;  %v3052_v19 = vpop.f32.mrb[29].mxu1 }
 0x384   : > { %v5319_v18 = vadd.f32 %v3011_v15, %v2556_v63  ;;  %v3013_v9 = vpop.f32.mrb[30].mxu0  ;;  %v5325_v11 = vadd.f32 %v3052_v19, %v2564_v5  ;;  %v3054_v12 = vpop.f32.mrb[30].mxu1 }
 0x385   : > { %v3058_v10 = vmax.f32 %v5293_v47, %v5315_v13  ;;  %3123 = vst [vmem:[%s5299_s10 + $0x20] sm:$0xff] %v5315_v13  ;;  %v3014_v21 = vpop.f32.mrb[31].mxu0  ;;  %v3060_v22 = vmax.f32 %v5295_v52, %v5317_v16  ;;  %3125 = vst [vmem:[%s5299_s10 + $0x30] sm:$0xff] %v5317_v16  ;;  %v3055_v25 = vpop.f32.mrb[31].mxu1 }
 0x386   : > { %v3059_v24 = vmax.f32 %v5297_v55, %v5319_v18  ;;  %3124 = vst [vmem:[%s5299_s10 + $0x28] sm:$0xff] %v5319_v18  ;;  %v3061_v28 = vmax.f32 %v5303_v26, %v5325_v11  ;;  %3126 = vst [vmem:[%s5299_s10 + $0x38] sm:$0xff] %v5325_v11 }
 0x388   : > { %v3062_v30 = vmax.f32 %v3058_v10, %v3059_v24  ;;  %v3063_v35 = vmax.f32 %v3060_v22, %v3061_v28 }
 0x38a   : > { %v3064_v37 = vmax.f32 %v3062_v30, %v3063_v35 }
 0x38c   : > { %3065 = vmax.xlane.f32.xlu1 %v3064_v37 }
 0x399   : > { %v1742_v41 = vpop.xlane.xlu0 %1741 }
 0x39a   : > { %v5342_v43 = vmax.f32 %v5339_v38, %v1742_v41 }
 0x39c   : > { %v1745_v48 = vsub.f32 %v5339_v38, %v5342_v43  ;;  %1789 = vst.msk [vmem:[#allocation3] sm:$0xff] %vm1125_vm2, %v5342_v43 }
 0x39d   : > { %1751 = vperm.xlu1 %4171, %v5342_v43  }
 0x3a3   : > { %v5349_v56 = vld [vmem:[#allocation3] sm:$0xff] }
 0x3d9   : > { %v2404_v51 = vpop.xlane.xlu1 %2403 }
 0x3da   : > { %v5352_v57 = vmax.f32 %v5349_v56, %v2404_v51 }
 0x3db   : > { %v5359_v32 = vpop.permute.xlu0 %1088 }
 0x3dc   : > { %v2407_v31 = vsub.f32 %v5349_v56, %v5352_v57  ;;  %2451 = vst.msk [vmem:[#allocation3] sm:$0xff] %vm1125_vm2, %v5352_v57  ;;  %2413 = vperm.xlu1 %4171, %v5352_v57   ;;  %v1091_v34 = vsub.f32 %v5107_v54, %v5359_v32  ;;  %v1092_v58 = vsub.f32 %v5113_v60, %v5359_v32  ;;  %v4526_v57 = vmov (!%p3970_p5), 0  }
 0x3dd   : > { %v1093_v5 = vsub.f32 %v5111_v59, %v5359_v32  ;;  %v1094_v7 = vsub.f32 %v5119_v0, %v5359_v32  ;;  %v1095_v21 = vsub.f32 %v5149_v17, %v5359_v32  ;;  %v1097_v51 = vsub.f32 %v5151_v20, %v5359_v32  ;;  %4245 = vset.pattern.permute.xlu0 (!%p3970_p5), %v4526_v57 }
 0x3de   : > { %v1099_v62 = vmul.f32 1.442695, %v1091_v34  ;;  %v1101_v63 = vmul.f32 1.442695, %v1092_v58  ;;  %v2408_v27 = vmul.f32 1.442695, %v2407_v31 }
 0x3df   : > { %v1103_v54 = vmul.f32 1.442695, %v1093_v5  ;;  %v1105_v59 = vmul.f32 1.442695, %v1094_v7  ;;  %v1111_v5 = vmul.f32 1.442695, %v1097_v51 }
 0x3e0   : > { %4172 = vpow2.f32 %v1099_v62 }
 0x3e1   : > { %4174 = vpow2.f32 %v1101_v63 }
 0x3e2   : > { %4176 = vpow2.f32 %v1103_v54 }
 0x3e3   : > { %v5369_v15 = vld [vmem:[#allocation3] sm:$0xff]  ;;  %4178 = vpow2.f32 %v1105_v59 }
 0x3ea   : > { %v4173_v35 = vpop.eup %4172 }
 0x3eb   : > { %v4175_v37 = vpop.eup %4174 }
 0x3ec   : > { %v1115_v34 = vadd.f32 %v4175_v37, %v4173_v35  ;;  %v4177_v62 = vpop.eup %4176 }
 0x3ed   : > { %v4179_v7 = vpop.eup %4178 }
 0x419   : > { %v3066_v1 = vpop.xlane.xlu1 %3065 }
 0x41a   : > { %v5372_v19 = vmax.f32 %v5369_v15, %v3066_v1  ;;  %v1098_v1 = vsub.f32 %v5157_v23, %v5359_v32 }
 0x41c   : > { %v3069_v60 = vsub.f32 %v5369_v15, %v5372_v19  ;;  %3113 = vst.msk [vmem:[#allocation3] sm:$0xff] %vm1125_vm2, %v5372_v19  ;;  %3075 = vperm.xlu1 %4171, %v5372_v19   ;;  %v3142_v19 = vld [vmem:[#allocation14] sm:$0xff] (!%p3970_p5) }
 0x41d   : > { %v1752_v9 = vpop.permute.xlu1 %1751 }
 0x41e   : > { %v1754_v0 = vsub.f32 %v5179_v45, %v1752_v9  ;;  %v1755_v10 = vsub.f32 %v5183_v50, %v1752_v9  ;;  %v1756_v12 = vsub.f32 %v5181_v49, %v1752_v9  ;;  %v1757_v22 = vsub.f32 %v5189_v53, %v1752_v9 }
 0x41f   : > { %v1758_v30 = vsub.f32 %v5201_v3, %v1752_v9  ;;  %v1096_v45 = vsub.f32 %v5153_v42, %v5359_v32  ;;  %v1107_v50 = vmul.f32 1.442695, %v1095_v21  ;;  %v1759_v17 = vsub.f32 %v5205_v46, %v1752_v9 }
 0x420   : > { %v1762_v24 = vmul.f32 1.442695, %v1754_v0  ;;  %v1764_v25 = vmul.f32 1.442695, %v1755_v10  ;;  %v1766_v28 = vmul.f32 1.442695, %v1756_v12  ;;  %v1760_v53 = vsub.f32 %v5203_v6, %v1752_v9 }
 0x421   : > { %v1768_v49 = vmul.f32 1.442695, %v1757_v22  ;;  %v1770_v41 = vmul.f32 1.442695, %v1758_v30  ;;  %v1109_v3 = vmul.f32 1.442695, %v1096_v45  ;;  %v1761_v58 = vsub.f32 %v5211_v14, %v1752_v9 }
 0x422   : > { %4180 = vpow2.f32 %v1762_v24  ;;  %v1772_v42 = vmul.f32 1.442695, %v1759_v17  ;;  %v1774_v63 = vmul.f32 1.442695, %v1760_v53  ;;  %v1116_v46 = vadd.f32 %v4177_v62, %v1115_v34 }
 0x423   : > { %4182 = vpow2.f32 %v1764_v25  ;;  %v1776_v6 = vmul.f32 1.442695, %v1761_v58  ;;  %v1113_v0 = vmul.f32 1.442695, %v1098_v1 }
 0x424   : > { %4184 = vpow2.f32 %v1766_v28  ;;  %v1117_v14 = vadd.f32 %v4179_v7, %v1116_v46 }
 0x425   : > { %4186 = vpow2.f32 %v1107_v50 }
 0x426   : > { %4188 = vpow2.f32 %v1768_v49 }
 0x427   : > { %4190 = vpow2.f32 %v1770_v41 }
 0x428   : > { %4192 = vpow2.f32 %v1109_v3 }
 0x429   : > { %4194 = vpow2.f32 %v1772_v42 }
 0x42a   : > { %4196 = vpow2.f32 %v1774_v63 }
 0x42b   : > { %4198 = vpow2.f32 %v1111_v5 }
 0x42c   : > { %v4181_v20 = vpop.eup %4180  ;;  %4200 = vpow2.f32 %v1776_v6 }
 0x42d   : > { %v4183_v54 = vpop.eup %4182  ;;  %4202 = vpow2.f32 %v1113_v0 }
 0x42e   : > { %v1778_v59 = vadd.f32 %v4183_v54, %v4181_v20  ;;  %v4185_v9 = vpop.eup %4184 }
 0x42f   : > { %v4187_v10 = vpop.eup %4186 }
 0x430   : > { %v1779_v12 = vadd.f32 %v4185_v9, %v1778_v59  ;;  %v4189_v21 = vpop.eup %4188  ;;  %v1118_v24 = vadd.f32 %v4187_v10, %v1117_v14 }
 0x431   : > { %v4191_v25 = vpop.eup %4190 }
 0x432   : > { %v1780_v22 = vadd.f32 %v4189_v21, %v1779_v12  ;;  %v4193_v28 = vpop.eup %4192 }
 0x433   : > { %v4195_v35 = vpop.eup %4194  ;;  %v1119_v32 = vadd.f32 %v4193_v28, %v1118_v24 }
 0x434   : > { %v1781_v30 = vadd.f32 %v4191_v25, %v1780_v22  ;;  %v4197_v45 = vpop.eup %4196 }
 0x435   : > { %v4199_v50 = vpop.eup %4198 }
 0x436   : > { %v1782_v23 = vadd.f32 %v4195_v35, %v1781_v30  ;;  %v4201_v49 = vpop.eup %4200  ;;  %v1120_v53 = vadd.f32 %v4199_v50, %v1119_v32 }
 0x437   : > { %v4203_v41 = vpop.eup %4202 }
 0x438   : > { %v1783_v37 = vadd.f32 %v4197_v45, %v1782_v23  ;;  %v1121_v51 = vadd.f32 %v4203_v41, %v1120_v53 }
 0x43a   : > { %v1784_v17 = vadd.f32 %v4201_v49, %v1783_v37 }
 0x43c   : > { %1785 = vadd.xlane.f32.xlu0 %v1784_v17 }
 0x440   : > { %1122 = vadd.xlane.f32.xlu1 %v1121_v51 }
 0x45b   : > { %v2414_v3 = vpop.permute.xlu1 %2413 }
 0x45c   : > { %v2416_v34 = vsub.f32 %v5231_v36, %v2414_v3  ;;  %v2417_v58 = vsub.f32 %v5235_v40, %v2414_v3  ;;  %v2418_v42 = vsub.f32 %v5233_v39, %v2414_v3  ;;  %v2419_v62 = vsub.f32 %v5241_v44, %v2414_v3 }
 0x45d   : > { %v2420_v7 = vsub.f32 %v5253_v61, %v2414_v3  ;;  %v2421_v1 = vsub.f32 %v5257_v4, %v2414_v3  ;;  %v2422_v20 = vsub.f32 %v5255_v2, %v2414_v3  ;;  %v2423_v40 = vsub.f32 %v5261_v8, %v2414_v3 }
 0x45e   : > { %v2424_v63 = vmul.f32 1.442695, %v2416_v34  ;;  %v2426_v5 = vmul.f32 1.442695, %v2417_v58  ;;  %v2428_v46 = vmul.f32 1.442695, %v2418_v42 }
 0x45f   : > { %v2430_v6 = vmul.f32 1.442695, %v2419_v62  ;;  %v2432_v36 = vmul.f32 1.442695, %v2420_v7  ;;  %v2434_v39 = vmul.f32 1.442695, %v2421_v1 }
 0x460   : > { %4204 = vpow2.f32 %v2424_v63  ;;  %v2436_v44 = vmul.f32 1.442695, %v2422_v20  ;;  %v2438_v54 = vmul.f32 1.442695, %v2423_v40 }
 0x461   : > { %4206 = vpow2.f32 %v2426_v5 }
 0x462   : > { %4208 = vpow2.f32 %v2428_v46 }
 0x463   : > { %4210 = vpow2.f32 %v2430_v6 }
 0x464   : > { %4212 = vpow2.f32 %v2432_v36  ;;  %v1083_v36 = vmul.f32 1.442695, %v1082_v33 }
 0x465   : > { %4214 = vpow2.f32 %v2434_v39  ;;  %v1746_v39 = vmul.f32 1.442695, %v1745_v48 }
 0x466   : > { %4216 = vpow2.f32 %v2436_v44  ;;  %v1081_v44 = vld [vmem:[#allocation4] sm:$0xff] }
 0x467   : > { %4218 = vpow2.f32 %v2438_v54 }
 0x46a   : > { %v4205_v59 = vpop.eup %4204 }
 0x46b   : > { %v4207_v14 = vpop.eup %4206 }
 0x46c   : > { %v2440_v61 = vadd.f32 %v4207_v14, %v4205_v59  ;;  %v4209_v9 = vpop.eup %4208 }
 0x46d   : > { %v4211_v4 = vpop.eup %4210 }
 0x46e   : > { %v2441_v0 = vadd.f32 %v4209_v9, %v2440_v61  ;;  %v4213_v12 = vpop.eup %4212 }
 0x46f   : > { %v4215_v21 = vpop.eup %4214 }
 0x470   : > { %v2442_v10 = vadd.f32 %v4211_v4, %v2441_v0  ;;  %v4217_v8 = vpop.eup %4216 }
 0x471   : > { %v4219_v25 = vpop.eup %4218 }
 0x472   : > { %v2443_v2 = vadd.f32 %v4213_v12, %v2442_v10  ;;  %v3070_v12 = vmul.f32 1.442695, %v3069_v60  ;;  %v3143_v60 = vld [vmem:[#allocation14 + $0x8] sm:$0xff] (!%p3970_p5) }
 0x474   : > { %v2444_v22 = vadd.f32 %v4215_v21, %v2443_v2 }
 0x476   : > { %v2445_v24 = vadd.f32 %v4217_v8, %v2444_v22 }
 0x478   : > { %v2446_v28 = vadd.f32 %v4219_v25, %v2445_v24  ;;  %v3131_v25 = vld [vmem:[#allocation3] sm:$0xff] (!%p3970_p5) }
 0x47a   : > { %2447 = vadd.xlane.f32.xlu1 %v2446_v28 }
 0x49b   : > { %v3076_v30 = vpop.permute.xlu1 %3075 }
 0x49c   : > { %v3078_v35 = vsub.f32 %v5293_v47, %v3076_v30  ;;  %v3079_v23 = vsub.f32 %v5297_v55, %v3076_v30  ;;  %v3080_v32 = vsub.f32 %v5295_v52, %v3076_v30  ;;  %v3081_v45 = vsub.f32 %v5303_v26, %v3076_v30 }
 0x49d   : > { %v3082_v17 = vsub.f32 %v5315_v13, %v3076_v30  ;;  %v3083_v41 = vsub.f32 %v5319_v18, %v3076_v30  ;;  %v3084_v51 = vsub.f32 %v5317_v16, %v3076_v30  ;;  %v3085_v55 = vsub.f32 %v5325_v11, %v3076_v30  ;;  %v3144_v30 = vld [vmem:[#allocation14 + $0x10] sm:$0xff] (!%p3970_p5) }
 0x49e   : > { %v3086_v50 = vmul.f32 1.442695, %v3078_v35  ;;  %v3088_v37 = vmul.f32 1.442695, %v3079_v23  ;;  %v3090_v49 = vmul.f32 1.442695, %v3080_v32 }
 0x49f   : > { %v3092_v53 = vmul.f32 1.442695, %v3081_v45  ;;  %v3094_v47 = vmul.f32 1.442695, %v3082_v17  ;;  %v3096_v52 = vmul.f32 1.442695, %v3083_v41 }
 0x4a0   : > { %4220 = vpow2.f32 %v3086_v50  ;;  %v3098_v26 = vmul.f32 1.442695, %v3084_v51  ;;  %v3100_v3 = vmul.f32 1.442695, %v3085_v55  ;;  %v3145_v35 = vld [vmem:[#allocation14 + $0x18] sm:$0xff] (!%p3970_p5)  ;;  %v3146_v23 = vld [vmem:[#allocation14 + $0x20] sm:$0xff] (!%p3970_p5) }
 0x4a1   : > { %4222 = vpow2.f32 %v3088_v37  ;;  %v3147_v32 = vld [vmem:[#allocation14 + $0x28] sm:$0xff] (!%p3970_p5)  ;;  %v3148_v45 = vld [vmem:[#allocation14 + $0x30] sm:$0xff] (!%p3970_p5)  ;;  %v3149_v50 = vld [vmem:[#allocation14 + $0x38] sm:$0xff] (!%p3970_p5) }
 0x4a2   : > { %4224 = vpow2.f32 %v3090_v49  ;;  %v3150_v37 = vld [vmem:[#allocation14 + $0x40] sm:$0xff] (!%p3970_p5)  ;;  %v3151_v49 = vld [vmem:[#allocation14 + $0x48] sm:$0xff] (!%p3970_p5)  ;;  %v3152_v17 = vld [vmem:[#allocation14 + $0x50] sm:$0xff] (!%p3970_p5) }
 0x4a3   : > { %4226 = vpow2.f32 %v3092_v53  ;;  %v3153_v53 = vld [vmem:[#allocation14 + $0x58] sm:$0xff] (!%p3970_p5)  ;;  %v5428_v41 = vld [vmem:[#allocation14 + $0x60] sm:$0xff] (!%p3970_p5)  ;;  %v5430_v51 = vld [vmem:[#allocation14 + $0x68] sm:$0xff] (!%p3970_p5) }
 0x4a4   : > { %4228 = vpow2.f32 %v3094_v47  ;;  %v5432_v47 = vld [vmem:[#allocation14 + $0x70] sm:$0xff] (!%p3970_p5)  ;;  %v5434_v55 = vld [vmem:[#allocation14 + $0x78] sm:$0xff] (!%p3970_p5) }
 0x4a5   : > { %4230 = vpow2.f32 %v3096_v52 }
 0x4a6   : > { %4232 = vpow2.f32 %v3098_v26  ;;  %v5438_v26 = vld [vmem:[#allocation14 + $0x80] sm:$0xff] (!%p3970_p5) }
 0x4a7   : > { %4234 = vpow2.f32 %v3100_v3  ;;  %v5440_v3 = vld [vmem:[#allocation14 + $0x88] sm:$0xff] (!%p3970_p5) }
 0x4a8   : > { %4236 = vpow2.f32 %v1083_v36 }
 0x4a9   : > { %4238 = vpow2.f32 %v1746_v39 }
 0x4aa   : > { %v4221_v34 = vpop.eup %4220  ;;  %4240 = vpow2.f32 %v2408_v27  ;;  %v5485_v27 = vld [vmem:[#allocation14 + $0x108] sm:$0xff] (!%p3970_p5) }
 0x4ab   : > { %v4223_v58 = vpop.eup %4222  ;;  %4242 = vpow2.f32 %v3070_v12 }
 0x4ac   : > { %v3102_v13 = vadd.f32 %v4223_v58, %v4221_v34  ;;  %v4225_v42 = vpop.eup %4224  ;;  %v5442_v34 = vld [vmem:[#allocation14 + $0x90] sm:$0xff] (!%p3970_p5)  ;;  %v5444_v58 = vld [vmem:[#allocation14 + $0x98] sm:$0xff] (!%p3970_p5) }
 0x4ad   : > { %v4227_v18 = vpop.eup %4226 }
 0x4ae   : > { %v3103_v62 = vadd.f32 %v4225_v42, %v3102_v13  ;;  %v4229_v5 = vpop.eup %4228  ;;  %v5447_v13 = vld [vmem:[#allocation14 + $0xa0] sm:$0xff] (!%p3970_p5)  ;;  %v5449_v42 = vld [vmem:[#allocation14 + $0xa8] sm:$0xff] (!%p3970_p5) }
 0x4af   : > { %v4231_v46 = vpop.eup %4230 }
 0x4b0   : > { %v3104_v63 = vadd.f32 %v4227_v18, %v3103_v62  ;;  %v4233_v11 = vpop.eup %4232  ;;  %v5451_v62 = vld [vmem:[#allocation14 + $0xb0] sm:$0xff] (!%p3970_p5)  ;;  %v5453_v18 = vld [vmem:[#allocation14 + $0xb8] sm:$0xff] (!%p3970_p5) }
 0x4b1   : > { %v4235_v1 = vpop.eup %4234 }
 0x4b2   : > { %v3105_v16 = vadd.f32 %v4229_v5, %v3104_v63  ;;  %v4237_v40 = vpop.eup %4236 }
 0x4b3   : > { %v1085_v54 = vmul.f32 %v4237_v40, %v1081_v44  ;;  %v4239_v61 = vpop.eup %4238  ;;  %v5471_v44 = vld [vmem:[#allocation14 + $0xe0] sm:$0xff] (!%p3970_p5) }
 0x4b4   : > { %v3106_v7 = vadd.f32 %v4231_v46, %v3105_v16  ;;  %v4241_v33 = vpop.eup %4240 }
 0x4b5   : > { %v4243_v21 = vpop.eup %4242 }
 0x4b6   : > { %v3107_v6 = vadd.f32 %v4233_v11, %v3106_v7  ;;  %v5459_v7 = vld [vmem:[#allocation14 + $0xc0] sm:$0xff] (!%p3970_p5)  ;;  %v5461_v11 = vld [vmem:[#allocation14 + $0xc8] sm:$0xff] (!%p3970_p5) }
 0x4b8   : > { %v3108_v20 = vadd.f32 %v4235_v1, %v3107_v6  ;;  %v5463_v6 = vld [vmem:[#allocation14 + $0xd0] sm:$0xff] (!%p3970_p5)  ;;  %v5465_v1 = vld [vmem:[#allocation14 + $0xd8] sm:$0xff] (!%p3970_p5) }
 0x4ba   : > { %3109 = vadd.xlane.f32.xlu1 %v3108_v20 }
 0x4c9   : > { %v1786_v4 = vpop.xlane.xlu0 %1785 }
 0x4cd   : > { %v1123_v59 = vpop.xlane.xlu1 %1122 }
 0x4ce   : > { %v1124_v14 = vadd.f32 %v1123_v59, %v1085_v54  ;;  %v5473_v54 = vld [vmem:[#allocation14 + $0xe8] sm:$0xff] (!%p3970_p5)  ;;  %v5475_v59 = vld [vmem:[#allocation14 + $0xf0] sm:$0xff] (!%p3970_p5) }
 0x4d0   : > { %1126 = vst.msk [vmem:[#allocation4] sm:$0xff] %vm1125_vm2, %v1124_v14  ;;  %v5477_v14 = vld [vmem:[#allocation14 + $0xf8] sm:$0xff] (!%p3970_p5) }
 0x4d7   : > { %v1744_v9 = vld [vmem:[#allocation4] sm:$0xff] }
 0x4d8   : > { %v1748_v0 = vmul.f32 %v4239_v61, %v1744_v9 }
 0x4da   : > { %v1787_v10 = vadd.f32 %v1786_v4, %v1748_v0 }
 0x4dc   : > { %1788 = vst.msk [vmem:[#allocation4] sm:$0xff] %vm1125_vm2, %v1787_v10  ;;  %v5483_v10 = vld [vmem:[#allocation14 + $0x100] sm:$0xff] (!%p3970_p5) }
 0x4e3   : > { %v2406_v29 = vld [vmem:[#allocation4] sm:$0xff] }
 0x4e4   : > { %v2410_v38 = vmul.f32 %v4241_v33, %v2406_v29  ;;  %v5487_v29 = vld [vmem:[#allocation14 + $0x110] sm:$0xff] (!%p3970_p5)  ;;  %v5489_v33 = vld [vmem:[#allocation14 + $0x118] sm:$0xff] (!%p3970_p5) }
 0x507   : > { %v2448_v43 = vpop.xlane.xlu1 %2447 }
 0x508   : > { %v2449_v48 = vadd.f32 %v2448_v43, %v2410_v38 }
 0x50a   : > { %2450 = vst.msk [vmem:[#allocation4] sm:$0xff] %vm1125_vm2, %v2449_v48 }
 0x511   : > { %v3068_v2 = vld [vmem:[#allocation4] sm:$0xff] }
 0x512   : > { %v3072_v22 = vmul.f32 %v4243_v21, %v3068_v2  ;;  %v5499_v2 = vld [vmem:[#allocation14 + $0x120] sm:$0xff] (!%p3970_p5)  ;;  %v5501_v21 = vld [vmem:[#allocation14 + $0x128] sm:$0xff] (!%p3970_p5) }
 0x544   : > { %3130 = sbr.rel (%p3970_p5) target bundleno = 1540 (0x604), region = 68 }
 0x547   : > { %v3110_v8 = vpop.xlane.xlu1 %3109 }
 0x548   : > { %v3111_v24 = vadd.f32 %v3110_v8, %v3072_v22  ;;  %v5503_v22 = vld [vmem:[#allocation14 + $0x130] sm:$0xff] (!%p3970_p5)  ;;  %v5505_v8 = vld [vmem:[#allocation14 + $0x138] sm:$0xff] (!%p3970_p5) }
 0x54a   : > { %3112 = vst.msk [vmem:[#allocation4] sm:$0xff] %vm1125_vm2, %v3111_v24 }
 0x551   : > { %v3132_v56 = vld [vmem:[#allocation4] sm:$0xff] }
 0x552   : > { %4246 = vlog2.f32 %v3132_v56 }
 0x55c   : > { %v4247_v31 = vpop.eup %4246 }
 0x55d   : > { %v3134_v28 = vmul.f32 0.6931472, %v4247_v31 }
 0x55f   : > { %v3135_v15 = vadd.f32 %v3134_v28, %v3131_v25  ;;  %v5515_v25 = vld [vmem:[#allocation14 + $0x140] sm:$0xff]  ;;  %v5517_v28 = vld [vmem:[#allocation14 + $0x148] sm:$0xff] }
 0x561   : > { %3138 = vperm.xlu0 %4245, %v3135_v15   ;;  %v5519_v15 = vld [vmem:[#allocation14 + $0x150] sm:$0xff] }
 0x5e0   : > { %v5436_v52 = vpop.permute.xlu0 %3138 }
 0x5e1   : > { %3141 = vst [vmem:[#allocation15] sm:$0xff] %v5436_v52  ;;  %v3206_v63 = vsub.f32 %v3142_v19, %v5436_v52  ;;  %v3207_v5 = vsub.f32 %v3143_v60, %v5436_v52  ;;  %v3208_v16 = vsub.f32 %v3144_v30, %v5436_v52  ;;  %v3209_v46 = vsub.f32 %v3145_v35, %v5436_v52 }
 0x5e2   : > { %v3210_v20 = vsub.f32 %v3146_v23, %v5436_v52  ;;  %v3211_v36 = vsub.f32 %v3147_v32, %v5436_v52  ;;  %v3212_v40 = vsub.f32 %v3148_v45, %v5436_v52  ;;  %v3213_v39 = vsub.f32 %v3149_v50, %v5436_v52  ;;  %v5529_v23 = vld [vmem:[#allocation14 + $0x158] sm:$0xff]  ;;  %v5531_v32 = vld [vmem:[#allocation14 + $0x160] sm:$0xff]  ;;  %v5533_v45 = vld [vmem:[#allocation14 + $0x168] sm:$0xff] }
 0x5e3   : > { %v3214_v61 = vsub.f32 %v3150_v37, %v5436_v52  ;;  %v3215_v9 = vsub.f32 %v3151_v49, %v5436_v52  ;;  %v3216_v0 = vsub.f32 %v3152_v17, %v5436_v52  ;;  %v3217_v4 = vsub.f32 %v3153_v53, %v5436_v52  ;;  %3270 = vst [vmem:[#allocation14] sm:$0xff] %v3206_v63  ;;  %v5543_v53 = vld [vmem:[#allocation14 + $0x170] sm:$0xff] }
 0x5e4   : > { %3271 = vst [vmem:[#allocation14 + $0x8] sm:$0xff] %v3207_v5  ;;  %3272 = vst [vmem:[#allocation14 + $0x10] sm:$0xff] %v3208_v16  ;;  %v3218_v38 = vsub.f32 %v5428_v41, %v5436_v52  ;;  %v3219_v43 = vsub.f32 %v5430_v51, %v5436_v52  ;;  %v3220_v48 = vsub.f32 %v5432_v47, %v5436_v52  ;;  %v5545_v41 = vld [vmem:[#allocation14 + $0x178] sm:$0xff]  ;;  %v5547_v51 = vld [vmem:[#allocation14 + $0x180] sm:$0xff] }
 0x5e5   : > { %3273 = vst [vmem:[#allocation14 + $0x18] sm:$0xff] %v3209_v46  ;;  %v3221_v12 = vsub.f32 %v5434_v55, %v5436_v52  ;;  %3274 = vst [vmem:[#allocation14 + $0x20] sm:$0xff] %v3210_v20  ;;  %v3222_v24 = vsub.f32 %v5438_v26, %v5436_v52  ;;  %v3223_v56 = vsub.f32 %v5440_v3, %v5436_v52  ;;  %v5571_v5 = vld [vmem:[#allocation14 + $0x1a0] sm:$0xff]  ;;  %v5573_v16 = vld [vmem:[#allocation14 + $0x1a8] sm:$0xff] }
 0x5e6   : > { %3275 = vst [vmem:[#allocation14 + $0x28] sm:$0xff] %v3211_v36  ;;  %3276 = vst [vmem:[#allocation14 + $0x30] sm:$0xff] %v3212_v40  ;;  %v3224_v57 = vsub.f32 %v5442_v34, %v5436_v52  ;;  %v3225_v31 = vsub.f32 %v5444_v58, %v5436_v52  ;;  %v3226_v19 = vsub.f32 %v5447_v13, %v5436_v52  ;;  %v5557_v34 = vld [vmem:[#allocation14 + $0x188] sm:$0xff]  ;;  %v5559_v58 = vld [vmem:[#allocation14 + $0x190] sm:$0xff] }
 0x5e7   : > { %3277 = vst [vmem:[#allocation14 + $0x38] sm:$0xff] %v3213_v39  ;;  %3278 = vst [vmem:[#allocation14 + $0x40] sm:$0xff] %v3214_v61  ;;  %v3227_v60 = vsub.f32 %v5449_v42, %v5436_v52  ;;  %v3228_v30 = vsub.f32 %v5451_v62, %v5436_v52  ;;  %v3229_v35 = vsub.f32 %v5453_v18, %v5436_v52  ;;  %v5561_v13 = vld [vmem:[#allocation14 + $0x198] sm:$0xff]  ;;  %v5575_v46 = vld [vmem:[#allocation14 + $0x1b0] sm:$0xff] }
 0x5e8   : > { %3279 = vst [vmem:[#allocation14 + $0x48] sm:$0xff] %v3215_v9  ;;  %3280 = vst [vmem:[#allocation14 + $0x50] sm:$0xff] %v3216_v0  ;;  %v3230_v50 = vsub.f32 %v5459_v7, %v5436_v52  ;;  %v3231_v37 = vsub.f32 %v5461_v11, %v5436_v52  ;;  %v3232_v49 = vsub.f32 %v5463_v6, %v5436_v52  ;;  %v3197_v20 = vld [vmem:[#allocation14 + $0x1b8] sm:$0xff]  ;;  %v3198_v36 = vld [vmem:[#allocation14 + $0x1c0] sm:$0xff] }
 0x5e9   : > { %3281 = vst [vmem:[#allocation14 + $0x58] sm:$0xff] %v3217_v4  ;;  %3282 = vst [vmem:[#allocation14 + $0x60] sm:$0xff] %v3218_v38  ;;  %v3233_v17 = vsub.f32 %v5465_v1, %v5436_v52  ;;  %v3234_v47 = vsub.f32 %v5471_v44, %v5436_v52  ;;  %v3235_v55 = vsub.f32 %v5473_v54, %v5436_v52  ;;  %v3199_v40 = vld [vmem:[#allocation14 + $0x1c8] sm:$0xff]  ;;  %v3201_v61 = vld [vmem:[#allocation14 + $0x1d8] sm:$0xff] }
 0x5ea   : > { %3283 = vst [vmem:[#allocation14 + $0x68] sm:$0xff] %v3219_v43  ;;  %3284 = vst [vmem:[#allocation14 + $0x70] sm:$0xff] %v3220_v48  ;;  %v3236_v26 = vsub.f32 %v5475_v59, %v5436_v52  ;;  %v3237_v3 = vsub.f32 %v5477_v14, %v5436_v52  ;;  %v3238_v42 = vsub.f32 %v5483_v10, %v5436_v52  ;;  %v3200_v14 = vld [vmem:[#allocation14 + $0x1d0] sm:$0xff]  ;;  %v3202_v9 = vld [vmem:[#allocation14 + $0x1e0] sm:$0xff] }
 0x5eb   : > { %3285 = vst [vmem:[#allocation14 + $0x78] sm:$0xff] %v3221_v12  ;;  %3286 = vst [vmem:[#allocation14 + $0x80] sm:$0xff] %v3222_v24  ;;  %v3239_v62 = vsub.f32 %v5485_v27, %v5436_v52  ;;  %v3240_v18 = vsub.f32 %v5487_v29, %v5436_v52  ;;  %v3241_v63 = vsub.f32 %v5489_v33, %v5436_v52  ;;  %v3203_v29 = vld [vmem:[#allocation14 + $0x1e8] sm:$0xff]  ;;  %v3204_v33 = vld [vmem:[#allocation14 + $0x1f0] sm:$0xff] }
 0x5ec   : > { %3287 = vst [vmem:[#allocation14 + $0x88] sm:$0xff] %v3223_v56  ;;  %3288 = vst [vmem:[#allocation14 + $0x90] sm:$0xff] %v3224_v57  ;;  %v3242_v7 = vsub.f32 %v5499_v2, %v5436_v52  ;;  %v3243_v11 = vsub.f32 %v5501_v21, %v5436_v52  ;;  %v3244_v6 = vsub.f32 %v5503_v22, %v5436_v52  ;;  %v3205_v38 = vld [vmem:[#allocation14 + $0x1f8] sm:$0xff] }
 0x5ed   : > { %3289 = vst [vmem:[#allocation14 + $0x98] sm:$0xff] %v3225_v31  ;;  %3290 = vst [vmem:[#allocation14 + $0xa0] sm:$0xff] %v3226_v19  ;;  %v3245_v1 = vsub.f32 %v5505_v8, %v5436_v52  ;;  %v3246_v39 = vsub.f32 %v5515_v25, %v5436_v52  ;;  %v3247_v44 = vsub.f32 %v5517_v28, %v5436_v52 }
 0x5ee   : > { %3291 = vst [vmem:[#allocation14 + $0xa8] sm:$0xff] %v3227_v60  ;;  %3292 = vst [vmem:[#allocation14 + $0xb0] sm:$0xff] %v3228_v30  ;;  %v3248_v54 = vsub.f32 %v5519_v15, %v5436_v52  ;;  %v3249_v59 = vsub.f32 %v5529_v23, %v5436_v52  ;;  %v3250_v0 = vsub.f32 %v5531_v32, %v5436_v52 }
 0x5ef   : > { %3293 = vst [vmem:[#allocation14 + $0xb8] sm:$0xff] %v3229_v35  ;;  %3294 = vst [vmem:[#allocation14 + $0xc0] sm:$0xff] %v3230_v50  ;;  %v3251_v4 = vsub.f32 %v5533_v45, %v5436_v52  ;;  %v3252_v10 = vsub.f32 %v5543_v53, %v5436_v52  ;;  %v3253_v27 = vsub.f32 %v5545_v41, %v5436_v52 }
 0x5f0   : > { %3295 = vst [vmem:[#allocation14 + $0xc8] sm:$0xff] %v3231_v37  ;;  %3296 = vst [vmem:[#allocation14 + $0xd0] sm:$0xff] %v3232_v49  ;;  %v3254_v43 = vsub.f32 %v5547_v51, %v5436_v52  ;;  %v3255_v48 = vsub.f32 %v5557_v34, %v5436_v52  ;;  %v3256_v12 = vsub.f32 %v5559_v58, %v5436_v52 }
 0x5f1   : > { %3297 = vst [vmem:[#allocation14 + $0xd8] sm:$0xff] %v3233_v17  ;;  %3298 = vst [vmem:[#allocation14 + $0xe0] sm:$0xff] %v3234_v47  ;;  %v3257_v2 = vsub.f32 %v5561_v13, %v5436_v52  ;;  %v3258_v21 = vsub.f32 %v5571_v5, %v5436_v52  ;;  %v3259_v22 = vsub.f32 %v5573_v16, %v5436_v52 }
 0x5f2   : > { %3299 = vst [vmem:[#allocation14 + $0xe8] sm:$0xff] %v3235_v55  ;;  %3300 = vst [vmem:[#allocation14 + $0xf0] sm:$0xff] %v3236_v26  ;;  %v3260_v8 = vsub.f32 %v5575_v46, %v5436_v52  ;;  %v3261_v24 = vsub.f32 %v3197_v20, %v5436_v52  ;;  %v3262_v56 = vsub.f32 %v3198_v36, %v5436_v52 }
 0x5f3   : > { %3301 = vst [vmem:[#allocation14 + $0xf8] sm:$0xff] %v3237_v3  ;;  %3302 = vst [vmem:[#allocation14 + $0x100] sm:$0xff] %v3238_v42  ;;  %v3263_v57 = vsub.f32 %v3199_v40, %v5436_v52  ;;  %v3264_v31 = vsub.f32 %v3200_v14, %v5436_v52  ;;  %v3265_v25 = vsub.f32 %v3201_v61, %v5436_v52 }
 0x5f4   : > { %3303 = vst [vmem:[#allocation14 + $0x108] sm:$0xff] %v3239_v62  ;;  %3304 = vst [vmem:[#allocation14 + $0x110] sm:$0xff] %v3240_v18  ;;  %v3266_v28 = vsub.f32 %v3202_v9, %v5436_v52  ;;  %v3267_v15 = vsub.f32 %v3203_v29, %v5436_v52  ;;  %v3268_v19 = vsub.f32 %v3204_v33, %v5436_v52 }
 0x5f5   : > { %3305 = vst [vmem:[#allocation14 + $0x118] sm:$0xff] %v3241_v63  ;;  %3306 = vst [vmem:[#allocation14 + $0x120] sm:$0xff] %v3242_v7  ;;  %v3269_v60 = vsub.f32 %v3205_v38, %v5436_v52 }
 0x5f6   : > { %3307 = vst [vmem:[#allocation14 + $0x128] sm:$0xff] %v3243_v11  ;;  %3308 = vst [vmem:[#allocation14 + $0x130] sm:$0xff] %v3244_v6 }
 0x5f7   : > { %3309 = vst [vmem:[#allocation14 + $0x138] sm:$0xff] %v3245_v1  ;;  %3310 = vst [vmem:[#allocation14 + $0x140] sm:$0xff] %v3246_v39 }
 0x5f8   : > { %3311 = vst [vmem:[#allocation14 + $0x148] sm:$0xff] %v3247_v44  ;;  %3312 = vst [vmem:[#allocation14 + $0x150] sm:$0xff] %v3248_v54 }
 0x5f9   : > { %3313 = vst [vmem:[#allocation14 + $0x158] sm:$0xff] %v3249_v59  ;;  %3314 = vst [vmem:[#allocation14 + $0x160] sm:$0xff] %v3250_v0 }
 0x5fa   : > { %3315 = vst [vmem:[#allocation14 + $0x168] sm:$0xff] %v3251_v4  ;;  %3316 = vst [vmem:[#allocation14 + $0x170] sm:$0xff] %v3252_v10 }
 0x5fb   : > { %3317 = vst [vmem:[#allocation14 + $0x178] sm:$0xff] %v3253_v27  ;;  %3318 = vst [vmem:[#allocation14 + $0x180] sm:$0xff] %v3254_v43 }
 0x5fc   : > { %3319 = vst [vmem:[#allocation14 + $0x188] sm:$0xff] %v3255_v48  ;;  %3320 = vst [vmem:[#allocation14 + $0x190] sm:$0xff] %v3256_v12 }
 0x5fd   : > { %3321 = vst [vmem:[#allocation14 + $0x198] sm:$0xff] %v3257_v2  ;;  %3322 = vst [vmem:[#allocation14 + $0x1a0] sm:$0xff] %v3258_v21 }
 0x5fe   : > { %3323 = vst [vmem:[#allocation14 + $0x1a8] sm:$0xff] %v3259_v22  ;;  %3324 = vst [vmem:[#allocation14 + $0x1b0] sm:$0xff] %v3260_v8 }
 0x5ff   : > { %3325 = vst [vmem:[#allocation14 + $0x1b8] sm:$0xff] %v3261_v24  ;;  %3326 = vst [vmem:[#allocation14 + $0x1c0] sm:$0xff] %v3262_v56 }
 0x600   : > { %3327 = vst [vmem:[#allocation14 + $0x1c8] sm:$0xff] %v3263_v57  ;;  %3328 = vst [vmem:[#allocation14 + $0x1d0] sm:$0xff] %v3264_v31 }
 0x601   : > { %3329 = vst [vmem:[#allocation14 + $0x1d8] sm:$0xff] %v3265_v25  ;;  %3330 = vst [vmem:[#allocation14 + $0x1e0] sm:$0xff] %v3266_v28 }
 0x602   : > { %3331 = vst [vmem:[#allocation14 + $0x1e8] sm:$0xff] %v3267_v15  ;;  %3332 = vst [vmem:[#allocation14 + $0x1f0] sm:$0xff] %v3268_v19 }
 0x603   : > { %3333 = vst [vmem:[#allocation14 + $0x1f8] sm:$0xff] %v3269_v60 }
 0x604 PF: > { %p4103_p7 = scmp.eq.s32.totalorder %s4593_s27, 1  ;;  %s4527_s24 = smov [#allocation14]  }
 0x605   : > { %s3344_s15 = sshll.u32 %s4527_s24, 4  ;;  %s4528_s19 = smov [#allocation15]   ;;  %s3345_s15 = int_to_ptr.vmem [resolvable:$true] %s3344_s15 }
 0x606   : > { %s3357_s30 = sshll.u32 %s4528_s19, 4  ;;  %s4392_s6 = scalar_lea.vmem %s3345_s15, 8192  ;;  %s5625_s30 = int_to_ptr.vmem [resolvable:$true] %s3357_s30 }
 0x607   : > { %p4393_p0 = scmp.ne.s32.totalorder %s3345_s15, %s4392_s6  ;;  %p4399_p10 = scmp.lt.s32.totalorder %s3345_s15, %s3345_s15 }
 0x608   : > { %p4400_p11 = scmp.lt.s32.totalorder %s4392_s6, %s4392_s6 }
 0x609   : > { %p4394_p2 = pnand %p4393_p0, %p4103_p7 }
 0x60a   : > { %p4401_p9 = por %p4400_p11, %p4399_p10 }
 0x60b   : > { %p4395_p13 = pneg %p4394_p2 }
 0x60d   : > { %p4402_p3 = pnand %p4401_p9, %p4395_p13 }
 0x60f   : > { %4405 = shalt.err (!%p4402_p3)
}
 0x610   : > { %s4406_s29 = scalar_lea.hbm %s5699_s5, 8192 }
 0x611   : > { %p4407_p6 = scmp.ne.s32.totalorder %s5699_s5, %s4406_s29  ;;  %p4412_p12 = scmp.lt.u32.totalorder %s4406_s29, %s5699_s5 }
 0x613   : > { %p4408_p8 = pnand %p4407_p6, %p4103_p7 }
 0x615   : > { %p4409_p1 = pneg %p4408_p8 }
 0x617   : > { %p4414_p4 = pnand %p4412_p12, %p4409_p1 }
 0x619   : > { %4417 = shalt.err (!%p4414_p4)
}
 0x61a   : > { %4072 = dma.vmem_to_hbm [thread:$0]  (%p4103_p7), %s3345_s15, 8192, %s5699_s5, [#allocation7]  }
 0x61b   : > { %s4418_s18 = scalar_lea.vmem %s5625_s30, 128  ;;  %p4425_p13 = scmp.lt.s32.totalorder %s5625_s30, %s5625_s30 }
 0x61c   : > { %p4419_p5 = scmp.ne.s32.totalorder %s5625_s30, %s4418_s18  ;;  %p4426_p10 = scmp.lt.s32.totalorder %s4418_s18, %s4418_s18 }
 0x61e   : > { %p4420_p0 = pnand %p4419_p5, %p4103_p7  ;;  %p4427_p11 = por %p4426_p10, %p4425_p13 }
 0x620   : > { %p4421_p2 = pneg %p4420_p0 }
 0x622   : > { %p4428_p9 = pnand %p4427_p11, %p4421_p2 }
 0x624   : > { %4431 = shalt.err (!%p4428_p9)
}
 0x625   : > { %s5739_s12 = sld [smem:[#allocation27_spill]] }
 0x62b   : > { %s4432_s21 = scalar_lea.hbm %s5739_s12, 128 }
 0x62c   : > { %p4433_p3 = scmp.ne.s32.totalorder %s5739_s12, %s4432_s21  ;;  %p4438_p1 = scmp.lt.u32.totalorder %s4432_s21, %s5739_s12 }
 0x62e   : > { %p4434_p6 = pnand %p4433_p3, %p4103_p7 }
 0x630   : > { %p4435_p8 = pneg %p4434_p6 }
 0x632   : > { %p4440_p12 = pnand %p4438_p1, %p4435_p8 }
 0x634   : > { %4443 = shalt.err (!%p4440_p12)
}
 0x635   : > { %4074 = dma.vmem_to_hbm [thread:$0]  (%p4103_p7), %s5625_s30, 128, %s5739_s12, [#allocation16]  }
 0x636   : > { %4481 = dma.done.wait (%p4103_p7), [#allocation7], 8192  }
 0x637   : > { %4483 = vsyncadd (%p4103_p7), [#allocation7], 4294959104 }
 0x638   : > { %4485 = dma.done.wait (%p4103_p7), [#allocation16], 128  }
 0x639   : > { %4487 = vsyncadd (%p4103_p7), [#allocation16], 4294967168 }
 0x63a PF: > { %s5740_s19 = sld [smem:[#allocation22_spill]]  ;;  %s5741_s6 = sld [smem:[#allocation24_spill]] }
 0x63b   : > { %s5742_s30 = sld [smem:[#allocation23_spill]]  ;;  %s5743_s21 = smov %s4494_s22 }
 0x63c   : > { %s5744_s22 = smov %s4498_s23  ;;  %s5746_s24 = smov %s4506_s25 }
 0x640   : > { %s24_s26 = sadd.s32 1, %s5740_s19   ;;  %s5745_s23 = smov %s5741_s6 }
 0x641   : > { %p21_p4 = scmp.ge.s32.totalorder %s24_s26, 4   ;;  %s5747_s25 = smov %s5742_s30 }
 0x643   :  { %23 = sbr.rel (!%p21_p4) target bundleno = 12 (0xc), region = 129 }
 0x64a   :  { %3374 = vsyncpa [#allocation6], 1 }
 0x64b   :  { %3376 = vsyncpa [#allocation6 + $0x1], 1 }
 0x64c   :  { %3377 = vsyncpa [#allocation9], 1 }
 0x64d   :  { %3378 = vsyncpa [#allocation12], 1 }
 0x64e   :  { %3380 = vsyncpa [#allocation12 + $0x1], 1 }
 0x64f   :  { %3381 = vsyncpa [#allocation7], 1 }
 0x650   :  { %3383 = vsyncpa [#allocation7 + $0x1], 1 }
 0x651   :  { %3384 = vsyncpa [#allocation16], 1 }

</bundles_post_ra>
